<compile_context>
chip_gen: v5e
topology: v5e:2x2
jax: 0.10.0
libtpu: 0.0.40
codegen_flags: <defaults>
</compile_context>

<pallas_src>
import functools
import math

import jax
import jax.numpy as jnp
from jax.experimental import pallas as pl
from jax.experimental.pallas import tpu as pltpu

NHEAD = 4
NUM_LAYERS = 3
LN_EPS = 1e-5
OUT_LANES = 128        # lane-dense output slab width


def _layernorm(x, w, b):
    mu = jnp.mean(x, axis=-1, keepdims=True)
    var = jnp.mean((x - mu) ** 2, axis=-1, keepdims=True)
    return (x - mu) * jax.lax.rsqrt(var + LN_EPS) * w + b


# ---------------------------------------------------------------------------
# Pallas kernel: one batch tile (batch_tile * seq rows) per grid step
# ---------------------------------------------------------------------------
def transformer_kernel(x_ref, m_ref,
                       embed_wt_ref, gvec_ref, wqkv_ref, bqkv_ref,
                       wout_ref, wff_ref, evec_ref, cstack_ref,
                       o_ref, *, seq_len, batch_tile, out_rows):
    BT, S = batch_tile, seq_len
    R = BT * S                                # fused (batch, seq) row count
    E = evec_ref.shape[2]
    H = cstack_ref.shape[2]
    dh = E // NHEAD
    bf16 = jnp.bfloat16

    gv = gvec_ref[...]                        # (6, W) packed global vectors, f32

    # ---- embed: Linear + ReLU (bf16 operands, f32 accumulation)
    h = jnp.maximum(
        jnp.dot(x_ref[...].astype(bf16), embed_wt_ref[...],
                preferred_element_type=jnp.float32) + gv[0, :E], 0.0)   # (R,E) f32

    # ---- 3 post-norm transformer encoder layers
    for l in range(NUM_LAYERS):
        ev = evec_ref[l]          # (7, E) f32: [op_b, n1w, n1b, n2w, n2b, l1b, l2b]
        wo = wout_ref[l]          # (NHEAD, dh, E) bf16
        wff = wff_ref[l]          # (2, E, E) bf16 (pre-transposed)

        # fused QKV: one lane-dense (R,E)@(E,3E) matmul; 1/sqrt(dh) already
        # folded into the q columns + q bias at pack time.
        qkv = jnp.dot(h.astype(bf16), wqkv_ref[l],
                      preferred_element_type=jnp.float32) + bqkv_ref[l]  # (R,3E)
        qkv = qkv.reshape(BT, S, 3 * E)       # real batch dim — no (R,R) mask

        attn = None
        for hd in range(NHEAD):               # static lane slices per head
            q = qkv[:, :, hd * dh:(hd + 1) * dh].astype(bf16)
            k = qkv[:, :, E + hd * dh:E + (hd + 1) * dh].astype(bf16)
            v = qkv[:, :, 2 * E + hd * dh:2 * E + (hd + 1) * dh].astype(bf16)

            s = jnp.einsum("bqd,bkd->bqk", q, k,
                           preferred_element_type=jnp.float32)      # (BT,S,S) f32
            s = s - jnp.max(s, axis=-1, keepdims=True)
            p = jnp.exp(s)
            p = p * pl.reciprocal(jnp.sum(p, axis=-1, keepdims=True), approx=True)

            ctx = jnp.einsum("bqk,bkd->bqd", p.astype(bf16), v,
                             preferred_element_type=jnp.float32)    # (BT,S,dh)
            part = jnp.einsum("bqd,de->bqe", ctx.astype(bf16), wo[hd],
                              preferred_element_type=jnp.float32)   # (BT,S,E)
            attn = part if attn is None else attn + part            # f32 accumulate

        attn = attn.reshape(R, E) + ev[0]
        h = _layernorm(h + attn, ev[1], ev[2])

        ff = jnp.maximum(
            jnp.dot(h.astype(bf16), wff[0],
                    preferred_element_type=jnp.float32) + ev[5], 0.0)
        ff = jnp.dot(ff.astype(bf16), wff[1],
                     preferred_element_type=jnp.float32) + ev[6]
        h = _layernorm(h + ff, ev[3], ev[4])

    # ---- masked sum over sequence (VPU multiply + sublane reduce)
    pooled = jnp.sum((h * m_ref[...]).reshape(BT, S, E), axis=1)    # (BT, E) f32
    if out_rows > BT:   # sublane-pad so the classifier + final store stay unmasked
        pooled = jnp.concatenate(
            [pooled, jnp.zeros((out_rows - BT, E), jnp.float32)], axis=0)

    # ---- classifier MLP + sigmoid (bf16 matmuls, f32 accumulation)
    cw = cstack_ref[...]                                            # (3, W, H) bf16
    z = jnp.maximum(jnp.dot(pooled.astype(bf16), cw[0, :E],
                            preferred_element_type=jnp.float32) + gv[1, :H], 0.0)
    z = jnp.maximum(jnp.dot(z.astype(bf16), cw[1, :H],
                            preferred_element_type=jnp.float32) + gv[2, :H], 0.0)
    z = jnp.maximum(jnp.dot(z.astype(bf16), cw[2, :H],
                            preferred_element_type=jnp.float32) + gv[3, :H], 0.0)
    # final 1-wide column: VPU multiply + lane reduce (no 1-lane-output matmul)
    logit = jnp.sum(z * gv[4, :H], axis=-1, keepdims=True) + gv[5:6, :1]  # (out_rows,1)
    # lane-dense, sublane-unmasked store
    o_ref[0] = jnp.broadcast_to(jax.nn.sigmoid(logit),
                                (out_rows, o_ref.shape[-1]))


# ---------------------------------------------------------------------------
# weight packing: pre-transpose, fuse QKV, fold score scale, coalesce vectors
# ---------------------------------------------------------------------------
PACKED_ORDER = ["embed_wt", "gvec", "w_qkv", "b_qkv", "w_out", "w_ff",
                "enc_vec", "cstack"]


def pack_params(p):
    E = p["embed_w"].shape[0]
    H = p["c1_w"].shape[0]
    dh = E // NHEAD
    W = max(E, H)
    scale = 1.0 / math.sqrt(dh)
    bf16 = jnp.bfloat16

    # global vectors (f32): embed_b, c1_b, c2_b, c3_b, c4 weight column, c4_b
    gvec = jnp.zeros((6, W), jnp.float32)
    gvec = gvec.at[0, :E].set(p["embed_b"])
    gvec = gvec.at[1, :H].set(p["c1_b"])
    gvec = gvec.at[2, :H].set(p["c2_b"])
    gvec = gvec.at[3, :H].set(p["c3_b"])
    gvec = gvec.at[4, :H].set(p["c4_w"][0])
    gvec = gvec.at[5, 0].set(p["c4_b"][0])

    # fused QKV weight (L, E, 3E), 1/sqrt(dh) folded into the q columns+bias
    col_scale = jnp.concatenate(
        [jnp.full((E,), scale, jnp.float32), jnp.ones((2 * E,), jnp.float32)])
    w_qkv = jnp.transpose(p["ip_w"], (0, 2, 1)) * col_scale          # (L, E, 3E)
    b_qkv = (p["ip_b"] * col_scale).astype(jnp.float32)              # (L, 3E)

    # per-head output projection (rows of Wo^T), MXU-accumulated in the kernel
    w_out = jnp.transpose(p["op_w"], (0, 2, 1)).reshape(NUM_LAYERS, NHEAD, dh, E)

    w_ff = jnp.stack([jnp.transpose(p["l1_w"], (0, 2, 1)),
                      jnp.transpose(p["l2_w"], (0, 2, 1))], axis=1)  # (L, 2, E, E)

    enc_vec = jnp.stack([p["op_b"], p["n1_w"], p["n1_b"], p["n2_w"], p["n2_b"],
                         p["l1_b"], p["l2_b"]], axis=1)              # (L, 7, E)

    # classifier stack (3, W, H): c1^T zero-padded along the input dim if E<W
    def pad_w(m):
        k = m.shape[0]
        return m if k == W else jnp.concatenate(
            [m, jnp.zeros((W - k, H), m.dtype)], axis=0)
    cstack = jnp.stack([pad_w(p["c1_w"].T), pad_w(p["c2_w"].T), pad_w(p["c3_w"].T)])

    return dict(
        embed_wt=p["embed_w"].T.astype(bf16),       # (Din, E)
        gvec=gvec,                                  # (6, W)   f32
        w_qkv=w_qkv.astype(bf16),                   # (L, E, 3E)
        b_qkv=b_qkv,                                # (L, 3E)  f32
        w_out=w_out.astype(bf16),                   # (L, NHEAD, dh, E)
        w_ff=w_ff.astype(bf16),                     # (L, 2, E, E)
        enc_vec=enc_vec.astype(jnp.float32),        # (L, 7, E)
        cstack=cstack.astype(bf16),                 # (3, W, H)
    )


def _default_batch_tile(B):
    # single-TC v5e/v6e: one grid step (no payoff from a 2nd sweep over the
    # constant weight blocks); dual-TC v7x: two "parallel" steps.
    try:
        kind = jax.devices()[0].device_kind.lower()
    except Exception:
        kind = ""
    if B > 1 and ("v7" in kind or "7x" in kind):
        return (B + 1) // 2
    return B


def transformer_forward(x, mask, params, batch_tile=None):
    B, S, Din = x.shape
    if batch_tile is None:
        batch_tile = _default_batch_tile(B)
    num_tiles = -(-B // batch_tile)
    B_pad = num_tiles * batch_tile
    if B_pad != B:
        pad = B_pad - B
        x = jnp.concatenate([x, jnp.zeros((pad, S, Din), x.dtype)], axis=0)
        mask = jnp.concatenate([mask, jnp.zeros((pad, S), mask.dtype)], axis=0)

    x_flat = x.reshape(B_pad * S, Din).astype(jnp.float32)
    m_flat = mask.reshape(B_pad * S, 1).astype(jnp.float32)

    packed = pack_params(params)
    weights = [packed[k] for k in PACKED_ORDER]

    R = batch_tile * S
    out_rows = max(8, ((batch_tile + 7) // 8) * 8)   # 8-sublane-padded output

    def const_map(nd):
        return lambda i, _nd=nd: (0,) * _nd

    in_specs = ([pl.BlockSpec((R, Din), lambda i: (i, 0)),
                 pl.BlockSpec((R, 1), lambda i: (i, 0))]
                + [pl.BlockSpec(w.shape, const_map(w.ndim)) for w in weights])

    kernel = functools.partial(transformer_kernel, seq_len=S,
                               batch_tile=batch_tile, out_rows=out_rows)

    out = pl.pallas_call(
        kernel,
        out_shape=jax.ShapeDtypeStruct((num_tiles, out_rows, OUT_LANES),
                                       jnp.float32),
        grid=(num_tiles,),
        in_specs=in_specs,
        out_specs=pl.BlockSpec((1, out_rows, OUT_LANES), lambda i: (i, 0, 0)),
        compiler_params=pltpu.CompilerParams(dimension_semantics=("parallel",)),
    )(x_flat, m_flat, *weights)

    return out[:, :batch_tile, :1].reshape(B_pad, 1)[:B]


# ---------------------------------------------------------------------------
# deterministic synthetic parameters (PyTorch-style shapes: [out, in])
# ---------------------------------------------------------------------------
def init_params(key, input_dim, embed_dim, hidden_size):
    ks = iter(jax.random.split(key, 32))

    def w(shape, scale=0.1):
        return (scale * jax.random.normal(next(ks), shape)).astype(jnp.float32)

    L = NUM_LAYERS
    return {
        "embed_w": w((embed_dim, input_dim)), "embed_b": w((embed_dim,)),
        "ip_w": w((L, 3 * embed_dim, embed_dim)), "ip_b": w((L, 3 * embed_dim)),
        "op_w": w((L, embed_dim, embed_dim)), "op_b": w((L, embed_dim)),
        "n1_w": 1.0 + w((L, embed_dim), 0.05), "n1_b": w((L, embed_dim), 0.05),
        "n2_w": 1.0 + w((L, embed_dim), 0.05), "n2_b": w((L, embed_dim), 0.05),
        "l1_w": w((L, embed_dim, embed_dim)), "l1_b": w((L, embed_dim)),
        "l2_w": w((L, embed_dim, embed_dim)), "l2_b": w((L, embed_dim)),
        "c1_w": w((hidden_size, embed_dim)), "c1_b": w((hidden_size,)),
        "c2_w": w((hidden_size, hidden_size)), "c2_b": w((hidden_size,)),
        "c3_w": w((hidden_size, hidden_size)), "c3_b": w((hidden_size,)),
        "c4_w": w((1, hidden_size)), "c4_b": w((1,)),
    }


# pure-JAX reference (PyTorch-faithful math, all biases explicit, f32)
def reference_forward(x, mask, p):
    B, _, _ = x.shape
    E = p["embed_w"].shape[0]
    dh = E // NHEAD
    outs = []
    for b in range(B):
        h = jnp.maximum(x[b] @ p["embed_w"].T + p["embed_b"], 0.0)
        for l in range(NUM_LAYERS):
            qkv = h @ p["ip_w"][l].T + p["ip_b"][l]
            q, k, v = qkv[:, :E], qkv[:, E:2 * E], qkv[:, 2 * E:]
            heads = []
            for hd in range(NHEAD):
                sl = slice(hd * dh, (hd + 1) * dh)
                s = (q[:, sl] @ k[:, sl].T) / math.sqrt(dh)
                a = jax.nn.softmax(s, axis=-1)
                heads.append(a @ v[:, sl])
            attn = jnp.concatenate(heads, axis=-1) @ p["op_w"][l].T + p["op_b"][l]
            h = _layernorm(h + attn, p["n1_w"][l], p["n1_b"][l])
            ff = jnp.maximum(h @ p["l1_w"][l].T + p["l1_b"][l], 0.0)
            ff = ff @ p["l2_w"][l].T + p["l2_b"][l]
            h = _layernorm(h + ff, p["n2_w"][l], p["n2_b"][l])
        pooled = jnp.sum(h * mask[b][:, None], axis=0, keepdims=True)
        z = jnp.maximum(pooled @ p["c1_w"].T + p["c1_b"], 0.0)
        z = jnp.maximum(z @ p["c2_w"].T + p["c2_b"], 0.0)
        z = jnp.maximum(z @ p["c3_w"].T + p["c3_b"], 0.0)
        outs.append(jax.nn.sigmoid(z @ p["c4_w"].T + p["c4_b"]))
    return jnp.concatenate(outs, axis=0)


if __name__ == "__main__":
    B, S = 4, 8
    INPUT_DIM, EMBED_DIM, HIDDEN = 16, 32, 32   # embed_dim divisible by nhead=4

    key = jax.random.PRNGKey(0)
    k_x, k_m, k_p = jax.random.split(key, 3)
    x = jax.random.normal(k_x, (B, S, INPUT_DIM), dtype=jnp.float32)
    mask = (jax.random.uniform(k_m, (B, S)) < 0.7).astype(jnp.float32)
    params = init_params(k_p, INPUT_DIM, EMBED_DIM, HIDDEN)

    out = transformer_forward(x, mask, params)
    out = jax.block_until_ready(out)

    ref = reference_forward(x, mask, params)
    assert out.shape == (B, 1), out.shape
    # tolerance covers bf16 matmul operands (f32 accumulation) + the
    # approximate-reciprocal softmax denominator
    assert jnp.allclose(out, ref, rtol=2e-2, atol=2e-2), (out, ref)

    print("KERNEL_OK")
</pallas_src>

<mosaic_0001>
module attributes {stable_mosaic.version = 11 : i64} {
  func.func @transformer_kernel(%arg0: i32, %arg1: memref<32x16xf32, #tpu.memory_space<vmem>>, %arg2: memref<32x1xf32, #tpu.memory_space<vmem>>, %arg3: memref<16x32xbf16, #tpu.memory_space<vmem>>, %arg4: memref<6x32xf32, #tpu.memory_space<vmem>>, %arg5: memref<3x32x96xbf16, #tpu.memory_space<vmem>>, %arg6: memref<3x96xf32, #tpu.memory_space<vmem>>, %arg7: memref<3x4x8x32xbf16, #tpu.memory_space<vmem>>, %arg8: memref<3x2x32x32xbf16, #tpu.memory_space<vmem>>, %arg9: memref<3x7x32xf32, #tpu.memory_space<vmem>>, %arg10: memref<3x32x32xbf16, #tpu.memory_space<vmem>>, %arg11: memref<1x8x128xf32, #tpu.memory_space<vmem>>) attributes {dimension_semantics = [#tpu.dimension_semantics<parallel>], iteration_bounds = array<i64: 1>, scalar_prefetch = 0 : i64, scratch_operands = 0 : i64, tpu.core_type = #tpu.core_type<tc>, window_params = [{transform_indices = @transform_0, window_bounds = array<i64: 32, 16>}, {transform_indices = @transform_1, window_bounds = array<i64: 32, 1>}, {pipeline_mode = #tpu.pipeline_mode<synchronous>, transform_indices = @transform_2, window_bounds = array<i64: 16, 32>}, {pipeline_mode = #tpu.pipeline_mode<synchronous>, transform_indices = @transform_3, window_bounds = array<i64: 6, 32>}, {pipeline_mode = #tpu.pipeline_mode<synchronous>, transform_indices = @transform_4, window_bounds = array<i64: 3, 32, 96>}, {pipeline_mode = #tpu.pipeline_mode<synchronous>, transform_indices = @transform_5, window_bounds = array<i64: 3, 96>}, {pipeline_mode = #tpu.pipeline_mode<synchronous>, transform_indices = @transform_6, window_bounds = array<i64: 3, 4, 8, 32>}, {pipeline_mode = #tpu.pipeline_mode<synchronous>, transform_indices = @transform_7, window_bounds = array<i64: 3, 2, 32, 32>}, {pipeline_mode = #tpu.pipeline_mode<synchronous>, transform_indices = @transform_8, window_bounds = array<i64: 3, 7, 32>}, {pipeline_mode = #tpu.pipeline_mode<synchronous>, transform_indices = @transform_9, window_bounds = array<i64: 3, 32, 32>}, {transform_indices = @transform_10, window_bounds = array<i64: 1, 8, 128>}]} {
    %c0 = arith.constant 0 : index
    %c0_0 = arith.constant 0 : index
    %0 = vector.load %arg4[%c0, %c0_0] : memref<6x32xf32, #tpu.memory_space<vmem>>, vector<6x32xf32>
    %c0_1 = arith.constant 0 : index
    %c0_2 = arith.constant 0 : index
    %1 = vector.load %arg1[%c0_1, %c0_2] : memref<32x16xf32, #tpu.memory_space<vmem>>, vector<32x16xf32>
    %2 = arith.truncf %1 : vector<32x16xf32> to vector<32x16xbf16>
    %c0_3 = arith.constant 0 : index
    %c0_4 = arith.constant 0 : index
    %3 = vector.load %arg3[%c0_3, %c0_4] : memref<16x32xbf16, #tpu.memory_space<vmem>>, vector<16x32xbf16>
    %cst = arith.constant dense<0.000000e+00> : vector<32x32xf32>
    %4 = tpu.matmul %2, %3, %cst {dimension_numbers = #tpu.dot_dimension_numbers<[1], [0], [0], [1], [0, 0, 1, 1], [], []>} : vector<32x16xbf16>, vector<16x32xbf16>, vector<32x32xf32> -> vector<32x32xf32>
    %5 = vector.extract_strided_slice %0 {offsets = [0, 0], sizes = [1, 32], strides = [1, 1]} : vector<6x32xf32> to vector<1x32xf32>
    %6 = vector.shape_cast %5 : vector<1x32xf32> to vector<32xf32>
    %7 = vector.shape_cast %6 : vector<32xf32> to vector<1x32xf32>
    %8 = vector.broadcast %7 : vector<1x32xf32> to vector<32x32xf32>
    %9 = arith.addf %4, %8 : vector<32x32xf32>
    %cst_5 = arith.constant 0.000000e+00 : f32
    %10 = vector.broadcast %cst_5 : f32 to vector<32x32xf32>
    %11 = arith.maximumf %9, %10 : vector<32x32xf32>
    %c0_6 = arith.constant 0 : index
    %c0_7 = arith.constant 0 : index
    %c0_8 = arith.constant 0 : index
    %12 = vector.load %arg9[%c0_6, %c0_7, %c0_8] : memref<3x7x32xf32, #tpu.memory_space<vmem>>, vector<1x7x32xf32>
    %13 = vector.shape_cast %12 : vector<1x7x32xf32> to vector<7x32xf32>
    %c0_9 = arith.constant 0 : index
    %c0_10 = arith.constant 0 : index
    %c0_11 = arith.constant 0 : index
    %c0_12 = arith.constant 0 : index
    %14 = vector.load %arg7[%c0_9, %c0_10, %c0_11, %c0_12] : memref<3x4x8x32xbf16, #tpu.memory_space<vmem>>, vector<1x4x8x32xbf16>
    %15 = vector.shape_cast %14 : vector<1x4x8x32xbf16> to vector<4x8x32xbf16>
    %c0_13 = arith.constant 0 : index
    %c0_14 = arith.constant 0 : index
    %c0_15 = arith.constant 0 : index
    %c0_16 = arith.constant 0 : index
    %16 = vector.load %arg8[%c0_13, %c0_14, %c0_15, %c0_16] : memref<3x2x32x32xbf16, #tpu.memory_space<vmem>>, vector<1x2x32x32xbf16>
    %17 = vector.shape_cast %16 : vector<1x2x32x32xbf16> to vector<2x32x32xbf16>
    %18 = arith.truncf %11 : vector<32x32xf32> to vector<32x32xbf16>
    %c0_17 = arith.constant 0 : index
    %c0_18 = arith.constant 0 : index
    %c0_19 = arith.constant 0 : index
    %19 = vector.load %arg5[%c0_17, %c0_18, %c0_19] : memref<3x32x96xbf16, #tpu.memory_space<vmem>>, vector<1x32x96xbf16>
    %20 = vector.shape_cast %19 : vector<1x32x96xbf16> to vector<32x96xbf16>
    %cst_20 = arith.constant dense<0.000000e+00> : vector<32x96xf32>
    %21 = tpu.matmul %18, %20, %cst_20 {dimension_numbers = #tpu.dot_dimension_numbers<[1], [0], [0], [1], [0, 0, 1, 1], [], []>} : vector<32x32xbf16>, vector<32x96xbf16>, vector<32x96xf32> -> vector<32x96xf32>
    %c0_21 = arith.constant 0 : index
    %c0_22 = arith.constant 0 : index
    %22 = vector.load %arg6[%c0_21, %c0_22] : memref<3x96xf32, #tpu.memory_space<vmem>>, vector<1x96xf32>
    %23 = vector.shape_cast %22 : vector<1x96xf32> to vector<96xf32>
    %24 = vector.shape_cast %23 : vector<96xf32> to vector<1x96xf32>
    %25 = vector.broadcast %24 : vector<1x96xf32> to vector<32x96xf32>
    %26 = arith.addf %21, %25 : vector<32x96xf32>
    %27 = vector.shape_cast %26 : vector<32x96xf32> to vector<4x8x96xf32>
    %28 = vector.extract_strided_slice %27 {offsets = [0, 0, 0], sizes = [4, 8, 8], strides = [1, 1, 1]} : vector<4x8x96xf32> to vector<4x8x8xf32>
    %29 = arith.truncf %28 : vector<4x8x8xf32> to vector<4x8x8xbf16>
    %30 = vector.extract_strided_slice %27 {offsets = [0, 0, 32], sizes = [4, 8, 8], strides = [1, 1, 1]} : vector<4x8x96xf32> to vector<4x8x8xf32>
    %31 = arith.truncf %30 : vector<4x8x8xf32> to vector<4x8x8xbf16>
    %32 = vector.extract_strided_slice %27 {offsets = [0, 0, 64], sizes = [4, 8, 8], strides = [1, 1, 1]} : vector<4x8x96xf32> to vector<4x8x8xf32>
    %33 = arith.truncf %32 : vector<4x8x8xf32> to vector<4x8x8xbf16>
    "tpu.trace_start"() <{level = 10 : i32, message = "bqd,bkd->bqk"}> : () -> ()
    %cst_23 = arith.constant dense<0.000000e+00> : vector<4x8x8xf32>
    %34 = tpu.matmul %29, %31, %cst_23 {dimension_numbers = #tpu.dot_dimension_numbers<[2], [2], [1], [1], [0, 0, 0, 1, 1, 1], [0], [0]>} : vector<4x8x8xbf16>, vector<4x8x8xbf16>, vector<4x8x8xf32> -> vector<4x8x8xf32>
    "tpu.trace_stop"() : () -> ()
    %cst_24 = arith.constant dense<0xFF800000> : vector<4x8xf32>
    %35 = vector.multi_reduction <maximumf>, %34, %cst_24 [2] : vector<4x8x8xf32> to vector<4x8xf32>
    %36 = vector.shape_cast %35 : vector<4x8xf32> to vector<4x8x1xf32>
    %37 = vector.broadcast %36 : vector<4x8x1xf32> to vector<4x8x8xf32>
    %38 = arith.subf %34, %37 : vector<4x8x8xf32>
    %39 = math.exp %38 : vector<4x8x8xf32>
    %cst_25 = arith.constant dense<0.000000e+00> : vector<4x8xf32>
    %40 = vector.multi_reduction <add>, %39, %cst_25 [2] : vector<4x8x8xf32> to vector<4x8xf32>
    %41 = vector.shape_cast %40 : vector<4x8xf32> to vector<4x8x1xf32>
    %42 = tpu.reciprocal %41 {approx = true} : vector<4x8x1xf32> -> vector<4x8x1xf32>
    %43 = vector.broadcast %42 : vector<4x8x1xf32> to vector<4x8x8xf32>
    %44 = arith.mulf %39, %43 : vector<4x8x8xf32>
    %45 = arith.truncf %44 : vector<4x8x8xf32> to vector<4x8x8xbf16>
    "tpu.trace_start"() <{level = 10 : i32, message = "bqk,bkd->bqd"}> : () -> ()
    %cst_26 = arith.constant dense<0.000000e+00> : vector<4x8x8xf32>
    %46 = tpu.matmul %45, %33, %cst_26 {dimension_numbers = #tpu.dot_dimension_numbers<[2], [1], [1], [2], [0, 0, 0, 1, 1, 2], [0], [0]>} : vector<4x8x8xbf16>, vector<4x8x8xbf16>, vector<4x8x8xf32> -> vector<4x8x8xf32>
    "tpu.trace_stop"() : () -> ()
    %47 = arith.truncf %46 : vector<4x8x8xf32> to vector<4x8x8xbf16>
    %48 = vector.extract_strided_slice %15 {offsets = [0, 0, 0], sizes = [1, 8, 32], strides = [1, 1, 1]} : vector<4x8x32xbf16> to vector<1x8x32xbf16>
    %49 = vector.shape_cast %48 : vector<1x8x32xbf16> to vector<8x32xbf16>
    "tpu.trace_start"() <{level = 10 : i32, message = "bqd,de->bqe"}> : () -> ()
    %cst_27 = arith.constant dense<0.000000e+00> : vector<4x8x32xf32>
    %50 = tpu.matmul %47, %49, %cst_27 {dimension_numbers = #tpu.dot_dimension_numbers<[2], [0], [0, 1], [1], [0, 0, 0, 1, 1, 1], [], []>} : vector<4x8x8xbf16>, vector<8x32xbf16>, vector<4x8x32xf32> -> vector<4x8x32xf32>
    "tpu.trace_stop"() : () -> ()
    %51 = vector.extract_strided_slice %27 {offsets = [0, 0, 8], sizes = [4, 8, 8], strides = [1, 1, 1]} : vector<4x8x96xf32> to vector<4x8x8xf32>
    %52 = arith.truncf %51 : vector<4x8x8xf32> to vector<4x8x8xbf16>
    %53 = vector.extract_strided_slice %27 {offsets = [0, 0, 40], sizes = [4, 8, 8], strides = [1, 1, 1]} : vector<4x8x96xf32> to vector<4x8x8xf32>
    %54 = arith.truncf %53 : vector<4x8x8xf32> to vector<4x8x8xbf16>
    %55 = vector.extract_strided_slice %27 {offsets = [0, 0, 72], sizes = [4, 8, 8], strides = [1, 1, 1]} : vector<4x8x96xf32> to vector<4x8x8xf32>
    %56 = arith.truncf %55 : vector<4x8x8xf32> to vector<4x8x8xbf16>
    "tpu.trace_start"() <{level = 10 : i32, message = "bqd,bkd->bqk"}> : () -> ()
    %cst_28 = arith.constant dense<0.000000e+00> : vector<4x8x8xf32>
    %57 = tpu.matmul %52, %54, %cst_28 {dimension_numbers = #tpu.dot_dimension_numbers<[2], [2], [1], [1], [0, 0, 0, 1, 1, 1], [0], [0]>} : vector<4x8x8xbf16>, vector<4x8x8xbf16>, vector<4x8x8xf32> -> vector<4x8x8xf32>
    "tpu.trace_stop"() : () -> ()
    %cst_29 = arith.constant dense<0xFF800000> : vector<4x8xf32>
    %58 = vector.multi_reduction <maximumf>, %57, %cst_29 [2] : vector<4x8x8xf32> to vector<4x8xf32>
    %59 = vector.shape_cast %58 : vector<4x8xf32> to vector<4x8x1xf32>
    %60 = vector.broadcast %59 : vector<4x8x1xf32> to vector<4x8x8xf32>
    %61 = arith.subf %57, %60 : vector<4x8x8xf32>
    %62 = math.exp %61 : vector<4x8x8xf32>
    %cst_30 = arith.constant dense<0.000000e+00> : vector<4x8xf32>
    %63 = vector.multi_reduction <add>, %62, %cst_30 [2] : vector<4x8x8xf32> to vector<4x8xf32>
    %64 = vector.shape_cast %63 : vector<4x8xf32> to vector<4x8x1xf32>
    %65 = tpu.reciprocal %64 {approx = true} : vector<4x8x1xf32> -> vector<4x8x1xf32>
    %66 = vector.broadcast %65 : vector<4x8x1xf32> to vector<4x8x8xf32>
    %67 = arith.mulf %62, %66 : vector<4x8x8xf32>
    %68 = arith.truncf %67 : vector<4x8x8xf32> to vector<4x8x8xbf16>
    "tpu.trace_start"() <{level = 10 : i32, message = "bqk,bkd->bqd"}> : () -> ()
    %cst_31 = arith.constant dense<0.000000e+00> : vector<4x8x8xf32>
    %69 = tpu.matmul %68, %56, %cst_31 {dimension_numbers = #tpu.dot_dimension_numbers<[2], [1], [1], [2], [0, 0, 0, 1, 1, 2], [0], [0]>} : vector<4x8x8xbf16>, vector<4x8x8xbf16>, vector<4x8x8xf32> -> vector<4x8x8xf32>
    "tpu.trace_stop"() : () -> ()
    %70 = arith.truncf %69 : vector<4x8x8xf32> to vector<4x8x8xbf16>
    %71 = vector.extract_strided_slice %15 {offsets = [1, 0, 0], sizes = [1, 8, 32], strides = [1, 1, 1]} : vector<4x8x32xbf16> to vector<1x8x32xbf16>
    %72 = vector.shape_cast %71 : vector<1x8x32xbf16> to vector<8x32xbf16>
    "tpu.trace_start"() <{level = 10 : i32, message = "bqd,de->bqe"}> : () -> ()
    %cst_32 = arith.constant dense<0.000000e+00> : vector<4x8x32xf32>
    %73 = tpu.matmul %70, %72, %cst_32 {dimension_numbers = #tpu.dot_dimension_numbers<[2], [0], [0, 1], [1], [0, 0, 0, 1, 1, 1], [], []>} : vector<4x8x8xbf16>, vector<8x32xbf16>, vector<4x8x32xf32> -> vector<4x8x32xf32>
    "tpu.trace_stop"() : () -> ()
    %74 = arith.addf %50, %73 : vector<4x8x32xf32>
    %75 = vector.extract_strided_slice %27 {offsets = [0, 0, 16], sizes = [4, 8, 8], strides = [1, 1, 1]} : vector<4x8x96xf32> to vector<4x8x8xf32>
    %76 = arith.truncf %75 : vector<4x8x8xf32> to vector<4x8x8xbf16>
    %77 = vector.extract_strided_slice %27 {offsets = [0, 0, 48], sizes = [4, 8, 8], strides = [1, 1, 1]} : vector<4x8x96xf32> to vector<4x8x8xf32>
    %78 = arith.truncf %77 : vector<4x8x8xf32> to vector<4x8x8xbf16>
    %79 = vector.extract_strided_slice %27 {offsets = [0, 0, 80], sizes = [4, 8, 8], strides = [1, 1, 1]} : vector<4x8x96xf32> to vector<4x8x8xf32>
    %80 = arith.truncf %79 : vector<4x8x8xf32> to vector<4x8x8xbf16>
    "tpu.trace_start"() <{level = 10 : i32, message = "bqd,bkd->bqk"}> : () -> ()
    %cst_33 = arith.constant dense<0.000000e+00> : vector<4x8x8xf32>
    %81 = tpu.matmul %76, %78, %cst_33 {dimension_numbers = #tpu.dot_dimension_numbers<[2], [2], [1], [1], [0, 0, 0, 1, 1, 1], [0], [0]>} : vector<4x8x8xbf16>, vector<4x8x8xbf16>, vector<4x8x8xf32> -> vector<4x8x8xf32>
    "tpu.trace_stop"() : () -> ()
    %cst_34 = arith.constant dense<0xFF800000> : vector<4x8xf32>
    %82 = vector.multi_reduction <maximumf>, %81, %cst_34 [2] : vector<4x8x8xf32> to vector<4x8xf32>
    %83 = vector.shape_cast %82 : vector<4x8xf32> to vector<4x8x1xf32>
    %84 = vector.broadcast %83 : vector<4x8x1xf32> to vector<4x8x8xf32>
    %85 = arith.subf %81, %84 : vector<4x8x8xf32>
    %86 = math.exp %85 : vector<4x8x8xf32>
    %cst_35 = arith.constant dense<0.000000e+00> : vector<4x8xf32>
    %87 = vector.multi_reduction <add>, %86, %cst_35 [2] : vector<4x8x8xf32> to vector<4x8xf32>
    %88 = vector.shape_cast %87 : vector<4x8xf32> to vector<4x8x1xf32>
    %89 = tpu.reciprocal %88 {approx = true} : vector<4x8x1xf32> -> vector<4x8x1xf32>
    %90 = vector.broadcast %89 : vector<4x8x1xf32> to vector<4x8x8xf32>
    %91 = arith.mulf %86, %90 : vector<4x8x8xf32>
    %92 = arith.truncf %91 : vector<4x8x8xf32> to vector<4x8x8xbf16>
    "tpu.trace_start"() <{level = 10 : i32, message = "bqk,bkd->bqd"}> : () -> ()
    %cst_36 = arith.constant dense<0.000000e+00> : vector<4x8x8xf32>
    %93 = tpu.matmul %92, %80, %cst_36 {dimension_numbers = #tpu.dot_dimension_numbers<[2], [1], [1], [2], [0, 0, 0, 1, 1, 2], [0], [0]>} : vector<4x8x8xbf16>, vector<4x8x8xbf16>, vector<4x8x8xf32> -> vector<4x8x8xf32>
    "tpu.trace_stop"() : () -> ()
    %94 = arith.truncf %93 : vector<4x8x8xf32> to vector<4x8x8xbf16>
    %95 = vector.extract_strided_slice %15 {offsets = [2, 0, 0], sizes = [1, 8, 32], strides = [1, 1, 1]} : vector<4x8x32xbf16> to vector<1x8x32xbf16>
    %96 = vector.shape_cast %95 : vector<1x8x32xbf16> to vector<8x32xbf16>
    "tpu.trace_start"() <{level = 10 : i32, message = "bqd,de->bqe"}> : () -> ()
    %cst_37 = arith.constant dense<0.000000e+00> : vector<4x8x32xf32>
    %97 = tpu.matmul %94, %96, %cst_37 {dimension_numbers = #tpu.dot_dimension_numbers<[2], [0], [0, 1], [1], [0, 0, 0, 1, 1, 1], [], []>} : vector<4x8x8xbf16>, vector<8x32xbf16>, vector<4x8x32xf32> -> vector<4x8x32xf32>
    "tpu.trace_stop"() : () -> ()
    %98 = arith.addf %74, %97 : vector<4x8x32xf32>
    %99 = vector.extract_strided_slice %27 {offsets = [0, 0, 24], sizes = [4, 8, 8], strides = [1, 1, 1]} : vector<4x8x96xf32> to vector<4x8x8xf32>
    %100 = arith.truncf %99 : vector<4x8x8xf32> to vector<4x8x8xbf16>
    %101 = vector.extract_strided_slice %27 {offsets = [0, 0, 56], sizes = [4, 8, 8], strides = [1, 1, 1]} : vector<4x8x96xf32> to vector<4x8x8xf32>
    %102 = arith.truncf %101 : vector<4x8x8xf32> to vector<4x8x8xbf16>
    %103 = vector.extract_strided_slice %27 {offsets = [0, 0, 88], sizes = [4, 8, 8], strides = [1, 1, 1]} : vector<4x8x96xf32> to vector<4x8x8xf32>
    %104 = arith.truncf %103 : vector<4x8x8xf32> to vector<4x8x8xbf16>
    "tpu.trace_start"() <{level = 10 : i32, message = "bqd,bkd->bqk"}> : () -> ()
    %cst_38 = arith.constant dense<0.000000e+00> : vector<4x8x8xf32>
    %105 = tpu.matmul %100, %102, %cst_38 {dimension_numbers = #tpu.dot_dimension_numbers<[2], [2], [1], [1], [0, 0, 0, 1, 1, 1], [0], [0]>} : vector<4x8x8xbf16>, vector<4x8x8xbf16>, vector<4x8x8xf32> -> vector<4x8x8xf32>
    "tpu.trace_stop"() : () -> ()
    %cst_39 = arith.constant dense<0xFF800000> : vector<4x8xf32>
    %106 = vector.multi_reduction <maximumf>, %105, %cst_39 [2] : vector<4x8x8xf32> to vector<4x8xf32>
    %107 = vector.shape_cast %106 : vector<4x8xf32> to vector<4x8x1xf32>
    %108 = vector.broadcast %107 : vector<4x8x1xf32> to vector<4x8x8xf32>
    %109 = arith.subf %105, %108 : vector<4x8x8xf32>
    %110 = math.exp %109 : vector<4x8x8xf32>
    %cst_40 = arith.constant dense<0.000000e+00> : vector<4x8xf32>
    %111 = vector.multi_reduction <add>, %110, %cst_40 [2] : vector<4x8x8xf32> to vector<4x8xf32>
    %112 = vector.shape_cast %111 : vector<4x8xf32> to vector<4x8x1xf32>
    %113 = tpu.reciprocal %112 {approx = true} : vector<4x8x1xf32> -> vector<4x8x1xf32>
    %114 = vector.broadcast %113 : vector<4x8x1xf32> to vector<4x8x8xf32>
    %115 = arith.mulf %110, %114 : vector<4x8x8xf32>
    %116 = arith.truncf %115 : vector<4x8x8xf32> to vector<4x8x8xbf16>
    "tpu.trace_start"() <{level = 10 : i32, message = "bqk,bkd->bqd"}> : () -> ()
    %cst_41 = arith.constant dense<0.000000e+00> : vector<4x8x8xf32>
    %117 = tpu.matmul %116, %104, %cst_41 {dimension_numbers = #tpu.dot_dimension_numbers<[2], [1], [1], [2], [0, 0, 0, 1, 1, 2], [0], [0]>} : vector<4x8x8xbf16>, vector<4x8x8xbf16>, vector<4x8x8xf32> -> vector<4x8x8xf32>
    "tpu.trace_stop"() : () -> ()
    %118 = arith.truncf %117 : vector<4x8x8xf32> to vector<4x8x8xbf16>
    %119 = vector.extract_strided_slice %15 {offsets = [3, 0, 0], sizes = [1, 8, 32], strides = [1, 1, 1]} : vector<4x8x32xbf16> to vector<1x8x32xbf16>
    %120 = vector.shape_cast %119 : vector<1x8x32xbf16> to vector<8x32xbf16>
    "tpu.trace_start"() <{level = 10 : i32, message = "bqd,de->bqe"}> : () -> ()
    %cst_42 = arith.constant dense<0.000000e+00> : vector<4x8x32xf32>
    %121 = tpu.matmul %118, %120, %cst_42 {dimension_numbers = #tpu.dot_dimension_numbers<[2], [0], [0, 1], [1], [0, 0, 0, 1, 1, 1], [], []>} : vector<4x8x8xbf16>, vector<8x32xbf16>, vector<4x8x32xf32> -> vector<4x8x32xf32>
    "tpu.trace_stop"() : () -> ()
    %122 = arith.addf %98, %121 : vector<4x8x32xf32>
    %123 = vector.shape_cast %122 : vector<4x8x32xf32> to vector<32x32xf32>
    %124 = vector.extract_strided_slice %13 {offsets = [0, 0], sizes = [1, 32], strides = [1, 1]} : vector<7x32xf32> to vector<1x32xf32>
    %125 = vector.shape_cast %124 : vector<1x32xf32> to vector<32xf32>
    %126 = vector.shape_cast %125 : vector<32xf32> to vector<1x32xf32>
    %127 = vector.broadcast %126 : vector<1x32xf32> to vector<32x32xf32>
    %128 = arith.addf %123, %127 : vector<32x32xf32>
    %129 = arith.addf %11, %128 : vector<32x32xf32>
    %130 = vector.extract_strided_slice %13 {offsets = [1, 0], sizes = [1, 32], strides = [1, 1]} : vector<7x32xf32> to vector<1x32xf32>
    %131 = vector.shape_cast %130 : vector<1x32xf32> to vector<32xf32>
    %132 = vector.extract_strided_slice %13 {offsets = [2, 0], sizes = [1, 32], strides = [1, 1]} : vector<7x32xf32> to vector<1x32xf32>
    %133 = vector.shape_cast %132 : vector<1x32xf32> to vector<32xf32>
    %cst_43 = arith.constant dense<0.000000e+00> : vector<32xf32>
    %134 = vector.multi_reduction <add>, %129, %cst_43 [1] : vector<32x32xf32> to vector<32xf32>
    %135 = vector.shape_cast %134 : vector<32xf32> to vector<32x1xf32>
    %cst_44 = arith.constant 3.200000e+01 : f32
    %136 = vector.broadcast %cst_44 : f32 to vector<32x1xf32>
    %137 = arith.divf %135, %136 : vector<32x1xf32>
    %138 = vector.broadcast %137 : vector<32x1xf32> to vector<32x32xf32>
    %139 = arith.subf %129, %138 : vector<32x32xf32>
    %140 = arith.mulf %139, %139 : vector<32x32xf32>
    %cst_45 = arith.constant dense<0.000000e+00> : vector<32xf32>
    %141 = vector.multi_reduction <add>, %140, %cst_45 [1] : vector<32x32xf32> to vector<32xf32>
    %142 = vector.shape_cast %141 : vector<32xf32> to vector<32x1xf32>
    %cst_46 = arith.constant 3.200000e+01 : f32
    %143 = vector.broadcast %cst_46 : f32 to vector<32x1xf32>
    %144 = arith.divf %142, %143 : vector<32x1xf32>
    %145 = vector.broadcast %137 : vector<32x1xf32> to vector<32x32xf32>
    %146 = arith.subf %129, %145 : vector<32x32xf32>
    %cst_47 = arith.constant 9.99999974E-6 : f32
    %147 = vector.broadcast %cst_47 : f32 to vector<32x1xf32>
    %148 = arith.addf %144, %147 : vector<32x1xf32>
    %149 = math.rsqrt %148 : vector<32x1xf32>
    %150 = vector.broadcast %149 : vector<32x1xf32> to vector<32x32xf32>
    %151 = arith.mulf %146, %150 : vector<32x32xf32>
    %152 = vector.shape_cast %131 : vector<32xf32> to vector<1x32xf32>
    %153 = vector.broadcast %152 : vector<1x32xf32> to vector<32x32xf32>
    %154 = arith.mulf %151, %153 : vector<32x32xf32>
    %155 = vector.shape_cast %133 : vector<32xf32> to vector<1x32xf32>
    %156 = vector.broadcast %155 : vector<1x32xf32> to vector<32x32xf32>
    %157 = arith.addf %154, %156 : vector<32x32xf32>
    %158 = arith.truncf %157 : vector<32x32xf32> to vector<32x32xbf16>
    %159 = vector.extract_strided_slice %17 {offsets = [0, 0, 0], sizes = [1, 32, 32], strides = [1, 1, 1]} : vector<2x32x32xbf16> to vector<1x32x32xbf16>
    %160 = vector.shape_cast %159 : vector<1x32x32xbf16> to vector<32x32xbf16>
    %cst_48 = arith.constant dense<0.000000e+00> : vector<32x32xf32>
    %161 = tpu.matmul %158, %160, %cst_48 {dimension_numbers = #tpu.dot_dimension_numbers<[1], [0], [0], [1], [0, 0, 1, 1], [], []>} : vector<32x32xbf16>, vector<32x32xbf16>, vector<32x32xf32> -> vector<32x32xf32>
    %162 = vector.extract_strided_slice %13 {offsets = [5, 0], sizes = [1, 32], strides = [1, 1]} : vector<7x32xf32> to vector<1x32xf32>
    %163 = vector.shape_cast %162 : vector<1x32xf32> to vector<32xf32>
    %164 = vector.shape_cast %163 : vector<32xf32> to vector<1x32xf32>
    %165 = vector.broadcast %164 : vector<1x32xf32> to vector<32x32xf32>
    %166 = arith.addf %161, %165 : vector<32x32xf32>
    %cst_49 = arith.constant 0.000000e+00 : f32
    %167 = vector.broadcast %cst_49 : f32 to vector<32x32xf32>
    %168 = arith.maximumf %166, %167 : vector<32x32xf32>
    %169 = arith.truncf %168 : vector<32x32xf32> to vector<32x32xbf16>
    %170 = vector.extract_strided_slice %17 {offsets = [1, 0, 0], sizes = [1, 32, 32], strides = [1, 1, 1]} : vector<2x32x32xbf16> to vector<1x32x32xbf16>
    %171 = vector.shape_cast %170 : vector<1x32x32xbf16> to vector<32x32xbf16>
    %cst_50 = arith.constant dense<0.000000e+00> : vector<32x32xf32>
    %172 = tpu.matmul %169, %171, %cst_50 {dimension_numbers = #tpu.dot_dimension_numbers<[1], [0], [0], [1], [0, 0, 1, 1], [], []>} : vector<32x32xbf16>, vector<32x32xbf16>, vector<32x32xf32> -> vector<32x32xf32>
    %173 = vector.extract_strided_slice %13 {offsets = [6, 0], sizes = [1, 32], strides = [1, 1]} : vector<7x32xf32> to vector<1x32xf32>
    %174 = vector.shape_cast %173 : vector<1x32xf32> to vector<32xf32>
    %175 = vector.shape_cast %174 : vector<32xf32> to vector<1x32xf32>
    %176 = vector.broadcast %175 : vector<1x32xf32> to vector<32x32xf32>
    %177 = arith.addf %172, %176 : vector<32x32xf32>
    %178 = arith.addf %157, %177 : vector<32x32xf32>
    %179 = vector.extract_strided_slice %13 {offsets = [3, 0], sizes = [1, 32], strides = [1, 1]} : vector<7x32xf32> to vector<1x32xf32>
    %180 = vector.shape_cast %179 : vector<1x32xf32> to vector<32xf32>
    %181 = vector.extract_strided_slice %13 {offsets = [4, 0], sizes = [1, 32], strides = [1, 1]} : vector<7x32xf32> to vector<1x32xf32>
    %182 = vector.shape_cast %181 : vector<1x32xf32> to vector<32xf32>
    %cst_51 = arith.constant dense<0.000000e+00> : vector<32xf32>
    %183 = vector.multi_reduction <add>, %178, %cst_51 [1] : vector<32x32xf32> to vector<32xf32>
    %184 = vector.shape_cast %183 : vector<32xf32> to vector<32x1xf32>
    %cst_52 = arith.constant 3.200000e+01 : f32
    %185 = vector.broadcast %cst_52 : f32 to vector<32x1xf32>
    %186 = arith.divf %184, %185 : vector<32x1xf32>
    %187 = vector.broadcast %186 : vector<32x1xf32> to vector<32x32xf32>
    %188 = arith.subf %178, %187 : vector<32x32xf32>
    %189 = arith.mulf %188, %188 : vector<32x32xf32>
    %cst_53 = arith.constant dense<0.000000e+00> : vector<32xf32>
    %190 = vector.multi_reduction <add>, %189, %cst_53 [1] : vector<32x32xf32> to vector<32xf32>
    %191 = vector.shape_cast %190 : vector<32xf32> to vector<32x1xf32>
    %cst_54 = arith.constant 3.200000e+01 : f32
    %192 = vector.broadcast %cst_54 : f32 to vector<32x1xf32>
    %193 = arith.divf %191, %192 : vector<32x1xf32>
    %194 = vector.broadcast %186 : vector<32x1xf32> to vector<32x32xf32>
    %195 = arith.subf %178, %194 : vector<32x32xf32>
    %cst_55 = arith.constant 9.99999974E-6 : f32
    %196 = vector.broadcast %cst_55 : f32 to vector<32x1xf32>
    %197 = arith.addf %193, %196 : vector<32x1xf32>
    %198 = math.rsqrt %197 : vector<32x1xf32>
    %199 = vector.broadcast %198 : vector<32x1xf32> to vector<32x32xf32>
    %200 = arith.mulf %195, %199 : vector<32x32xf32>
    %201 = vector.shape_cast %180 : vector<32xf32> to vector<1x32xf32>
    %202 = vector.broadcast %201 : vector<1x32xf32> to vector<32x32xf32>
    %203 = arith.mulf %200, %202 : vector<32x32xf32>
    %204 = vector.shape_cast %182 : vector<32xf32> to vector<1x32xf32>
    %205 = vector.broadcast %204 : vector<1x32xf32> to vector<32x32xf32>
    %206 = arith.addf %203, %205 : vector<32x32xf32>
    %c1 = arith.constant 1 : index
    %c0_56 = arith.constant 0 : index
    %c0_57 = arith.constant 0 : index
    %207 = vector.load %arg9[%c1, %c0_56, %c0_57] : memref<3x7x32xf32, #tpu.memory_space<vmem>>, vector<1x7x32xf32>
    %208 = vector.shape_cast %207 : vector<1x7x32xf32> to vector<7x32xf32>
    %c1_58 = arith.constant 1 : index
    %c0_59 = arith.constant 0 : index
    %c0_60 = arith.constant 0 : index
    %c0_61 = arith.constant 0 : index
    %209 = vector.load %arg7[%c1_58, %c0_59, %c0_60, %c0_61] : memref<3x4x8x32xbf16, #tpu.memory_space<vmem>>, vector<1x4x8x32xbf16>
    %210 = vector.shape_cast %209 : vector<1x4x8x32xbf16> to vector<4x8x32xbf16>
    %c1_62 = arith.constant 1 : index
    %c0_63 = arith.constant 0 : index
    %c0_64 = arith.constant 0 : index
    %c0_65 = arith.constant 0 : index
    %211 = vector.load %arg8[%c1_62, %c0_63, %c0_64, %c0_65] : memref<3x2x32x32xbf16, #tpu.memory_space<vmem>>, vector<1x2x32x32xbf16>
    %212 = vector.shape_cast %211 : vector<1x2x32x32xbf16> to vector<2x32x32xbf16>
    %213 = arith.truncf %206 : vector<32x32xf32> to vector<32x32xbf16>
    %c1_66 = arith.constant 1 : index
    %c0_67 = arith.constant 0 : index
    %c0_68 = arith.constant 0 : index
    %214 = vector.load %arg5[%c1_66, %c0_67, %c0_68] : memref<3x32x96xbf16, #tpu.memory_space<vmem>>, vector<1x32x96xbf16>
    %215 = vector.shape_cast %214 : vector<1x32x96xbf16> to vector<32x96xbf16>
    %cst_69 = arith.constant dense<0.000000e+00> : vector<32x96xf32>
    %216 = tpu.matmul %213, %215, %cst_69 {dimension_numbers = #tpu.dot_dimension_numbers<[1], [0], [0], [1], [0, 0, 1, 1], [], []>} : vector<32x32xbf16>, vector<32x96xbf16>, vector<32x96xf32> -> vector<32x96xf32>
    %c1_70 = arith.constant 1 : index
    %c0_71 = arith.constant 0 : index
    %217 = vector.load %arg6[%c1_70, %c0_71] : memref<3x96xf32, #tpu.memory_space<vmem>>, vector<1x96xf32>
    %218 = vector.shape_cast %217 : vector<1x96xf32> to vector<96xf32>
    %219 = vector.shape_cast %218 : vector<96xf32> to vector<1x96xf32>
    %220 = vector.broadcast %219 : vector<1x96xf32> to vector<32x96xf32>
    %221 = arith.addf %216, %220 : vector<32x96xf32>
    %222 = vector.shape_cast %221 : vector<32x96xf32> to vector<4x8x96xf32>
    %223 = vector.extract_strided_slice %222 {offsets = [0, 0, 0], sizes = [4, 8, 8], strides = [1, 1, 1]} : vector<4x8x96xf32> to vector<4x8x8xf32>
    %224 = arith.truncf %223 : vector<4x8x8xf32> to vector<4x8x8xbf16>
    %225 = vector.extract_strided_slice %222 {offsets = [0, 0, 32], sizes = [4, 8, 8], strides = [1, 1, 1]} : vector<4x8x96xf32> to vector<4x8x8xf32>
    %226 = arith.truncf %225 : vector<4x8x8xf32> to vector<4x8x8xbf16>
    %227 = vector.extract_strided_slice %222 {offsets = [0, 0, 64], sizes = [4, 8, 8], strides = [1, 1, 1]} : vector<4x8x96xf32> to vector<4x8x8xf32>
    %228 = arith.truncf %227 : vector<4x8x8xf32> to vector<4x8x8xbf16>
    "tpu.trace_start"() <{level = 10 : i32, message = "bqd,bkd->bqk"}> : () -> ()
    %cst_72 = arith.constant dense<0.000000e+00> : vector<4x8x8xf32>
    %229 = tpu.matmul %224, %226, %cst_72 {dimension_numbers = #tpu.dot_dimension_numbers<[2], [2], [1], [1], [0, 0, 0, 1, 1, 1], [0], [0]>} : vector<4x8x8xbf16>, vector<4x8x8xbf16>, vector<4x8x8xf32> -> vector<4x8x8xf32>
    "tpu.trace_stop"() : () -> ()
    %cst_73 = arith.constant dense<0xFF800000> : vector<4x8xf32>
    %230 = vector.multi_reduction <maximumf>, %229, %cst_73 [2] : vector<4x8x8xf32> to vector<4x8xf32>
    %231 = vector.shape_cast %230 : vector<4x8xf32> to vector<4x8x1xf32>
    %232 = vector.broadcast %231 : vector<4x8x1xf32> to vector<4x8x8xf32>
    %233 = arith.subf %229, %232 : vector<4x8x8xf32>
    %234 = math.exp %233 : vector<4x8x8xf32>
    %cst_74 = arith.constant dense<0.000000e+00> : vector<4x8xf32>
    %235 = vector.multi_reduction <add>, %234, %cst_74 [2] : vector<4x8x8xf32> to vector<4x8xf32>
    %236 = vector.shape_cast %235 : vector<4x8xf32> to vector<4x8x1xf32>
    %237 = tpu.reciprocal %236 {approx = true} : vector<4x8x1xf32> -> vector<4x8x1xf32>
    %238 = vector.broadcast %237 : vector<4x8x1xf32> to vector<4x8x8xf32>
    %239 = arith.mulf %234, %238 : vector<4x8x8xf32>
    %240 = arith.truncf %239 : vector<4x8x8xf32> to vector<4x8x8xbf16>
    "tpu.trace_start"() <{level = 10 : i32, message = "bqk,bkd->bqd"}> : () -> ()
    %cst_75 = arith.constant dense<0.000000e+00> : vector<4x8x8xf32>
    %241 = tpu.matmul %240, %228, %cst_75 {dimension_numbers = #tpu.dot_dimension_numbers<[2], [1], [1], [2], [0, 0, 0, 1, 1, 2], [0], [0]>} : vector<4x8x8xbf16>, vector<4x8x8xbf16>, vector<4x8x8xf32> -> vector<4x8x8xf32>
    "tpu.trace_stop"() : () -> ()
    %242 = arith.truncf %241 : vector<4x8x8xf32> to vector<4x8x8xbf16>
    %243 = vector.extract_strided_slice %210 {offsets = [0, 0, 0], sizes = [1, 8, 32], strides = [1, 1, 1]} : vector<4x8x32xbf16> to vector<1x8x32xbf16>
    %244 = vector.shape_cast %243 : vector<1x8x32xbf16> to vector<8x32xbf16>
    "tpu.trace_start"() <{level = 10 : i32, message = "bqd,de->bqe"}> : () -> ()
    %cst_76 = arith.constant dense<0.000000e+00> : vector<4x8x32xf32>
    %245 = tpu.matmul %242, %244, %cst_76 {dimension_numbers = #tpu.dot_dimension_numbers<[2], [0], [0, 1], [1], [0, 0, 0, 1, 1, 1], [], []>} : vector<4x8x8xbf16>, vector<8x32xbf16>, vector<4x8x32xf32> -> vector<4x8x32xf32>
    "tpu.trace_stop"() : () -> ()
    %246 = vector.extract_strided_slice %222 {offsets = [0, 0, 8], sizes = [4, 8, 8], strides = [1, 1, 1]} : vector<4x8x96xf32> to vector<4x8x8xf32>
    %247 = arith.truncf %246 : vector<4x8x8xf32> to vector<4x8x8xbf16>
    %248 = vector.extract_strided_slice %222 {offsets = [0, 0, 40], sizes = [4, 8, 8], strides = [1, 1, 1]} : vector<4x8x96xf32> to vector<4x8x8xf32>
    %249 = arith.truncf %248 : vector<4x8x8xf32> to vector<4x8x8xbf16>
    %250 = vector.extract_strided_slice %222 {offsets = [0, 0, 72], sizes = [4, 8, 8], strides = [1, 1, 1]} : vector<4x8x96xf32> to vector<4x8x8xf32>
    %251 = arith.truncf %250 : vector<4x8x8xf32> to vector<4x8x8xbf16>
    "tpu.trace_start"() <{level = 10 : i32, message = "bqd,bkd->bqk"}> : () -> ()
    %cst_77 = arith.constant dense<0.000000e+00> : vector<4x8x8xf32>
    %252 = tpu.matmul %247, %249, %cst_77 {dimension_numbers = #tpu.dot_dimension_numbers<[2], [2], [1], [1], [0, 0, 0, 1, 1, 1], [0], [0]>} : vector<4x8x8xbf16>, vector<4x8x8xbf16>, vector<4x8x8xf32> -> vector<4x8x8xf32>
    "tpu.trace_stop"() : () -> ()
    %cst_78 = arith.constant dense<0xFF800000> : vector<4x8xf32>
    %253 = vector.multi_reduction <maximumf>, %252, %cst_78 [2] : vector<4x8x8xf32> to vector<4x8xf32>
    %254 = vector.shape_cast %253 : vector<4x8xf32> to vector<4x8x1xf32>
    %255 = vector.broadcast %254 : vector<4x8x1xf32> to vector<4x8x8xf32>
    %256 = arith.subf %252, %255 : vector<4x8x8xf32>
    %257 = math.exp %256 : vector<4x8x8xf32>
    %cst_79 = arith.constant dense<0.000000e+00> : vector<4x8xf32>
    %258 = vector.multi_reduction <add>, %257, %cst_79 [2] : vector<4x8x8xf32> to vector<4x8xf32>
    %259 = vector.shape_cast %258 : vector<4x8xf32> to vector<4x8x1xf32>
    %260 = tpu.reciprocal %259 {approx = true} : vector<4x8x1xf32> -> vector<4x8x1xf32>
    %261 = vector.broadcast %260 : vector<4x8x1xf32> to vector<4x8x8xf32>
    %262 = arith.mulf %257, %261 : vector<4x8x8xf32>
    %263 = arith.truncf %262 : vector<4x8x8xf32> to vector<4x8x8xbf16>
    "tpu.trace_start"() <{level = 10 : i32, message = "bqk,bkd->bqd"}> : () -> ()
    %cst_80 = arith.constant dense<0.000000e+00> : vector<4x8x8xf32>
    %264 = tpu.matmul %263, %251, %cst_80 {dimension_numbers = #tpu.dot_dimension_numbers<[2], [1], [1], [2], [0, 0, 0, 1, 1, 2], [0], [0]>} : vector<4x8x8xbf16>, vector<4x8x8xbf16>, vector<4x8x8xf32> -> vector<4x8x8xf32>
    "tpu.trace_stop"() : () -> ()
    %265 = arith.truncf %264 : vector<4x8x8xf32> to vector<4x8x8xbf16>
    %266 = vector.extract_strided_slice %210 {offsets = [1, 0, 0], sizes = [1, 8, 32], strides = [1, 1, 1]} : vector<4x8x32xbf16> to vector<1x8x32xbf16>
    %267 = vector.shape_cast %266 : vector<1x8x32xbf16> to vector<8x32xbf16>
    "tpu.trace_start"() <{level = 10 : i32, message = "bqd,de->bqe"}> : () -> ()
    %cst_81 = arith.constant dense<0.000000e+00> : vector<4x8x32xf32>
    %268 = tpu.matmul %265, %267, %cst_81 {dimension_numbers = #tpu.dot_dimension_numbers<[2], [0], [0, 1], [1], [0, 0, 0, 1, 1, 1], [], []>} : vector<4x8x8xbf16>, vector<8x32xbf16>, vector<4x8x32xf32> -> vector<4x8x32xf32>
    "tpu.trace_stop"() : () -> ()
    %269 = arith.addf %245, %268 : vector<4x8x32xf32>
    %270 = vector.extract_strided_slice %222 {offsets = [0, 0, 16], sizes = [4, 8, 8], strides = [1, 1, 1]} : vector<4x8x96xf32> to vector<4x8x8xf32>
    %271 = arith.truncf %270 : vector<4x8x8xf32> to vector<4x8x8xbf16>
    %272 = vector.extract_strided_slice %222 {offsets = [0, 0, 48], sizes = [4, 8, 8], strides = [1, 1, 1]} : vector<4x8x96xf32> to vector<4x8x8xf32>
    %273 = arith.truncf %272 : vector<4x8x8xf32> to vector<4x8x8xbf16>
    %274 = vector.extract_strided_slice %222 {offsets = [0, 0, 80], sizes = [4, 8, 8], strides = [1, 1, 1]} : vector<4x8x96xf32> to vector<4x8x8xf32>
    %275 = arith.truncf %274 : vector<4x8x8xf32> to vector<4x8x8xbf16>
    "tpu.trace_start"() <{level = 10 : i32, message = "bqd,bkd->bqk"}> : () -> ()
    %cst_82 = arith.constant dense<0.000000e+00> : vector<4x8x8xf32>
    %276 = tpu.matmul %271, %273, %cst_82 {dimension_numbers = #tpu.dot_dimension_numbers<[2], [2], [1], [1], [0, 0, 0, 1, 1, 1], [0], [0]>} : vector<4x8x8xbf16>, vector<4x8x8xbf16>, vector<4x8x8xf32> -> vector<4x8x8xf32>
    "tpu.trace_stop"() : () -> ()
    %cst_83 = arith.constant dense<0xFF800000> : vector<4x8xf32>
    %277 = vector.multi_reduction <maximumf>, %276, %cst_83 [2] : vector<4x8x8xf32> to vector<4x8xf32>
    %278 = vector.shape_cast %277 : vector<4x8xf32> to vector<4x8x1xf32>
    %279 = vector.broadcast %278 : vector<4x8x1xf32> to vector<4x8x8xf32>
    %280 = arith.subf %276, %279 : vector<4x8x8xf32>
    %281 = math.exp %280 : vector<4x8x8xf32>
    %cst_84 = arith.constant dense<0.000000e+00> : vector<4x8xf32>
    %282 = vector.multi_reduction <add>, %281, %cst_84 [2] : vector<4x8x8xf32> to vector<4x8xf32>
    %283 = vector.shape_cast %282 : vector<4x8xf32> to vector<4x8x1xf32>
    %284 = tpu.reciprocal %283 {approx = true} : vector<4x8x1xf32> -> vector<4x8x1xf32>
    %285 = vector.broadcast %284 : vector<4x8x1xf32> to vector<4x8x8xf32>
    %286 = arith.mulf %281, %285 : vector<4x8x8xf32>
    %287 = arith.truncf %286 : vector<4x8x8xf32> to vector<4x8x8xbf16>
    "tpu.trace_start"() <{level = 10 : i32, message = "bqk,bkd->bqd"}> : () -> ()
    %cst_85 = arith.constant dense<0.000000e+00> : vector<4x8x8xf32>
    %288 = tpu.matmul %287, %275, %cst_85 {dimension_numbers = #tpu.dot_dimension_numbers<[2], [1], [1], [2], [0, 0, 0, 1, 1, 2], [0], [0]>} : vector<4x8x8xbf16>, vector<4x8x8xbf16>, vector<4x8x8xf32> -> vector<4x8x8xf32>
    "tpu.trace_stop"() : () -> ()
    %289 = arith.truncf %288 : vector<4x8x8xf32> to vector<4x8x8xbf16>
    %290 = vector.extract_strided_slice %210 {offsets = [2, 0, 0], sizes = [1, 8, 32], strides = [1, 1, 1]} : vector<4x8x32xbf16> to vector<1x8x32xbf16>
    %291 = vector.shape_cast %290 : vector<1x8x32xbf16> to vector<8x32xbf16>
    "tpu.trace_start"() <{level = 10 : i32, message = "bqd,de->bqe"}> : () -> ()
    %cst_86 = arith.constant dense<0.000000e+00> : vector<4x8x32xf32>
    %292 = tpu.matmul %289, %291, %cst_86 {dimension_numbers = #tpu.dot_dimension_numbers<[2], [0], [0, 1], [1], [0, 0, 0, 1, 1, 1], [], []>} : vector<4x8x8xbf16>, vector<8x32xbf16>, vector<4x8x32xf32> -> vector<4x8x32xf32>
    "tpu.trace_stop"() : () -> ()
    %293 = arith.addf %269, %292 : vector<4x8x32xf32>
    %294 = vector.extract_strided_slice %222 {offsets = [0, 0, 24], sizes = [4, 8, 8], strides = [1, 1, 1]} : vector<4x8x96xf32> to vector<4x8x8xf32>
    %295 = arith.truncf %294 : vector<4x8x8xf32> to vector<4x8x8xbf16>
    %296 = vector.extract_strided_slice %222 {offsets = [0, 0, 56], sizes = [4, 8, 8], strides = [1, 1, 1]} : vector<4x8x96xf32> to vector<4x8x8xf32>
    %297 = arith.truncf %296 : vector<4x8x8xf32> to vector<4x8x8xbf16>
    %298 = vector.extract_strided_slice %222 {offsets = [0, 0, 88], sizes = [4, 8, 8], strides = [1, 1, 1]} : vector<4x8x96xf32> to vector<4x8x8xf32>
    %299 = arith.truncf %298 : vector<4x8x8xf32> to vector<4x8x8xbf16>
    "tpu.trace_start"() <{level = 10 : i32, message = "bqd,bkd->bqk"}> : () -> ()
    %cst_87 = arith.constant dense<0.000000e+00> : vector<4x8x8xf32>
    %300 = tpu.matmul %295, %297, %cst_87 {dimension_numbers = #tpu.dot_dimension_numbers<[2], [2], [1], [1], [0, 0, 0, 1, 1, 1], [0], [0]>} : vector<4x8x8xbf16>, vector<4x8x8xbf16>, vector<4x8x8xf32> -> vector<4x8x8xf32>
    "tpu.trace_stop"() : () -> ()
    %cst_88 = arith.constant dense<0xFF800000> : vector<4x8xf32>
    %301 = vector.multi_reduction <maximumf>, %300, %cst_88 [2] : vector<4x8x8xf32> to vector<4x8xf32>
    %302 = vector.shape_cast %301 : vector<4x8xf32> to vector<4x8x1xf32>
    %303 = vector.broadcast %302 : vector<4x8x1xf32> to vector<4x8x8xf32>
    %304 = arith.subf %300, %303 : vector<4x8x8xf32>
    %305 = math.exp %304 : vector<4x8x8xf32>
    %cst_89 = arith.constant dense<0.000000e+00> : vector<4x8xf32>
    %306 = vector.multi_reduction <add>, %305, %cst_89 [2] : vector<4x8x8xf32> to vector<4x8xf32>
    %307 = vector.shape_cast %306 : vector<4x8xf32> to vector<4x8x1xf32>
    %308 = tpu.reciprocal %307 {approx = true} : vector<4x8x1xf32> -> vector<4x8x1xf32>
    %309 = vector.broadcast %308 : vector<4x8x1xf32> to vector<4x8x8xf32>
    %310 = arith.mulf %305, %309 : vector<4x8x8xf32>
    %311 = arith.truncf %310 : vector<4x8x8xf32> to vector<4x8x8xbf16>
    "tpu.trace_start"() <{level = 10 : i32, message = "bqk,bkd->bqd"}> : () -> ()
    %cst_90 = arith.constant dense<0.000000e+00> : vector<4x8x8xf32>
    %312 = tpu.matmul %311, %299, %cst_90 {dimension_numbers = #tpu.dot_dimension_numbers<[2], [1], [1], [2], [0, 0, 0, 1, 1, 2], [0], [0]>} : vector<4x8x8xbf16>, vector<4x8x8xbf16>, vector<4x8x8xf32> -> vector<4x8x8xf32>
    "tpu.trace_stop"() : () -> ()
    %313 = arith.truncf %312 : vector<4x8x8xf32> to vector<4x8x8xbf16>
    %314 = vector.extract_strided_slice %210 {offsets = [3, 0, 0], sizes = [1, 8, 32], strides = [1, 1, 1]} : vector<4x8x32xbf16> to vector<1x8x32xbf16>
    %315 = vector.shape_cast %314 : vector<1x8x32xbf16> to vector<8x32xbf16>
    "tpu.trace_start"() <{level = 10 : i32, message = "bqd,de->bqe"}> : () -> ()
    %cst_91 = arith.constant dense<0.000000e+00> : vector<4x8x32xf32>
    %316 = tpu.matmul %313, %315, %cst_91 {dimension_numbers = #tpu.dot_dimension_numbers<[2], [0], [0, 1], [1], [0, 0, 0, 1, 1, 1], [], []>} : vector<4x8x8xbf16>, vector<8x32xbf16>, vector<4x8x32xf32> -> vector<4x8x32xf32>
    "tpu.trace_stop"() : () -> ()
    %317 = arith.addf %293, %316 : vector<4x8x32xf32>
    %318 = vector.shape_cast %317 : vector<4x8x32xf32> to vector<32x32xf32>
    %319 = vector.extract_strided_slice %208 {offsets = [0, 0], sizes = [1, 32], strides = [1, 1]} : vector<7x32xf32> to vector<1x32xf32>
    %320 = vector.shape_cast %319 : vector<1x32xf32> to vector<32xf32>
    %321 = vector.shape_cast %320 : vector<32xf32> to vector<1x32xf32>
    %322 = vector.broadcast %321 : vector<1x32xf32> to vector<32x32xf32>
    %323 = arith.addf %318, %322 : vector<32x32xf32>
    %324 = arith.addf %206, %323 : vector<32x32xf32>
    %325 = vector.extract_strided_slice %208 {offsets = [1, 0], sizes = [1, 32], strides = [1, 1]} : vector<7x32xf32> to vector<1x32xf32>
    %326 = vector.shape_cast %325 : vector<1x32xf32> to vector<32xf32>
    %327 = vector.extract_strided_slice %208 {offsets = [2, 0], sizes = [1, 32], strides = [1, 1]} : vector<7x32xf32> to vector<1x32xf32>
    %328 = vector.shape_cast %327 : vector<1x32xf32> to vector<32xf32>
    %cst_92 = arith.constant dense<0.000000e+00> : vector<32xf32>
    %329 = vector.multi_reduction <add>, %324, %cst_92 [1] : vector<32x32xf32> to vector<32xf32>
    %330 = vector.shape_cast %329 : vector<32xf32> to vector<32x1xf32>
    %cst_93 = arith.constant 3.200000e+01 : f32
    %331 = vector.broadcast %cst_93 : f32 to vector<32x1xf32>
    %332 = arith.divf %330, %331 : vector<32x1xf32>
    %333 = vector.broadcast %332 : vector<32x1xf32> to vector<32x32xf32>
    %334 = arith.subf %324, %333 : vector<32x32xf32>
    %335 = arith.mulf %334, %334 : vector<32x32xf32>
    %cst_94 = arith.constant dense<0.000000e+00> : vector<32xf32>
    %336 = vector.multi_reduction <add>, %335, %cst_94 [1] : vector<32x32xf32> to vector<32xf32>
    %337 = vector.shape_cast %336 : vector<32xf32> to vector<32x1xf32>
    %cst_95 = arith.constant 3.200000e+01 : f32
    %338 = vector.broadcast %cst_95 : f32 to vector<32x1xf32>
    %339 = arith.divf %337, %338 : vector<32x1xf32>
    %340 = vector.broadcast %332 : vector<32x1xf32> to vector<32x32xf32>
    %341 = arith.subf %324, %340 : vector<32x32xf32>
    %cst_96 = arith.constant 9.99999974E-6 : f32
    %342 = vector.broadcast %cst_96 : f32 to vector<32x1xf32>
    %343 = arith.addf %339, %342 : vector<32x1xf32>
    %344 = math.rsqrt %343 : vector<32x1xf32>
    %345 = vector.broadcast %344 : vector<32x1xf32> to vector<32x32xf32>
    %346 = arith.mulf %341, %345 : vector<32x32xf32>
    %347 = vector.shape_cast %326 : vector<32xf32> to vector<1x32xf32>
    %348 = vector.broadcast %347 : vector<1x32xf32> to vector<32x32xf32>
    %349 = arith.mulf %346, %348 : vector<32x32xf32>
    %350 = vector.shape_cast %328 : vector<32xf32> to vector<1x32xf32>
    %351 = vector.broadcast %350 : vector<1x32xf32> to vector<32x32xf32>
    %352 = arith.addf %349, %351 : vector<32x32xf32>
    %353 = arith.truncf %352 : vector<32x32xf32> to vector<32x32xbf16>
    %354 = vector.extract_strided_slice %212 {offsets = [0, 0, 0], sizes = [1, 32, 32], strides = [1, 1, 1]} : vector<2x32x32xbf16> to vector<1x32x32xbf16>
    %355 = vector.shape_cast %354 : vector<1x32x32xbf16> to vector<32x32xbf16>
    %cst_97 = arith.constant dense<0.000000e+00> : vector<32x32xf32>
    %356 = tpu.matmul %353, %355, %cst_97 {dimension_numbers = #tpu.dot_dimension_numbers<[1], [0], [0], [1], [0, 0, 1, 1], [], []>} : vector<32x32xbf16>, vector<32x32xbf16>, vector<32x32xf32> -> vector<32x32xf32>
    %357 = vector.extract_strided_slice %208 {offsets = [5, 0], sizes = [1, 32], strides = [1, 1]} : vector<7x32xf32> to vector<1x32xf32>
    %358 = vector.shape_cast %357 : vector<1x32xf32> to vector<32xf32>
    %359 = vector.shape_cast %358 : vector<32xf32> to vector<1x32xf32>
    %360 = vector.broadcast %359 : vector<1x32xf32> to vector<32x32xf32>
    %361 = arith.addf %356, %360 : vector<32x32xf32>
    %cst_98 = arith.constant 0.000000e+00 : f32
    %362 = vector.broadcast %cst_98 : f32 to vector<32x32xf32>
    %363 = arith.maximumf %361, %362 : vector<32x32xf32>
    %364 = arith.truncf %363 : vector<32x32xf32> to vector<32x32xbf16>
    %365 = vector.extract_strided_slice %212 {offsets = [1, 0, 0], sizes = [1, 32, 32], strides = [1, 1, 1]} : vector<2x32x32xbf16> to vector<1x32x32xbf16>
    %366 = vector.shape_cast %365 : vector<1x32x32xbf16> to vector<32x32xbf16>
    %cst_99 = arith.constant dense<0.000000e+00> : vector<32x32xf32>
    %367 = tpu.matmul %364, %366, %cst_99 {dimension_numbers = #tpu.dot_dimension_numbers<[1], [0], [0], [1], [0, 0, 1, 1], [], []>} : vector<32x32xbf16>, vector<32x32xbf16>, vector<32x32xf32> -> vector<32x32xf32>
    %368 = vector.extract_strided_slice %208 {offsets = [6, 0], sizes = [1, 32], strides = [1, 1]} : vector<7x32xf32> to vector<1x32xf32>
    %369 = vector.shape_cast %368 : vector<1x32xf32> to vector<32xf32>
    %370 = vector.shape_cast %369 : vector<32xf32> to vector<1x32xf32>
    %371 = vector.broadcast %370 : vector<1x32xf32> to vector<32x32xf32>
    %372 = arith.addf %367, %371 : vector<32x32xf32>
    %373 = arith.addf %352, %372 : vector<32x32xf32>
    %374 = vector.extract_strided_slice %208 {offsets = [3, 0], sizes = [1, 32], strides = [1, 1]} : vector<7x32xf32> to vector<1x32xf32>
    %375 = vector.shape_cast %374 : vector<1x32xf32> to vector<32xf32>
    %376 = vector.extract_strided_slice %208 {offsets = [4, 0], sizes = [1, 32], strides = [1, 1]} : vector<7x32xf32> to vector<1x32xf32>
    %377 = vector.shape_cast %376 : vector<1x32xf32> to vector<32xf32>
    %cst_100 = arith.constant dense<0.000000e+00> : vector<32xf32>
    %378 = vector.multi_reduction <add>, %373, %cst_100 [1] : vector<32x32xf32> to vector<32xf32>
    %379 = vector.shape_cast %378 : vector<32xf32> to vector<32x1xf32>
    %cst_101 = arith.constant 3.200000e+01 : f32
    %380 = vector.broadcast %cst_101 : f32 to vector<32x1xf32>
    %381 = arith.divf %379, %380 : vector<32x1xf32>
    %382 = vector.broadcast %381 : vector<32x1xf32> to vector<32x32xf32>
    %383 = arith.subf %373, %382 : vector<32x32xf32>
    %384 = arith.mulf %383, %383 : vector<32x32xf32>
    %cst_102 = arith.constant dense<0.000000e+00> : vector<32xf32>
    %385 = vector.multi_reduction <add>, %384, %cst_102 [1] : vector<32x32xf32> to vector<32xf32>
    %386 = vector.shape_cast %385 : vector<32xf32> to vector<32x1xf32>
    %cst_103 = arith.constant 3.200000e+01 : f32
    %387 = vector.broadcast %cst_103 : f32 to vector<32x1xf32>
    %388 = arith.divf %386, %387 : vector<32x1xf32>
    %389 = vector.broadcast %381 : vector<32x1xf32> to vector<32x32xf32>
    %390 = arith.subf %373, %389 : vector<32x32xf32>
    %cst_104 = arith.constant 9.99999974E-6 : f32
    %391 = vector.broadcast %cst_104 : f32 to vector<32x1xf32>
    %392 = arith.addf %388, %391 : vector<32x1xf32>
    %393 = math.rsqrt %392 : vector<32x1xf32>
    %394 = vector.broadcast %393 : vector<32x1xf32> to vector<32x32xf32>
    %395 = arith.mulf %390, %394 : vector<32x32xf32>
    %396 = vector.shape_cast %375 : vector<32xf32> to vector<1x32xf32>
    %397 = vector.broadcast %396 : vector<1x32xf32> to vector<32x32xf32>
    %398 = arith.mulf %395, %397 : vector<32x32xf32>
    %399 = vector.shape_cast %377 : vector<32xf32> to vector<1x32xf32>
    %400 = vector.broadcast %399 : vector<1x32xf32> to vector<32x32xf32>
    %401 = arith.addf %398, %400 : vector<32x32xf32>
    %c2 = arith.constant 2 : index
    %c0_105 = arith.constant 0 : index
    %c0_106 = arith.constant 0 : index
    %402 = vector.load %arg9[%c2, %c0_105, %c0_106] : memref<3x7x32xf32, #tpu.memory_space<vmem>>, vector<1x7x32xf32>
    %403 = vector.shape_cast %402 : vector<1x7x32xf32> to vector<7x32xf32>
    %c2_107 = arith.constant 2 : index
    %c0_108 = arith.constant 0 : index
    %c0_109 = arith.constant 0 : index
    %c0_110 = arith.constant 0 : index
    %404 = vector.load %arg7[%c2_107, %c0_108, %c0_109, %c0_110] : memref<3x4x8x32xbf16, #tpu.memory_space<vmem>>, vector<1x4x8x32xbf16>
    %405 = vector.shape_cast %404 : vector<1x4x8x32xbf16> to vector<4x8x32xbf16>
    %c2_111 = arith.constant 2 : index
    %c0_112 = arith.constant 0 : index
    %c0_113 = arith.constant 0 : index
    %c0_114 = arith.constant 0 : index
    %406 = vector.load %arg8[%c2_111, %c0_112, %c0_113, %c0_114] : memref<3x2x32x32xbf16, #tpu.memory_space<vmem>>, vector<1x2x32x32xbf16>
    %407 = vector.shape_cast %406 : vector<1x2x32x32xbf16> to vector<2x32x32xbf16>
    %408 = arith.truncf %401 : vector<32x32xf32> to vector<32x32xbf16>
    %c2_115 = arith.constant 2 : index
    %c0_116 = arith.constant 0 : index
    %c0_117 = arith.constant 0 : index
    %409 = vector.load %arg5[%c2_115, %c0_116, %c0_117] : memref<3x32x96xbf16, #tpu.memory_space<vmem>>, vector<1x32x96xbf16>
    %410 = vector.shape_cast %409 : vector<1x32x96xbf16> to vector<32x96xbf16>
    %cst_118 = arith.constant dense<0.000000e+00> : vector<32x96xf32>
    %411 = tpu.matmul %408, %410, %cst_118 {dimension_numbers = #tpu.dot_dimension_numbers<[1], [0], [0], [1], [0, 0, 1, 1], [], []>} : vector<32x32xbf16>, vector<32x96xbf16>, vector<32x96xf32> -> vector<32x96xf32>
    %c2_119 = arith.constant 2 : index
    %c0_120 = arith.constant 0 : index
    %412 = vector.load %arg6[%c2_119, %c0_120] : memref<3x96xf32, #tpu.memory_space<vmem>>, vector<1x96xf32>
    %413 = vector.shape_cast %412 : vector<1x96xf32> to vector<96xf32>
    %414 = vector.shape_cast %413 : vector<96xf32> to vector<1x96xf32>
    %415 = vector.broadcast %414 : vector<1x96xf32> to vector<32x96xf32>
    %416 = arith.addf %411, %415 : vector<32x96xf32>
    %417 = vector.shape_cast %416 : vector<32x96xf32> to vector<4x8x96xf32>
    %418 = vector.extract_strided_slice %417 {offsets = [0, 0, 0], sizes = [4, 8, 8], strides = [1, 1, 1]} : vector<4x8x96xf32> to vector<4x8x8xf32>
    %419 = arith.truncf %418 : vector<4x8x8xf32> to vector<4x8x8xbf16>
    %420 = vector.extract_strided_slice %417 {offsets = [0, 0, 32], sizes = [4, 8, 8], strides = [1, 1, 1]} : vector<4x8x96xf32> to vector<4x8x8xf32>
    %421 = arith.truncf %420 : vector<4x8x8xf32> to vector<4x8x8xbf16>
    %422 = vector.extract_strided_slice %417 {offsets = [0, 0, 64], sizes = [4, 8, 8], strides = [1, 1, 1]} : vector<4x8x96xf32> to vector<4x8x8xf32>
    %423 = arith.truncf %422 : vector<4x8x8xf32> to vector<4x8x8xbf16>
    "tpu.trace_start"() <{level = 10 : i32, message = "bqd,bkd->bqk"}> : () -> ()
    %cst_121 = arith.constant dense<0.000000e+00> : vector<4x8x8xf32>
    %424 = tpu.matmul %419, %421, %cst_121 {dimension_numbers = #tpu.dot_dimension_numbers<[2], [2], [1], [1], [0, 0, 0, 1, 1, 1], [0], [0]>} : vector<4x8x8xbf16>, vector<4x8x8xbf16>, vector<4x8x8xf32> -> vector<4x8x8xf32>
    "tpu.trace_stop"() : () -> ()
    %cst_122 = arith.constant dense<0xFF800000> : vector<4x8xf32>
    %425 = vector.multi_reduction <maximumf>, %424, %cst_122 [2] : vector<4x8x8xf32> to vector<4x8xf32>
    %426 = vector.shape_cast %425 : vector<4x8xf32> to vector<4x8x1xf32>
    %427 = vector.broadcast %426 : vector<4x8x1xf32> to vector<4x8x8xf32>
    %428 = arith.subf %424, %427 : vector<4x8x8xf32>
    %429 = math.exp %428 : vector<4x8x8xf32>
    %cst_123 = arith.constant dense<0.000000e+00> : vector<4x8xf32>
    %430 = vector.multi_reduction <add>, %429, %cst_123 [2] : vector<4x8x8xf32> to vector<4x8xf32>
    %431 = vector.shape_cast %430 : vector<4x8xf32> to vector<4x8x1xf32>
    %432 = tpu.reciprocal %431 {approx = true} : vector<4x8x1xf32> -> vector<4x8x1xf32>
    %433 = vector.broadcast %432 : vector<4x8x1xf32> to vector<4x8x8xf32>
    %434 = arith.mulf %429, %433 : vector<4x8x8xf32>
    %435 = arith.truncf %434 : vector<4x8x8xf32> to vector<4x8x8xbf16>
    "tpu.trace_start"() <{level = 10 : i32, message = "bqk,bkd->bqd"}> : () -> ()
    %cst_124 = arith.constant dense<0.000000e+00> : vector<4x8x8xf32>
    %436 = tpu.matmul %435, %423, %cst_124 {dimension_numbers = #tpu.dot_dimension_numbers<[2], [1], [1], [2], [0, 0, 0, 1, 1, 2], [0], [0]>} : vector<4x8x8xbf16>, vector<4x8x8xbf16>, vector<4x8x8xf32> -> vector<4x8x8xf32>
    "tpu.trace_stop"() : () -> ()
    %437 = arith.truncf %436 : vector<4x8x8xf32> to vector<4x8x8xbf16>
    %438 = vector.extract_strided_slice %405 {offsets = [0, 0, 0], sizes = [1, 8, 32], strides = [1, 1, 1]} : vector<4x8x32xbf16> to vector<1x8x32xbf16>
    %439 = vector.shape_cast %438 : vector<1x8x32xbf16> to vector<8x32xbf16>
    "tpu.trace_start"() <{level = 10 : i32, message = "bqd,de->bqe"}> : () -> ()
    %cst_125 = arith.constant dense<0.000000e+00> : vector<4x8x32xf32>
    %440 = tpu.matmul %437, %439, %cst_125 {dimension_numbers = #tpu.dot_dimension_numbers<[2], [0], [0, 1], [1], [0, 0, 0, 1, 1, 1], [], []>} : vector<4x8x8xbf16>, vector<8x32xbf16>, vector<4x8x32xf32> -> vector<4x8x32xf32>
    "tpu.trace_stop"() : () -> ()
    %441 = vector.extract_strided_slice %417 {offsets = [0, 0, 8], sizes = [4, 8, 8], strides = [1, 1, 1]} : vector<4x8x96xf32> to vector<4x8x8xf32>
    %442 = arith.truncf %441 : vector<4x8x8xf32> to vector<4x8x8xbf16>
    %443 = vector.extract_strided_slice %417 {offsets = [0, 0, 40], sizes = [4, 8, 8], strides = [1, 1, 1]} : vector<4x8x96xf32> to vector<4x8x8xf32>
    %444 = arith.truncf %443 : vector<4x8x8xf32> to vector<4x8x8xbf16>
    %445 = vector.extract_strided_slice %417 {offsets = [0, 0, 72], sizes = [4, 8, 8], strides = [1, 1, 1]} : vector<4x8x96xf32> to vector<4x8x8xf32>
    %446 = arith.truncf %445 : vector<4x8x8xf32> to vector<4x8x8xbf16>
    "tpu.trace_start"() <{level = 10 : i32, message = "bqd,bkd->bqk"}> : () -> ()
    %cst_126 = arith.constant dense<0.000000e+00> : vector<4x8x8xf32>
    %447 = tpu.matmul %442, %444, %cst_126 {dimension_numbers = #tpu.dot_dimension_numbers<[2], [2], [1], [1], [0, 0, 0, 1, 1, 1], [0], [0]>} : vector<4x8x8xbf16>, vector<4x8x8xbf16>, vector<4x8x8xf32> -> vector<4x8x8xf32>
    "tpu.trace_stop"() : () -> ()
    %cst_127 = arith.constant dense<0xFF800000> : vector<4x8xf32>
    %448 = vector.multi_reduction <maximumf>, %447, %cst_127 [2] : vector<4x8x8xf32> to vector<4x8xf32>
    %449 = vector.shape_cast %448 : vector<4x8xf32> to vector<4x8x1xf32>
    %450 = vector.broadcast %449 : vector<4x8x1xf32> to vector<4x8x8xf32>
    %451 = arith.subf %447, %450 : vector<4x8x8xf32>
    %452 = math.exp %451 : vector<4x8x8xf32>
    %cst_128 = arith.constant dense<0.000000e+00> : vector<4x8xf32>
    %453 = vector.multi_reduction <add>, %452, %cst_128 [2] : vector<4x8x8xf32> to vector<4x8xf32>
    %454 = vector.shape_cast %453 : vector<4x8xf32> to vector<4x8x1xf32>
    %455 = tpu.reciprocal %454 {approx = true} : vector<4x8x1xf32> -> vector<4x8x1xf32>
    %456 = vector.broadcast %455 : vector<4x8x1xf32> to vector<4x8x8xf32>
    %457 = arith.mulf %452, %456 : vector<4x8x8xf32>
    %458 = arith.truncf %457 : vector<4x8x8xf32> to vector<4x8x8xbf16>
    "tpu.trace_start"() <{level = 10 : i32, message = "bqk,bkd->bqd"}> : () -> ()
    %cst_129 = arith.constant dense<0.000000e+00> : vector<4x8x8xf32>
    %459 = tpu.matmul %458, %446, %cst_129 {dimension_numbers = #tpu.dot_dimension_numbers<[2], [1], [1], [2], [0, 0, 0, 1, 1, 2], [0], [0]>} : vector<4x8x8xbf16>, vector<4x8x8xbf16>, vector<4x8x8xf32> -> vector<4x8x8xf32>
    "tpu.trace_stop"() : () -> ()
    %460 = arith.truncf %459 : vector<4x8x8xf32> to vector<4x8x8xbf16>
    %461 = vector.extract_strided_slice %405 {offsets = [1, 0, 0], sizes = [1, 8, 32], strides = [1, 1, 1]} : vector<4x8x32xbf16> to vector<1x8x32xbf16>
    %462 = vector.shape_cast %461 : vector<1x8x32xbf16> to vector<8x32xbf16>
    "tpu.trace_start"() <{level = 10 : i32, message = "bqd,de->bqe"}> : () -> ()
    %cst_130 = arith.constant dense<0.000000e+00> : vector<4x8x32xf32>
    %463 = tpu.matmul %460, %462, %cst_130 {dimension_numbers = #tpu.dot_dimension_numbers<[2], [0], [0, 1], [1], [0, 0, 0, 1, 1, 1], [], []>} : vector<4x8x8xbf16>, vector<8x32xbf16>, vector<4x8x32xf32> -> vector<4x8x32xf32>
    "tpu.trace_stop"() : () -> ()
    %464 = arith.addf %440, %463 : vector<4x8x32xf32>
    %465 = vector.extract_strided_slice %417 {offsets = [0, 0, 16], sizes = [4, 8, 8], strides = [1, 1, 1]} : vector<4x8x96xf32> to vector<4x8x8xf32>
    %466 = arith.truncf %465 : vector<4x8x8xf32> to vector<4x8x8xbf16>
    %467 = vector.extract_strided_slice %417 {offsets = [0, 0, 48], sizes = [4, 8, 8], strides = [1, 1, 1]} : vector<4x8x96xf32> to vector<4x8x8xf32>
    %468 = arith.truncf %467 : vector<4x8x8xf32> to vector<4x8x8xbf16>
    %469 = vector.extract_strided_slice %417 {offsets = [0, 0, 80], sizes = [4, 8, 8], strides = [1, 1, 1]} : vector<4x8x96xf32> to vector<4x8x8xf32>
    %470 = arith.truncf %469 : vector<4x8x8xf32> to vector<4x8x8xbf16>
    "tpu.trace_start"() <{level = 10 : i32, message = "bqd,bkd->bqk"}> : () -> ()
    %cst_131 = arith.constant dense<0.000000e+00> : vector<4x8x8xf32>
    %471 = tpu.matmul %466, %468, %cst_131 {dimension_numbers = #tpu.dot_dimension_numbers<[2], [2], [1], [1], [0, 0, 0, 1, 1, 1], [0], [0]>} : vector<4x8x8xbf16>, vector<4x8x8xbf16>, vector<4x8x8xf32> -> vector<4x8x8xf32>
    "tpu.trace_stop"() : () -> ()
    %cst_132 = arith.constant dense<0xFF800000> : vector<4x8xf32>
    %472 = vector.multi_reduction <maximumf>, %471, %cst_132 [2] : vector<4x8x8xf32> to vector<4x8xf32>
    %473 = vector.shape_cast %472 : vector<4x8xf32> to vector<4x8x1xf32>
    %474 = vector.broadcast %473 : vector<4x8x1xf32> to vector<4x8x8xf32>
    %475 = arith.subf %471, %474 : vector<4x8x8xf32>
    %476 = math.exp %475 : vector<4x8x8xf32>
    %cst_133 = arith.constant dense<0.000000e+00> : vector<4x8xf32>
    %477 = vector.multi_reduction <add>, %476, %cst_133 [2] : vector<4x8x8xf32> to vector<4x8xf32>
    %478 = vector.shape_cast %477 : vector<4x8xf32> to vector<4x8x1xf32>
    %479 = tpu.reciprocal %478 {approx = true} : vector<4x8x1xf32> -> vector<4x8x1xf32>
    %480 = vector.broadcast %479 : vector<4x8x1xf32> to vector<4x8x8xf32>
    %481 = arith.mulf %476, %480 : vector<4x8x8xf32>
    %482 = arith.truncf %481 : vector<4x8x8xf32> to vector<4x8x8xbf16>
    "tpu.trace_start"() <{level = 10 : i32, message = "bqk,bkd->bqd"}> : () -> ()
    %cst_134 = arith.constant dense<0.000000e+00> : vector<4x8x8xf32>
    %483 = tpu.matmul %482, %470, %cst_134 {dimension_numbers = #tpu.dot_dimension_numbers<[2], [1], [1], [2], [0, 0, 0, 1, 1, 2], [0], [0]>} : vector<4x8x8xbf16>, vector<4x8x8xbf16>, vector<4x8x8xf32> -> vector<4x8x8xf32>
    "tpu.trace_stop"() : () -> ()
    %484 = arith.truncf %483 : vector<4x8x8xf32> to vector<4x8x8xbf16>
    %485 = vector.extract_strided_slice %405 {offsets = [2, 0, 0], sizes = [1, 8, 32], strides = [1, 1, 1]} : vector<4x8x32xbf16> to vector<1x8x32xbf16>
    %486 = vector.shape_cast %485 : vector<1x8x32xbf16> to vector<8x32xbf16>
    "tpu.trace_start"() <{level = 10 : i32, message = "bqd,de->bqe"}> : () -> ()
    %cst_135 = arith.constant dense<0.000000e+00> : vector<4x8x32xf32>
    %487 = tpu.matmul %484, %486, %cst_135 {dimension_numbers = #tpu.dot_dimension_numbers<[2], [0], [0, 1], [1], [0, 0, 0, 1, 1, 1], [], []>} : vector<4x8x8xbf16>, vector<8x32xbf16>, vector<4x8x32xf32> -> vector<4x8x32xf32>
    "tpu.trace_stop"() : () -> ()
    %488 = arith.addf %464, %487 : vector<4x8x32xf32>
    %489 = vector.extract_strided_slice %417 {offsets = [0, 0, 24], sizes = [4, 8, 8], strides = [1, 1, 1]} : vector<4x8x96xf32> to vector<4x8x8xf32>
    %490 = arith.truncf %489 : vector<4x8x8xf32> to vector<4x8x8xbf16>
    %491 = vector.extract_strided_slice %417 {offsets = [0, 0, 56], sizes = [4, 8, 8], strides = [1, 1, 1]} : vector<4x8x96xf32> to vector<4x8x8xf32>
    %492 = arith.truncf %491 : vector<4x8x8xf32> to vector<4x8x8xbf16>
    %493 = vector.extract_strided_slice %417 {offsets = [0, 0, 88], sizes = [4, 8, 8], strides = [1, 1, 1]} : vector<4x8x96xf32> to vector<4x8x8xf32>
    %494 = arith.truncf %493 : vector<4x8x8xf32> to vector<4x8x8xbf16>
    "tpu.trace_start"() <{level = 10 : i32, message = "bqd,bkd->bqk"}> : () -> ()
    %cst_136 = arith.constant dense<0.000000e+00> : vector<4x8x8xf32>
    %495 = tpu.matmul %490, %492, %cst_136 {dimension_numbers = #tpu.dot_dimension_numbers<[2], [2], [1], [1], [0, 0, 0, 1, 1, 1], [0], [0]>} : vector<4x8x8xbf16>, vector<4x8x8xbf16>, vector<4x8x8xf32> -> vector<4x8x8xf32>
    "tpu.trace_stop"() : () -> ()
    %cst_137 = arith.constant dense<0xFF800000> : vector<4x8xf32>
    %496 = vector.multi_reduction <maximumf>, %495, %cst_137 [2] : vector<4x8x8xf32> to vector<4x8xf32>
    %497 = vector.shape_cast %496 : vector<4x8xf32> to vector<4x8x1xf32>
    %498 = vector.broadcast %497 : vector<4x8x1xf32> to vector<4x8x8xf32>
    %499 = arith.subf %495, %498 : vector<4x8x8xf32>
    %500 = math.exp %499 : vector<4x8x8xf32>
    %cst_138 = arith.constant dense<0.000000e+00> : vector<4x8xf32>
    %501 = vector.multi_reduction <add>, %500, %cst_138 [2] : vector<4x8x8xf32> to vector<4x8xf32>
    %502 = vector.shape_cast %501 : vector<4x8xf32> to vector<4x8x1xf32>
    %503 = tpu.reciprocal %502 {approx = true} : vector<4x8x1xf32> -> vector<4x8x1xf32>
    %504 = vector.broadcast %503 : vector<4x8x1xf32> to vector<4x8x8xf32>
    %505 = arith.mulf %500, %504 : vector<4x8x8xf32>
    %506 = arith.truncf %505 : vector<4x8x8xf32> to vector<4x8x8xbf16>
    "tpu.trace_start"() <{level = 10 : i32, message = "bqk,bkd->bqd"}> : () -> ()
    %cst_139 = arith.constant dense<0.000000e+00> : vector<4x8x8xf32>
    %507 = tpu.matmul %506, %494, %cst_139 {dimension_numbers = #tpu.dot_dimension_numbers<[2], [1], [1], [2], [0, 0, 0, 1, 1, 2], [0], [0]>} : vector<4x8x8xbf16>, vector<4x8x8xbf16>, vector<4x8x8xf32> -> vector<4x8x8xf32>
    "tpu.trace_stop"() : () -> ()
    %508 = arith.truncf %507 : vector<4x8x8xf32> to vector<4x8x8xbf16>
    %509 = vector.extract_strided_slice %405 {offsets = [3, 0, 0], sizes = [1, 8, 32], strides = [1, 1, 1]} : vector<4x8x32xbf16> to vector<1x8x32xbf16>
    %510 = vector.shape_cast %509 : vector<1x8x32xbf16> to vector<8x32xbf16>
    "tpu.trace_start"() <{level = 10 : i32, message = "bqd,de->bqe"}> : () -> ()
    %cst_140 = arith.constant dense<0.000000e+00> : vector<4x8x32xf32>
    %511 = tpu.matmul %508, %510, %cst_140 {dimension_numbers = #tpu.dot_dimension_numbers<[2], [0], [0, 1], [1], [0, 0, 0, 1, 1, 1], [], []>} : vector<4x8x8xbf16>, vector<8x32xbf16>, vector<4x8x32xf32> -> vector<4x8x32xf32>
    "tpu.trace_stop"() : () -> ()
    %512 = arith.addf %488, %511 : vector<4x8x32xf32>
    %513 = vector.shape_cast %512 : vector<4x8x32xf32> to vector<32x32xf32>
    %514 = vector.extract_strided_slice %403 {offsets = [0, 0], sizes = [1, 32], strides = [1, 1]} : vector<7x32xf32> to vector<1x32xf32>
    %515 = vector.shape_cast %514 : vector<1x32xf32> to vector<32xf32>
    %516 = vector.shape_cast %515 : vector<32xf32> to vector<1x32xf32>
    %517 = vector.broadcast %516 : vector<1x32xf32> to vector<32x32xf32>
    %518 = arith.addf %513, %517 : vector<32x32xf32>
    %519 = arith.addf %401, %518 : vector<32x32xf32>
    %520 = vector.extract_strided_slice %403 {offsets = [1, 0], sizes = [1, 32], strides = [1, 1]} : vector<7x32xf32> to vector<1x32xf32>
    %521 = vector.shape_cast %520 : vector<1x32xf32> to vector<32xf32>
    %522 = vector.extract_strided_slice %403 {offsets = [2, 0], sizes = [1, 32], strides = [1, 1]} : vector<7x32xf32> to vector<1x32xf32>
    %523 = vector.shape_cast %522 : vector<1x32xf32> to vector<32xf32>
    %cst_141 = arith.constant dense<0.000000e+00> : vector<32xf32>
    %524 = vector.multi_reduction <add>, %519, %cst_141 [1] : vector<32x32xf32> to vector<32xf32>
    %525 = vector.shape_cast %524 : vector<32xf32> to vector<32x1xf32>
    %cst_142 = arith.constant 3.200000e+01 : f32
    %526 = vector.broadcast %cst_142 : f32 to vector<32x1xf32>
    %527 = arith.divf %525, %526 : vector<32x1xf32>
    %528 = vector.broadcast %527 : vector<32x1xf32> to vector<32x32xf32>
    %529 = arith.subf %519, %528 : vector<32x32xf32>
    %530 = arith.mulf %529, %529 : vector<32x32xf32>
    %cst_143 = arith.constant dense<0.000000e+00> : vector<32xf32>
    %531 = vector.multi_reduction <add>, %530, %cst_143 [1] : vector<32x32xf32> to vector<32xf32>
    %532 = vector.shape_cast %531 : vector<32xf32> to vector<32x1xf32>
    %cst_144 = arith.constant 3.200000e+01 : f32
    %533 = vector.broadcast %cst_144 : f32 to vector<32x1xf32>
    %534 = arith.divf %532, %533 : vector<32x1xf32>
    %535 = vector.broadcast %527 : vector<32x1xf32> to vector<32x32xf32>
    %536 = arith.subf %519, %535 : vector<32x32xf32>
    %cst_145 = arith.constant 9.99999974E-6 : f32
    %537 = vector.broadcast %cst_145 : f32 to vector<32x1xf32>
    %538 = arith.addf %534, %537 : vector<32x1xf32>
    %539 = math.rsqrt %538 : vector<32x1xf32>
    %540 = vector.broadcast %539 : vector<32x1xf32> to vector<32x32xf32>
    %541 = arith.mulf %536, %540 : vector<32x32xf32>
    %542 = vector.shape_cast %521 : vector<32xf32> to vector<1x32xf32>
    %543 = vector.broadcast %542 : vector<1x32xf32> to vector<32x32xf32>
    %544 = arith.mulf %541, %543 : vector<32x32xf32>
    %545 = vector.shape_cast %523 : vector<32xf32> to vector<1x32xf32>
    %546 = vector.broadcast %545 : vector<1x32xf32> to vector<32x32xf32>
    %547 = arith.addf %544, %546 : vector<32x32xf32>
    %548 = arith.truncf %547 : vector<32x32xf32> to vector<32x32xbf16>
    %549 = vector.extract_strided_slice %407 {offsets = [0, 0, 0], sizes = [1, 32, 32], strides = [1, 1, 1]} : vector<2x32x32xbf16> to vector<1x32x32xbf16>
    %550 = vector.shape_cast %549 : vector<1x32x32xbf16> to vector<32x32xbf16>
    %cst_146 = arith.constant dense<0.000000e+00> : vector<32x32xf32>
    %551 = tpu.matmul %548, %550, %cst_146 {dimension_numbers = #tpu.dot_dimension_numbers<[1], [0], [0], [1], [0, 0, 1, 1], [], []>} : vector<32x32xbf16>, vector<32x32xbf16>, vector<32x32xf32> -> vector<32x32xf32>
    %552 = vector.extract_strided_slice %403 {offsets = [5, 0], sizes = [1, 32], strides = [1, 1]} : vector<7x32xf32> to vector<1x32xf32>
    %553 = vector.shape_cast %552 : vector<1x32xf32> to vector<32xf32>
    %554 = vector.shape_cast %553 : vector<32xf32> to vector<1x32xf32>
    %555 = vector.broadcast %554 : vector<1x32xf32> to vector<32x32xf32>
    %556 = arith.addf %551, %555 : vector<32x32xf32>
    %cst_147 = arith.constant 0.000000e+00 : f32
    %557 = vector.broadcast %cst_147 : f32 to vector<32x32xf32>
    %558 = arith.maximumf %556, %557 : vector<32x32xf32>
    %559 = arith.truncf %558 : vector<32x32xf32> to vector<32x32xbf16>
    %560 = vector.extract_strided_slice %407 {offsets = [1, 0, 0], sizes = [1, 32, 32], strides = [1, 1, 1]} : vector<2x32x32xbf16> to vector<1x32x32xbf16>
    %561 = vector.shape_cast %560 : vector<1x32x32xbf16> to vector<32x32xbf16>
    %cst_148 = arith.constant dense<0.000000e+00> : vector<32x32xf32>
    %562 = tpu.matmul %559, %561, %cst_148 {dimension_numbers = #tpu.dot_dimension_numbers<[1], [0], [0], [1], [0, 0, 1, 1], [], []>} : vector<32x32xbf16>, vector<32x32xbf16>, vector<32x32xf32> -> vector<32x32xf32>
    %563 = vector.extract_strided_slice %403 {offsets = [6, 0], sizes = [1, 32], strides = [1, 1]} : vector<7x32xf32> to vector<1x32xf32>
    %564 = vector.shape_cast %563 : vector<1x32xf32> to vector<32xf32>
    %565 = vector.shape_cast %564 : vector<32xf32> to vector<1x32xf32>
    %566 = vector.broadcast %565 : vector<1x32xf32> to vector<32x32xf32>
    %567 = arith.addf %562, %566 : vector<32x32xf32>
    %568 = arith.addf %547, %567 : vector<32x32xf32>
    %569 = vector.extract_strided_slice %403 {offsets = [3, 0], sizes = [1, 32], strides = [1, 1]} : vector<7x32xf32> to vector<1x32xf32>
    %570 = vector.shape_cast %569 : vector<1x32xf32> to vector<32xf32>
    %571 = vector.extract_strided_slice %403 {offsets = [4, 0], sizes = [1, 32], strides = [1, 1]} : vector<7x32xf32> to vector<1x32xf32>
    %572 = vector.shape_cast %571 : vector<1x32xf32> to vector<32xf32>
    %cst_149 = arith.constant dense<0.000000e+00> : vector<32xf32>
    %573 = vector.multi_reduction <add>, %568, %cst_149 [1] : vector<32x32xf32> to vector<32xf32>
    %574 = vector.shape_cast %573 : vector<32xf32> to vector<32x1xf32>
    %cst_150 = arith.constant 3.200000e+01 : f32
    %575 = vector.broadcast %cst_150 : f32 to vector<32x1xf32>
    %576 = arith.divf %574, %575 : vector<32x1xf32>
    %577 = vector.broadcast %576 : vector<32x1xf32> to vector<32x32xf32>
    %578 = arith.subf %568, %577 : vector<32x32xf32>
    %579 = arith.mulf %578, %578 : vector<32x32xf32>
    %cst_151 = arith.constant dense<0.000000e+00> : vector<32xf32>
    %580 = vector.multi_reduction <add>, %579, %cst_151 [1] : vector<32x32xf32> to vector<32xf32>
    %581 = vector.shape_cast %580 : vector<32xf32> to vector<32x1xf32>
    %cst_152 = arith.constant 3.200000e+01 : f32
    %582 = vector.broadcast %cst_152 : f32 to vector<32x1xf32>
    %583 = arith.divf %581, %582 : vector<32x1xf32>
    %584 = vector.broadcast %576 : vector<32x1xf32> to vector<32x32xf32>
    %585 = arith.subf %568, %584 : vector<32x32xf32>
    %cst_153 = arith.constant 9.99999974E-6 : f32
    %586 = vector.broadcast %cst_153 : f32 to vector<32x1xf32>
    %587 = arith.addf %583, %586 : vector<32x1xf32>
    %588 = math.rsqrt %587 : vector<32x1xf32>
    %589 = vector.broadcast %588 : vector<32x1xf32> to vector<32x32xf32>
    %590 = arith.mulf %585, %589 : vector<32x32xf32>
    %591 = vector.shape_cast %570 : vector<32xf32> to vector<1x32xf32>
    %592 = vector.broadcast %591 : vector<1x32xf32> to vector<32x32xf32>
    %593 = arith.mulf %590, %592 : vector<32x32xf32>
    %594 = vector.shape_cast %572 : vector<32xf32> to vector<1x32xf32>
    %595 = vector.broadcast %594 : vector<1x32xf32> to vector<32x32xf32>
    %596 = arith.addf %593, %595 : vector<32x32xf32>
    %c0_154 = arith.constant 0 : index
    %c0_155 = arith.constant 0 : index
    %597 = vector.load %arg2[%c0_154, %c0_155] : memref<32x1xf32, #tpu.memory_space<vmem>>, vector<32x1xf32>
    %598 = vector.broadcast %597 : vector<32x1xf32> to vector<32x32xf32>
    %599 = arith.mulf %596, %598 : vector<32x32xf32>
    %600 = vector.shape_cast %599 : vector<32x32xf32> to vector<4x8x32xf32>
    %cst_156 = arith.constant dense<0.000000e+00> : vector<4x32xf32>
    %601 = vector.multi_reduction <add>, %600, %cst_156 [1] : vector<4x8x32xf32> to vector<4x32xf32>
    %cst_157 = arith.constant 0.000000e+00 : f32
    %602 = vector.broadcast %cst_157 : f32 to vector<4x32xf32>
    %603 = tpu.concatenate %601, %602 in 0 : vector<4x32xf32>, vector<4x32xf32> -> vector<8x32xf32>
    %c0_158 = arith.constant 0 : index
    %c0_159 = arith.constant 0 : index
    %c0_160 = arith.constant 0 : index
    %604 = vector.load %arg10[%c0_158, %c0_159, %c0_160] : memref<3x32x32xbf16, #tpu.memory_space<vmem>>, vector<3x32x32xbf16>
    %605 = arith.truncf %603 : vector<8x32xf32> to vector<8x32xbf16>
    %606 = vector.extract_strided_slice %604 {offsets = [0, 0, 0], sizes = [1, 32, 32], strides = [1, 1, 1]} : vector<3x32x32xbf16> to vector<1x32x32xbf16>
    %607 = vector.shape_cast %606 : vector<1x32x32xbf16> to vector<32x32xbf16>
    %cst_161 = arith.constant dense<0.000000e+00> : vector<8x32xf32>
    %608 = tpu.matmul %605, %607, %cst_161 {dimension_numbers = #tpu.dot_dimension_numbers<[1], [0], [0], [1], [0, 0, 1, 1], [], []>} : vector<8x32xbf16>, vector<32x32xbf16>, vector<8x32xf32> -> vector<8x32xf32>
    %609 = vector.extract_strided_slice %0 {offsets = [1, 0], sizes = [1, 32], strides = [1, 1]} : vector<6x32xf32> to vector<1x32xf32>
    %610 = vector.shape_cast %609 : vector<1x32xf32> to vector<32xf32>
    %611 = vector.shape_cast %610 : vector<32xf32> to vector<1x32xf32>
    %612 = vector.broadcast %611 : vector<1x32xf32> to vector<8x32xf32>
    %613 = arith.addf %608, %612 : vector<8x32xf32>
    %cst_162 = arith.constant 0.000000e+00 : f32
    %614 = vector.broadcast %cst_162 : f32 to vector<8x32xf32>
    %615 = arith.maximumf %613, %614 : vector<8x32xf32>
    %616 = arith.truncf %615 : vector<8x32xf32> to vector<8x32xbf16>
    %617 = vector.extract_strided_slice %604 {offsets = [1, 0, 0], sizes = [1, 32, 32], strides = [1, 1, 1]} : vector<3x32x32xbf16> to vector<1x32x32xbf16>
    %618 = vector.shape_cast %617 : vector<1x32x32xbf16> to vector<32x32xbf16>
    %cst_163 = arith.constant dense<0.000000e+00> : vector<8x32xf32>
    %619 = tpu.matmul %616, %618, %cst_163 {dimension_numbers = #tpu.dot_dimension_numbers<[1], [0], [0], [1], [0, 0, 1, 1], [], []>} : vector<8x32xbf16>, vector<32x32xbf16>, vector<8x32xf32> -> vector<8x32xf32>
    %620 = vector.extract_strided_slice %0 {offsets = [2, 0], sizes = [1, 32], strides = [1, 1]} : vector<6x32xf32> to vector<1x32xf32>
    %621 = vector.shape_cast %620 : vector<1x32xf32> to vector<32xf32>
    %622 = vector.shape_cast %621 : vector<32xf32> to vector<1x32xf32>
    %623 = vector.broadcast %622 : vector<1x32xf32> to vector<8x32xf32>
    %624 = arith.addf %619, %623 : vector<8x32xf32>
    %cst_164 = arith.constant 0.000000e+00 : f32
    %625 = vector.broadcast %cst_164 : f32 to vector<8x32xf32>
    %626 = arith.maximumf %624, %625 : vector<8x32xf32>
    %627 = arith.truncf %626 : vector<8x32xf32> to vector<8x32xbf16>
    %628 = vector.extract_strided_slice %604 {offsets = [2, 0, 0], sizes = [1, 32, 32], strides = [1, 1, 1]} : vector<3x32x32xbf16> to vector<1x32x32xbf16>
    %629 = vector.shape_cast %628 : vector<1x32x32xbf16> to vector<32x32xbf16>
    %cst_165 = arith.constant dense<0.000000e+00> : vector<8x32xf32>
    %630 = tpu.matmul %627, %629, %cst_165 {dimension_numbers = #tpu.dot_dimension_numbers<[1], [0], [0], [1], [0, 0, 1, 1], [], []>} : vector<8x32xbf16>, vector<32x32xbf16>, vector<8x32xf32> -> vector<8x32xf32>
    %631 = vector.extract_strided_slice %0 {offsets = [3, 0], sizes = [1, 32], strides = [1, 1]} : vector<6x32xf32> to vector<1x32xf32>
    %632 = vector.shape_cast %631 : vector<1x32xf32> to vector<32xf32>
    %633 = vector.shape_cast %632 : vector<32xf32> to vector<1x32xf32>
    %634 = vector.broadcast %633 : vector<1x32xf32> to vector<8x32xf32>
    %635 = arith.addf %630, %634 : vector<8x32xf32>
    %cst_166 = arith.constant 0.000000e+00 : f32
    %636 = vector.broadcast %cst_166 : f32 to vector<8x32xf32>
    %637 = arith.maximumf %635, %636 : vector<8x32xf32>
    %638 = vector.extract_strided_slice %0 {offsets = [4, 0], sizes = [1, 32], strides = [1, 1]} : vector<6x32xf32> to vector<1x32xf32>
    %639 = vector.shape_cast %638 : vector<1x32xf32> to vector<32xf32>
    %640 = vector.shape_cast %639 : vector<32xf32> to vector<1x32xf32>
    %641 = vector.broadcast %640 : vector<1x32xf32> to vector<8x32xf32>
    %642 = arith.mulf %637, %641 : vector<8x32xf32>
    %cst_167 = arith.constant dense<0.000000e+00> : vector<8xf32>
    %643 = vector.multi_reduction <add>, %642, %cst_167 [1] : vector<8x32xf32> to vector<8xf32>
    %644 = vector.shape_cast %643 : vector<8xf32> to vector<8x1xf32>
    %645 = vector.extract_strided_slice %0 {offsets = [5, 0], sizes = [1, 1], strides = [1, 1]} : vector<6x32xf32> to vector<1x1xf32>
    %646 = vector.broadcast %645 : vector<1x1xf32> to vector<8x1xf32>
    %647 = arith.addf %644, %646 : vector<8x1xf32>
    %648 = arith.negf %647 : vector<8x1xf32>
    %649 = math.exp %648 : vector<8x1xf32>
    %cst_168 = arith.constant 1.000000e+00 : f32
    %650 = vector.broadcast %cst_168 : f32 to vector<8x1xf32>
    %651 = arith.addf %650, %649 : vector<8x1xf32>
    %652 = arith.divf %650, %651 : vector<8x1xf32>
    %653 = vector.shape_cast %652 : vector<8x1xf32> to vector<8x1xf32>
    %654 = vector.broadcast %653 : vector<8x1xf32> to vector<8x128xf32>
    %c0_169 = arith.constant 0 : index
    %c0_170 = arith.constant 0 : index
    %c0_171 = arith.constant 0 : index
    %655 = vector.load %arg11[%c0_169, %c0_170, %c0_171] : memref<1x8x128xf32, #tpu.memory_space<vmem>>, vector<1x8x128xf32>
    %656 = vector.shape_cast %655 : vector<1x8x128xf32> to vector<8x128xf32>
    %657 = vector.shape_cast %654 : vector<8x128xf32> to vector<1x8x128xf32>
    tpu.vector_store %arg11[%c0_169, %c0_170, %c0_171], %657 {strides = array<i32>} : memref<1x8x128xf32, #tpu.memory_space<vmem>>, vector<1x8x128xf32>,
    return
  }
  func.func @transform_0(%arg0: i32) -> (i32, i32) {
    %c0_i32 = arith.constant 0 : i32
    %c0_i32_0 = arith.constant 0 : i32
    return %arg0, %c0_i32 : i32, i32
  }
  func.func @transform_1(%arg0: i32) -> (i32, i32) {
    %c0_i32 = arith.constant 0 : i32
    %c0_i32_0 = arith.constant 0 : i32
    return %arg0, %c0_i32 : i32, i32
  }
  func.func @transform_2(%arg0: i32) -> (i32, i32) {
    %c0_i32 = arith.constant 0 : i32
    %c0_i32_0 = arith.constant 0 : i32
    %c0_i32_1 = arith.constant 0 : i32
    return %c0_i32, %c0_i32_0 : i32, i32
  }
  func.func @transform_3(%arg0: i32) -> (i32, i32) {
    %c0_i32 = arith.constant 0 : i32
    %c0_i32_0 = arith.constant 0 : i32
    %c0_i32_1 = arith.constant 0 : i32
    return %c0_i32, %c0_i32_0 : i32, i32
  }
  func.func @transform_4(%arg0: i32) -> (i32, i32, i32) {
    %c0_i32 = arith.constant 0 : i32
    %c0_i32_0 = arith.constant 0 : i32
    %c0_i32_1 = arith.constant 0 : i32
    %c0_i32_2 = arith.constant 0 : i32
    return %c0_i32, %c0_i32_0, %c0_i32_1 : i32, i32, i32
  }
  func.func @transform_5(%arg0: i32) -> (i32, i32) {
    %c0_i32 = arith.constant 0 : i32
    %c0_i32_0 = arith.constant 0 : i32
    %c0_i32_1 = arith.constant 0 : i32
    return %c0_i32, %c0_i32_0 : i32, i32
  }
  func.func @transform_6(%arg0: i32) -> (i32, i32, i32, i32) {
    %c0_i32 = arith.constant 0 : i32
    %c0_i32_0 = arith.constant 0 : i32
    %c0_i32_1 = arith.constant 0 : i32
    %c0_i32_2 = arith.constant 0 : i32
    %c0_i32_3 = arith.constant 0 : i32
    return %c0_i32, %c0_i32_0, %c0_i32_1, %c0_i32_2 : i32, i32, i32, i32
  }
  func.func @transform_7(%arg0: i32) -> (i32, i32, i32, i32) {
    %c0_i32 = arith.constant 0 : i32
    %c0_i32_0 = arith.constant 0 : i32
    %c0_i32_1 = arith.constant 0 : i32
    %c0_i32_2 = arith.constant 0 : i32
    %c0_i32_3 = arith.constant 0 : i32
    return %c0_i32, %c0_i32_0, %c0_i32_1, %c0_i32_2 : i32, i32, i32, i32
  }
  func.func @transform_8(%arg0: i32) -> (i32, i32, i32) {
    %c0_i32 = arith.constant 0 : i32
    %c0_i32_0 = arith.constant 0 : i32
    %c0_i32_1 = arith.constant 0 : i32
    %c0_i32_2 = arith.constant 0 : i32
    return %c0_i32, %c0_i32_0, %c0_i32_1 : i32, i32, i32
  }
  func.func @transform_9(%arg0: i32) -> (i32, i32, i32) {
    %c0_i32 = arith.constant 0 : i32
    %c0_i32_0 = arith.constant 0 : i32
    %c0_i32_1 = arith.constant 0 : i32
    %c0_i32_2 = arith.constant 0 : i32
    return %c0_i32, %c0_i32_0, %c0_i32_1 : i32, i32, i32
  }
  func.func @transform_10(%arg0: i32) -> (i32, i32, i32) {
    %c0_i32 = arith.constant 0 : i32
    %c0_i32_0 = arith.constant 0 : i32
    %c0_i32_1 = arith.constant 0 : i32
    return %arg0, %c0_i32, %c0_i32_0 : i32, i32, i32
  }
}

</mosaic_0001>

<bundles_post_ra>
// kernel: tpu_custom_call.1
= control target key start
LH: loop header
LB: loop body
LE: loop exit
PB: predicated region body
PF: predicated region fallthrough
CT: control target
= control target key end

     0   :  { %15 = vsyncpa [#allocation3], 0  ;;  %s6688_s0 = inlined_call_operand.vmem [shape: f32[32,16], index: 0, kind: input, shape index: {}]   ;;  %s6689_s1 = inlined_call_operand.vmem [shape: f32[32,1], index: 1, kind: input, shape index: {}]   ;;  %s6690_s2 = inlined_call_operand.vmem [shape: bf16[16,32], index: 2, kind: input, shape index: {}]   ;;  %s6691_s3 = inlined_call_operand.hbm [shape: f32[6,32], index: 3, kind: input, shape index: {}]   ;;  %s6692_s4 = inlined_call_operand.vmem [shape: bf16[3,32,96], index: 4, kind: input, shape index: {}]   ;;  %s6693_s5 = inlined_call_operand.hbm [shape: f32[3,96], index: 5, kind: input, shape index: {}]   ;;  %s6694_s6 = inlined_call_operand.hbm [shape: bf16[3,4,8,32], index: 6, kind: input, shape index: {}]   ;;  %s6695_s7 = inlined_call_operand.hbm [shape: bf16[3,2,32,32], index: 7, kind: input, shape index: {}]   ;;  %s6696_s8 = inlined_call_operand.vmem [shape: f32[3,7,32], index: 8, kind: input, shape index: {}]   ;;  %s6697_s9 = inlined_call_operand.hbm [shape: bf16[3,32,32], index: 9, kind: input, shape index: {}]   ;;  %s6698_s10 = inlined_call_operand.hbm [shape: f32[1,8,128], index: 10, kind: output, shape index: {}]  }
   0x1   :  { %16 = vsyncpa [#allocation6], 0 }
   0x2   :  { %17 = vsyncpa [#allocation9], 0  ;;  %s43_s15 = sshll.u32 %s6693_s5, 4  ;;  %s44_s15 = int_to_ptr.hbm [resolvable:$true] %s43_s15 }
   0x3   :  { %18 = vsyncpa [#allocation4], 0  ;;  %s5396_s16 = smov [#allocation5]   ;;  %s66_s20 = sshll.u32 %s6695_s7, 4  ;;  %s67_s20 = int_to_ptr.hbm [resolvable:$true] %s66_s20 }
   0x4   :  { %s45_s17 = sshll.u32 %s5396_s16, 4  ;;  %s5397_s21 = smov [#allocation8]   ;;  %s46_s17 = int_to_ptr.vmem [resolvable:$true] %s45_s17 }
   0x5   :  { %48 = dma.hbm_to_vmem [thread:$0]  %s44_s15, 64, %s46_s17, [#allocation6]  }
   0x6   :  { %s68_s22 = sshll.u32 %s5397_s21, 4  ;;  %s30_s25 = sshll.u32 %s6691_s3, 4  ;;  %s69_s22 = int_to_ptr.vmem [resolvable:$true] %s68_s22  ;;  %s31_s25 = int_to_ptr.hbm [resolvable:$true] %s30_s25 }
   0x7   :  { %s5398_s5 = smov 64   ;;  %s5399_s26 = smov 4  }
   0x8   :  { %74 = dma.hbm_to_vmem [thread:$0]  %s67_s20, 1536, %s69_s22, [#allocation9], %s5398_s5, %s5398_s5, %s5399_s26  }
   0x9   :  { %s53_s29 = sshll.u32 %s6694_s6, 4  ;;  %s5400_s30 = smov [#allocation2]   ;;  %s54_s29 = int_to_ptr.hbm [resolvable:$true] %s53_s29 }
   0xa   :  { %s32_s7 = sshll.u32 %s5400_s30, 4  ;;  %s5401_s11 = smov [#allocation7]   ;;  %s33_s7 = int_to_ptr.vmem [resolvable:$true] %s32_s7 }
   0xb   :  { %35 = dma.hbm_to_vmem [thread:$0]  %s31_s25, 128, %s33_s7, [#allocation3]  }
   0xc   :  { %s55_s12 = sshll.u32 %s5401_s11, 4  ;;  %s81_s14 = sshll.u32 %s6697_s9, 4  ;;  %s56_s12 = int_to_ptr.vmem [resolvable:$true] %s55_s12  ;;  %s82_s14 = int_to_ptr.hbm [resolvable:$true] %s81_s14 }
   0xd   :  { %61 = dma.hbm_to_vmem [thread:$0]  %s54_s29, 768, %s56_s12, [#allocation6], %s5398_s5, %s5398_s5, %s5399_s26  }
   0xe   :  { %s5402_s15 = smov [#allocation10]  }
   0xf   :  { %s83_s16 = sshll.u32 %s5402_s15, 4  ;;  %s84_s16 = int_to_ptr.vmem [resolvable:$true] %s83_s16 }
  0x10   :  { %89 = dma.hbm_to_vmem [thread:$0]  %s82_s14, 768, %s84_s16, [#allocation9], %s5398_s5, %s5398_s5, %s5399_s26  }
  0x11   :  { %5388 = dma.done.wait [#allocation3], 128  }
  0x12   :  { %5389 = vsyncadd [#allocation3], 4294967168 }
  0x13   :  { %5390 = dma.done.wait [#allocation6], 832  }
  0x14   :  { %5391 = vsyncadd [#allocation6], 4294966464 }
  0x15   :  { %5392 = dma.done.wait [#allocation9], 2304  }
  0x16   :  { %5393 = vsyncadd [#allocation9], 4294964992  ;;  %v4946_v0 = vld [vmem:[%s6690_s2] sm:$0xff]  ;;  %v113_v2 = vld [vmem:[%s6688_s0 + $0x8] sm:$0xff]  ;;  %vm127_vm0 = vcmask 130048   ;;  %vm190_vm1 = vcmask 261120  }
  0x17   :  { %v112_v1 = vld [vmem:[%s6688_s0] sm:$0xff]  ;;  %141 = vmatpush.bf16.msra.mxu0 %v4946_v0  ;;  %v114_v4 = vld [vmem:[%s6688_s0 + $0x10] sm:$0xff]  ;;  %v115_v5 = vld [vmem:[%s6688_s0 + $0x18] sm:$0xff]  ;;  %s5403_s0 = smov 96   ;;  %vm225_vm2 = vcmask 64512   ;;  %vm370_vm3 = vcmask 1043456  }
  0x18   :  { %v116_v3 = vpack.c.bf16 %v113_v2, %v112_v1  ;;  %v117_v6 = vpack.c.bf16 %v115_v5, %v114_v4  ;;  %v4952_v7 = vld [vmem:[%s6692_s4 + $0x8] sm:$0xff]  ;;  %v4951_v8 = vld [vmem:[%s6692_s4] sm:$0xff]  ;;  %s5404_s28 = smov 88   ;;  %s5405_s29 = smov 120  }
  0x19   :  { %203 = vmatpush.bf16.msra.mxu1 %v4952_v7  ;;  %v111_v9 = vld [vmem:[#allocation2] sm:$0x3f]  ;;  %v4994_v25 = vld [vmem:[#allocation5] ss:$0 sm:$0xff]  ;;  %s5406_s30 = smov 80   ;;  %s5407_s7 = smov 112  }
  0x1a   :  { %4696 = vmatmul.msk.bf16.vlgmr.msra.gmra.mxu0 %vm127_vm0, %v116_v3  ;;  %v120_v11 = vperm.slane %v111_v9, 0  ;;  %s5408_s11 = smov 56   ;;  %s5409_s12 = smov 48  }
  0x1b   :  { %s5410_s13 = smov 104   ;;  %s5411_s3 = smov 72  }
  0x1c   :  { %s5412_s14 = smov 40  }
  0x1d   :  { %204 = vmatpush.bf16.msra.mxu1 %v4951_v8 }
  0x2a   :  { %4697 = vmatmul.msk.bf16.gmra.mxu0 %vm127_vm0, %v117_v6 }
  0x97   :  { %v143_v10 = vpop.f32.mrf.mxu0 }
  0x98   :  { %v5513_v12 = vadd.f32 %v143_v10, %v120_v11 }
  0x9a   :  { %v153_v15 = vmax.f32 %v5513_v12, 0.0 }
  0x9f   :  { %v145_v13 = vpop.f32.mrf.mxu0 }
  0xa0   :  { %v5515_v14 = vadd.f32 %v145_v13, %v120_v11 }
  0xa2   :  { %v154_v16 = vmax.f32 %v5515_v14, 0.0 }
  0xa4   :  { %v170_v17 = vpack.c.bf16 %v154_v16, %v153_v15 }
  0xa6   :  { %4706 = vmatmul.msk.bf16.vlgmr.msra.gmra.mxu1 %vm190_vm1, %v170_v17 }
  0xa7   :  { %v148_v18 = vpop.f32.mrf.mxu0 }
  0xa8   :  { %v5524_v19 = vadd.f32 %v148_v18, %v120_v11 }
  0xaa   :  { %v155_v22 = vmax.f32 %v5524_v19, 0.0 }
  0xaf   :  { %v150_v20 = vpop.f32.mrf.mxu0 }
  0xb0   :  { %v5526_v21 = vadd.f32 %v150_v20, %v120_v11 }
  0xb2   :  { %v156_v23 = vmax.f32 %v5526_v21, 0.0 }
  0xb4   :  { %v171_v24 = vpack.c.bf16 %v156_v23, %v155_v22 }
  0xb6   :  { %4707 = vmatmul.msk.bf16.gmra.mxu1 %vm190_vm1, %v171_v24 }
 0x123   :  { %v206_v26 = vpop.f32.mrf.mxu1 }
 0x124   :  { %v207_v27 = vadd.f32 %v4994_v25, %v206_v26 }
 0x126   :  { %v216_v28 = vpack.c.bf16 %v207_v27, %v207_v27 }
 0x128   :  { %v221_v29 = vunpack.c.l.b16 %v216_v28 }
 0x12a   :  { %v5535_v30 = vpack.c.b16 %v221_v29, %v221_v29 }
 0x12b   :  { %v208_v31 = vpop.f32.mrf.mxu1 }
 0x12c   :  { %v209_v32 = vadd.f32 %v4994_v25, %v208_v31  ;;  %223 = vrot.lane.b32.xlu0 %v5535_v30, %s5403_s0 }
 0x12e   :  { %v217_v33 = vpack.c.bf16 %v209_v32, %v209_v32 }
 0x130   :  { %v246_v34 = vunpack.c.l.b16 %v217_v33 }
 0x132   :  { %v5539_v35 = vpack.c.b16 %v246_v34, %v246_v34 }
 0x133   :  { %v211_v36 = vpop.f32.mrf.mxu1 }
 0x134   :  { %v212_v37 = vadd.f32 %v4994_v25, %v211_v36  ;;  %248 = vrot.lane.b32.xlu1 %v5539_v35, %s5403_s0 }
 0x136   :  { %v218_v38 = vpack.c.bf16 %v212_v37, %v212_v37 }
 0x138   :  { %v270_v39 = vunpack.c.l.b16 %v218_v38 }
 0x13a   :  { %v5543_v40 = vpack.c.b16 %v270_v39, %v270_v39 }
 0x13b   :  { %v213_v41 = vpop.f32.mrf.mxu1 }
 0x13c   :  { %v214_v42 = vadd.f32 %v4994_v25, %v213_v41  ;;  %272 = vrot.lane.b32.xlu0 %v5543_v40, %s5403_s0 }
 0x13e   :  { %v219_v43 = vpack.c.bf16 %v214_v42, %v214_v42 }
 0x140   :  { %v294_v44 = vunpack.c.l.b16 %v219_v43 }
 0x142   :  { %v5547_v45 = vpack.c.b16 %v294_v44, %v294_v44 }
 0x144   :  { %296 = vrot.lane.b32.xlu1 %v5547_v45, %s5403_s0 }
 0x14c   :  { %408 = vrot.lane.b32.xlu1 %v5543_v40, %s5398_s5 }
 0x19e   :  { %v224_v46 = vpop.permute.xlu0 %223 }
 0x19f   :  { %v230_v47 = vsel %vm225_vm2, %v224_v46, 0 }
 0x1a0   :  { %239 = vmatpush.bf16.xpose.msra.mxu2 %v230_v47 }
 0x1a6   :  { %v249_v48 = vpop.permute.xlu1 %248 }
 0x1a7   :  { %4708 = vmatmul.msk.bf16.vlgmr.msra.gmra.mxu2 %vm225_vm2, %v216_v28  ;;  %v254_v49 = vsel %vm225_vm2, %v249_v48, 0 }
 0x1a8   :  { %263 = vmatpush.bf16.xpose.msra.mxu3 %v254_v49 }
 0x1ae   :  { %v273_v50 = vpop.permute.xlu0 %272 }
 0x1af   :  { %4709 = vmatmul.msk.bf16.vlgmr.msra.gmra.mxu3 %vm225_vm2, %v217_v33  ;;  %v278_v51 = vsel %vm225_vm2, %v273_v50, 0 }
 0x1b0   :  { %287 = vmatpush.bf16.xpose.msrb.mxu2 %v278_v51 }
 0x1b6   :  { %v297_v52 = vpop.permute.xlu1 %296 }
 0x1b7   :  { %4710 = vmatmul.msk.bf16.vlgmr.msrb.gmra.mxu2 %vm225_vm2, %v218_v38  ;;  %v302_v53 = vsel %vm225_vm2, %v297_v52, 0 }
 0x1b8   :  { %311 = vmatpush.bf16.xpose.msrb.mxu3 %v302_v53 }
 0x1be   :  { %v409_v54 = vpop.permute.xlu1 %408 }
 0x1bf   :  { %v414_v55 = vsel %vm370_vm3, %v409_v54, 0  ;;  %4711 = vmatmul.msk.bf16.vlgmr.msrb.gmra.mxu3 %vm225_vm2, %v219_v43 }
 0x1c0   :  { %423 = vmatpush.bf16.msra.mxu2 %v414_v55 }
 0x22a   :  { %v241_v56 = vpop.f32.mrf.mxu2 }
 0x22b   :  { %v317_v2 = vsel %vm225_vm2, %v241_v56, -inf }
 0x232   :  { %v243_v57 = vpop.f32.mrf.mxu2  ;;  %v5562_v58 = vpop.f32.mrf.mxu3 }
 0x233   :  { %v320_v24 = vsel %vm225_vm2, %v5562_v58, -inf }
 0x23a   :  { %v267_v59 = vpop.f32.mrf.mxu3  ;;  %v289_v60 = vpop.f32.mrf.mxu2 }
 0x23b   :  { %v323_v61 = vsel %vm225_vm2, %v289_v60, -inf }
 0x23c   :  { %324 = vmax.xlane.f32.xlu2 %v323_v61 }
 0x242   :  { %v291_v62 = vpop.f32.mrf.mxu2  ;;  %v313_v63 = vpop.f32.mrf.mxu3 }
 0x243   :  { %v326_v0 = vsel %vm225_vm2, %v313_v63, -inf }
 0x244   :  { %327 = vmax.xlane.f32.xlu2 %v326_v0 }
 0x24a   :  { %v315_v1 = vpop.f32.mrf.mxu3 }
 0x25c   :  { %502 = vrot.lane.b32.xlu2 %v5543_v40, %s5404_s28 }
 0x264   :  { %500 = vrot.lane.b32.xlu2 %v5543_v40, %s5405_s29 }
 0x26c   :  { %429 = vrot.lane.b32.xlu2 %v5547_v45, %s5398_s5 }
 0x274   :  { %525 = vrot.lane.b32.xlu2 %v5547_v45, %s5404_s28 }
 0x29d   :  { %318 = vmax.xlane.f32.xlu2 %v317_v2 }
 0x2af   :  { %v325_v3 = vpop.xlane.xlu2 %324 }
 0x2b0   :  { %v331_v4 = vsub.f32 %v289_v60, %v325_v3 }
 0x2b2   :  { %v337_v5 = vmul.f32 1.442695, %v331_v4 }
 0x2b4   :  { %4997 = vpow2.f32 %v337_v5 }
 0x2b5   :  { %387 = vrot.lane.b32.xlu2 %v5539_v35, %s5398_s5 }
 0x2b7   :  { %v328_v6 = vpop.xlane.xlu2 %327 }
 0x2b8   :  { %v332_v7 = vsub.f32 %v313_v63, %v328_v6 }
 0x2ba   :  { %v4998_v8 = vpop.eup %4997  ;;  %v339_v9 = vmul.f32 1.442695, %v332_v7 }
 0x2bb   :  { %v347_v10 = vsel %vm225_vm2, %v4998_v8, 0.0 }
 0x2bc   :  { %4999 = vpow2.f32 %v339_v9  ;;  %348 = vadd.xlane.f32.xlu0 %v347_v10 }
 0x2bd   :  { %454 = vrot.lane.b32.xlu2 %v5535_v30, %s5405_s29 }
 0x2bf   :  { %v503_v11 = vpop.permute.xlu2 %502 }
 0x2c0   :  { %v508_v13 = vsel %vm225_vm2, %v503_v11, 0 }
 0x2c1   :  { %517 = vmatpush.bf16.xpose.msrb.mxu2 %v508_v13 }
 0x2c2   :  { %v5000_v17 = vpop.eup %4999 }
 0x2c3   :  { %v350_v18 = vsel %vm225_vm2, %v5000_v17, 0.0 }
 0x2c4   :  { %351 = vadd.xlane.f32.xlu1 %v350_v18 }
 0x2c7   :  { %v501_v20 = vpop.permute.xlu2 %500 }
 0x2cc   :  { %321 = vmax.xlane.f32.xlu1 %v320_v24 }
 0x2cf   :  { %v430_v25 = vpop.permute.xlu2 %429 }
 0x2d0   :  { %v435_v26 = vsel %vm370_vm3, %v430_v25, 0  ;;  %523 = vrot.lane.b32.xlu0 %v5547_v45, %s5405_s29 }
 0x2d1   :  { %444 = vmatpush.bf16.msra.mxu3 %v435_v26 }
 0x2d7   :  { %v526_v27 = vpop.permute.xlu2 %525 }
 0x2d8   :  { %v531_v28 = vsel %vm225_vm2, %v526_v27, 0 }
 0x2d9   :  { %540 = vmatpush.bf16.xpose.msrb.mxu3 %v531_v28 }
 0x310   :  { %v319_v29 = vpop.xlane.xlu2 %318 }
 0x311   :  { %v329_v31 = vsub.f32 %v241_v56, %v319_v29 }
 0x313   :  { %v333_v32 = vmul.f32 1.442695, %v329_v31 }
 0x315   :  { %5001 = vpow2.f32 %v333_v32 }
 0x318   :  { %v388_v33 = vpop.permute.xlu2 %387 }
 0x319   :  { %v393_v34 = vsel %vm370_vm3, %v388_v33, 0 }
 0x31a   :  { %402 = vmatpush.bf16.msrb.mxu1 %v393_v34 }
 0x31b   :  { %v5589_v36 = vpop.eup %5001 }
 0x31c   :  { %v341_v37 = vsel %vm225_vm2, %v5589_v36, 0.0 }
 0x31d   :  { %342 = vadd.xlane.f32.xlu0 %v341_v37 }
 0x32f   :  { %v349_v38 = vpop.xlane.xlu0 %348 }
 0x330   :  { %5003 = vrcp.f32 %v349_v38 }
 0x331   :  { %456 = vrot.lane.b32.xlu0 %v5535_v30, %s5404_s28 }
 0x336   :  { %v5004_v39 = vpop.eup %5003 }
 0x337   :  { %v359_v41 = vmul.f32 %v5004_v39, %v4998_v8  ;;  %v352_v42 = vpop.xlane.xlu1 %351 }
 0x338   :  { %5005 = vrcp.f32 %v352_v42 }
 0x339   :  { %v363_v43 = vpack.c.bf16 %v359_v41, %v359_v41  ;;  %760 = vrot.lane.b32.xlu0 %v5535_v30, %s5406_s30 }
 0x33b   :  { %4714 = vmatmul.msk.bf16.vlgmr.msra.gmra.mxu2 %vm225_vm2, %v363_v43 }
 0x33e   :  { %v5006_v44 = vpop.eup %5005 }
 0x33f   :  { %v360_v46 = vmul.f32 %v5006_v44, %v5000_v17  ;;  %v322_v47 = vpop.xlane.xlu1 %321 }
 0x340   :  { %v330_v48 = vsub.f32 %v5562_v58, %v322_v47 }
 0x341   :  { %v364_v49 = vpack.c.bf16 %v360_v46, %v360_v46  ;;  %758 = vrot.lane.b32.xlu0 %v5535_v30, %s5407_s7 }
 0x342   :  { %v335_v50 = vmul.f32 1.442695, %v330_v48  ;;  %v524_v53 = vpop.permute.xlu0 %523 }
 0x343   :  { %4715 = vmatmul.msk.bf16.vlgmr.msra.gmra.mxu3 %vm225_vm2, %v364_v49 }
 0x344   :  { %5007 = vpow2.f32 %v335_v50 }
 0x349   :  { %657 = vrot.lane.b32.xlu0 %v5547_v45, %s5408_s11 }
 0x34a   :  { %v5008_v51 = vpop.eup %5007 }
 0x34b   :  { %4718 = vmatmul.msk.bf16.vlgmr.msrb.gmra.mxu2 %vm225_vm2, %v501_v20  ;;  %v344_v52 = vsel %vm225_vm2, %v5008_v51, 0.0 }
 0x34c   :  { %345 = vadd.xlane.f32.xlu1 %v344_v52 }
 0x351   :  { %806 = vrot.lane.b32.xlu0 %v5543_v40, %s5406_s30 }
 0x353   :  { %4719 = vmatmul.msk.bf16.vlgmr.msrb.gmra.mxu3 %vm225_vm2, %v524_v53 }
 0x359   :  { %783 = vrot.lane.b32.xlu0 %v5539_v35, %s5406_s30 }
 0x361   :  { %781 = vrot.lane.b32.xlu0 %v5539_v35, %s5407_s7 }
 0x365   :  { %365 = vrot.lane.b32.xlu1 %v5535_v30, %s5398_s5 }
 0x369   :  { %829 = vrot.lane.b32.xlu0 %v5547_v45, %s5406_s30 }
 0x36d   :  { %479 = vrot.lane.b32.xlu1 %v5539_v35, %s5404_s28 }
 0x375   :  { %477 = vrot.lane.b32.xlu1 %v5539_v35, %s5405_s29 }
 0x390   :  { %v343_v54 = vpop.xlane.xlu0 %342 }
 0x3a3   :  { %v457_v55 = vpop.permute.xlu0 %456 }
 0x3a4   :  { %v462_v29 = vsel %vm225_vm2, %v457_v55, 0 }
 0x3ab   :  { %v5621_v56 = vpop.permute.xlu0 %760 }
 0x3b3   :  { %v5623_v57 = vpop.permute.xlu0 %758 }
 0x3bb   :  { %v658_v58 = vpop.permute.xlu0 %657 }
 0x3bc   :  { %v663_v59 = vsel %vm370_vm3, %v658_v58, 0 }
 0x3bd   :  { %672 = vmatpush.bf16.msra.mxu3 %v663_v59 }
 0x3be   :  { %v425_v60 = vpop.f32.mrf.mxu2 }
 0x3bf   :  { %v346_v61 = vpop.xlane.xlu1 %345  ;;  %v452_v63 = vpack.c.bf16 %v425_v60, %v425_v60 }
 0x3c0   :  { %5009 = vrcp.f32 %v346_v61 }
 0x3c1   :  { %v5628_v5 = vunpack.c.l.b16 %v452_v63  ;;  %5011 = vrcp.f32 %v343_v54 }
 0x3c3   :  { %v5626_v62 = vpop.permute.xlu0 %806 }
 0x3c6   :  { %v5010_v0 = vpop.eup %5009  ;;  %v427_v1 = vpop.f32.mrf.mxu2 }
 0x3c7   :  { %v446_v2 = vpop.f32.mrf.mxu3  ;;  %v358_v4 = vmul.f32 %v5010_v0, %v5008_v51  ;;  %v5012_v18 = vpop.eup %5011  ;;  %v766_v0 = vsel %vm225_vm2, %v5621_v56, 0 }
 0x3c8   :  { %v453_v3 = vpack.c.bf16 %v446_v2, %v446_v2  ;;  %v357_v25 = vmul.f32 %v5012_v18, %v5589_v36  ;;  %v455_v36 = vpop.permute.xlu2 %454 }
 0x3c9   :  { %v362_v7 = vpack.c.bf16 %v358_v4, %v358_v4 }
 0x3ca   :  { %v5630_v6 = vunpack.c.l.b16 %v453_v3  ;;  %v361_v31 = vpack.c.bf16 %v357_v25, %v357_v25 }
 0x3cb   :  { %v784_v9 = vpop.permute.xlu0 %783  ;;  %4713 = vmatmul.msk.bf16.vlgmr.msrb.gmra.mxu1 %vm225_vm2, %v362_v7 }
 0x3cc   :  { %v729_v8 = vpack.c.b16 %v5630_v6, %v5628_v5  ;;  %v789_v10 = vsel %vm225_vm2, %v784_v9, 0 }
 0x3cd   :  { %798 = vmatpush.bf16.xpose.msrb.mxu3 %v789_v10 }
 0x3ce   :  { %v519_v13 = vpop.f32.mrf.mxu2 }
 0x3cf   :  { %v448_v11 = vpop.f32.mrf.mxu3  ;;  %v552_v17 = vsel %vm225_vm2, %v519_v13, -inf }
 0x3d0   :  { %553 = vmax.xlane.f32.xlu1 %v552_v17 }
 0x3d3   :  { %v782_v11 = vpop.permute.xlu0 %781 }
 0x3d6   :  { %v521_v20 = vpop.f32.mrf.mxu2 }
 0x3d7   :  { %v542_v24 = vpop.f32.mrf.mxu3  ;;  %v366_v26 = vpop.permute.xlu1 %365  ;;  %v812_v20 = vsel %vm225_vm2, %v5626_v62, 0 }
 0x3d8   :  { %v555_v27 = vsel %vm225_vm2, %v542_v24, -inf  ;;  %v372_v28 = vsel %vm370_vm3, %v366_v26, 0 }
 0x3d9   :  { %556 = vmax.xlane.f32.xlu1 %v555_v27  ;;  %381 = vmatpush.bf16.msrb.mxu0 %v372_v28 }
 0x3db   :  { %v830_v26 = vpop.permute.xlu0 %829 }
 0x3dc   :  { %4712 = vmatmul.msk.bf16.vlgmr.msrb.gmra.mxu0 %vm225_vm2, %v361_v31  ;;  %v835_v28 = vsel %vm225_vm2, %v830_v26, 0 }
 0x3dd   :  { %471 = vmatpush.bf16.xpose.msra.mxu0 %v462_v29 }
 0x3df   :  { %v544_v32 = vpop.f32.mrf.mxu3  ;;  %v480_v33 = vpop.permute.xlu1 %479 }
 0x3e0   :  { %v485_v34 = vsel %vm225_vm2, %v480_v33, 0 }
 0x3e1   :  { %494 = vmatpush.bf16.xpose.msra.mxu1 %v485_v34 }
 0x3e7   :  { %v478_v37 = vpop.permute.xlu1 %477 }
 0x3e8   :  { %4717 = vmatmul.msk.bf16.vlgmr.msra.gmra.mxu1 %vm225_vm2, %v478_v37 }
 0x3ec   :  { %4716 = vmatmul.msk.bf16.vlgmr.msra.gmra.mxu0 %vm225_vm2, %v455_v36 }
 0x3f2   :  { %636 = vrot.lane.b32.xlu1 %v5543_v40, %s5408_s11 }
 0x443   :  { %v554_v38 = vpop.xlane.xlu1 %553 }
 0x444   :  { %v560_v39 = vsub.f32 %v519_v13, %v554_v38 }
 0x446   :  { %v566_v41 = vmul.f32 1.442695, %v560_v39 }
 0x448   :  { %5013 = vpow2.f32 %v566_v41  ;;  %v404_v42 = vpop.f32.mrf.mxu1 }
 0x449   :  { %v451_v52 = vpack.c.bf16 %v404_v42, %v404_v42 }
 0x44b   :  { %v5649_v55 = vunpack.c.l.b16 %v451_v52 }
 0x44c   :  { %v557_v43 = vpop.xlane.xlu1 %556 }
 0x44d   :  { %v561_v44 = vsub.f32 %v542_v24, %v557_v43 }
 0x44e   :  { %v5014_v46 = vpop.eup %5013 }
 0x44f   :  { %v568_v47 = vmul.f32 1.442695, %v561_v44  ;;  %v576_v48 = vsel %vm225_vm2, %v5014_v46, 0.0 }
 0x450   :  { %v406_v49 = vpop.f32.mrf.mxu1  ;;  %577 = vadd.xlane.f32.xlu2 %v576_v48 }
 0x451   :  { %5015 = vpow2.f32 %v568_v47 }
 0x457   :  { %v5016_v50 = vpop.eup %5015 }
 0x458   :  { %v579_v51 = vsel %vm225_vm2, %v5016_v50, 0.0 }
 0x459   :  { %580 = vadd.xlane.f32.xlu1 %v579_v51  ;;  %v383_v53 = vpop.f32.mrf.mxu0 }
 0x45a   :  { %v450_v54 = vpack.c.bf16 %v383_v53, %v383_v53 }
 0x45c   :  { %v5651_v58 = vunpack.c.l.b16 %v450_v54 }
 0x45e   :  { %v728_v59 = vpack.c.b16 %v5649_v55, %v5651_v58 }
 0x461   :  { %v385_v60 = vpop.f32.mrf.mxu0 }
 0x464   :  { %v637_v61 = vpop.permute.xlu1 %636 }
 0x465   :  { %v642_v63 = vsel %vm370_vm3, %v637_v61, 0  ;;  %v496_v1 = vpop.f32.mrf.mxu1 }
 0x466   :  { %651 = vmatpush.bf16.msra.mxu2 %v642_v63  ;;  %v549_v9 = vsel %vm225_vm2, %v496_v1, -inf }
 0x468   :  { %804 = vrot.lane.b32.xlu2 %v5543_v40, %s5407_s7 }
 0x469   :  { %v473_v2 = vpop.f32.mrf.mxu0 }
 0x46a   :  { %775 = vmatpush.bf16.xpose.msrb.mxu2 %v766_v0  ;;  %v546_v3 = vsel %vm225_vm2, %v473_v2, -inf }
 0x46b   :  { %547 = vmax.xlane.f32.xlu0 %v546_v3 }
 0x46d   :  { %v498_v4 = vpop.f32.mrf.mxu1 }
 0x471   :  { %v475_v7 = vpop.f32.mrf.mxu0 }
 0x472   :  { %827 = vrot.lane.b32.xlu1 %v5547_v45, %s5407_s7 }
 0x491   :  { %550 = vmax.xlane.f32.xlu2 %v549_v9 }
 0x4a9   :  { %615 = vrot.lane.b32.xlu2 %v5539_v35, %s5408_s11 }
 0x4b1   :  { %940 = vrot.lane.b32.xlu2 %v5543_v40, %s5409_s12 }
 0x4c3   :  { %v578_v56 = vpop.xlane.xlu2 %577 }
 0x4c4   :  { %5017 = vrcp.f32 %v578_v56 }
 0x4ca   :  { %v5018_v10 = vpop.eup %5017 }
 0x4cb   :  { %v588_v13 = vmul.f32 %v5018_v10, %v5014_v46  ;;  %v805_v34 = vpop.permute.xlu2 %804 }
 0x4cc   :  { %v581_v17 = vpop.xlane.xlu1 %580 }
 0x4cd   :  { %5019 = vrcp.f32 %v581_v17  ;;  %v592_v18 = vpack.c.bf16 %v588_v13, %v588_v13 }
 0x4cf   :  { %4722 = vmatmul.msk.bf16.vlgmr.msra.gmra.mxu2 %vm225_vm2, %v592_v18 }
 0x4d0   :  { %821 = vmatpush.bf16.xpose.msra.mxu2 %v812_v20 }
 0x4d3   :  { %v5020_v24 = vpop.eup %5019 }
 0x4d4   :  { %v589_v25 = vmul.f32 %v5020_v24, %v5016_v50 }
 0x4d6   :  { %v593_v27 = vpack.c.bf16 %v589_v25, %v589_v25 }
 0x4d8   :  { %4723 = vmatmul.msk.bf16.vlgmr.msra.gmra.mxu3 %vm225_vm2, %v593_v27 }
 0x4d9   :  { %844 = vmatpush.bf16.xpose.msra.mxu3 %v835_v28 }
 0x4de   :  { %v548_v29 = vpop.xlane.xlu0 %547 }
 0x4df   :  { %v558_v31 = vsub.f32 %v473_v2, %v548_v29  ;;  %4728 = vmatmul.msk.bf16.vlgmr.msrb.gmra.mxu2 %vm225_vm2, %v5623_v57  ;;  %v158_v2 = vld [vmem:[#allocation7] sm:$0xf] }
 0x4e0   :  { %v737_v3 = vsel %vm370_vm3, %v158_v2, 0 }
 0x4e1   :  { %v562_v32 = vmul.f32 1.442695, %v558_v31 }
 0x4e3   :  { %5021 = vpow2.f32 %v562_v32 }
 0x4e4   :  { %v828_v37 = vpop.permute.xlu1 %827 }
 0x4e8   :  { %4729 = vmatmul.msk.bf16.vlgmr.msrb.gmra.mxu3 %vm225_vm2, %v782_v11 }
 0x4e9   :  { %v5676_v62 = vpop.eup %5021 }
 0x4ea   :  { %v570_v33 = vsel %vm225_vm2, %v5676_v62, 0.0 }
 0x4eb   :  { %571 = vadd.xlane.f32.xlu1 %v570_v33 }
 0x4ef   :  { %4730 = vmatmul.msk.bf16.vlgmr.msra.gmra.mxu2 %vm225_vm2, %v805_v34 }
 0x4f8   :  { %4731 = vmatmul.msk.bf16.vlgmr.msra.gmra.mxu3 %vm225_vm2, %v828_v37 }
 0x504   :  { %v551_v36 = vpop.xlane.xlu2 %550  ;;  %919 = vrot.lane.b32.xlu1 %v5539_v35, %s5409_s12 }
 0x505   :  { %v559_v57 = vsub.f32 %v496_v1, %v551_v36 }
 0x507   :  { %v564_v38 = vmul.f32 1.442695, %v559_v57 }
 0x509   :  { %5023 = vpow2.f32 %v564_v38 }
 0x50c   :  { %v616_v39 = vpop.permute.xlu2 %615 }
 0x50d   :  { %v621_v41 = vsel %vm370_vm3, %v616_v39, 0 }
 0x50e   :  { %630 = vmatpush.bf16.msrb.mxu1 %v621_v41 }
 0x50f   :  { %v5024_v42 = vpop.eup %5023 }
 0x510   :  { %v573_v43 = vsel %vm225_vm2, %v5024_v42, 0.0 }
 0x511   :  { %574 = vadd.xlane.f32.xlu0 %v573_v43 }
 0x512   :  { %746 = vmatpush.bf16.msra.mxu1 %v737_v3 }
 0x514   :  { %v941_v44 = vpop.permute.xlu2 %940 }
 0x515   :  { %v946_v46 = vsel %vm370_vm3, %v941_v44, 0 }
 0x516   :  { %955 = vmatpush.bf16.msrb.mxu2 %v946_v46 }
 0x525   :  { %594 = vrot.lane.b32.xlu0 %v5535_v30, %s5408_s11 }
 0x52d   :  { %1051 = vrot.lane.b32.xlu0 %v5539_v35, %s5410_s13 }
 0x552   :  { %v653_v47 = vpop.f32.mrf.mxu2 }
 0x553   :  { %v680_v48 = vpack.c.bf16 %v653_v47, %v653_v47 }
 0x555   :  { %v5691_v52 = vunpack.c.l.b16 %v680_v48 }
 0x55a   :  { %v655_v49 = vpop.f32.mrf.mxu2 }
 0x55b   :  { %v674_v50 = vpop.f32.mrf.mxu3 }
 0x55c   :  { %v681_v51 = vpack.c.bf16 %v674_v50, %v674_v50 }
 0x55e   :  { %v5693_v53 = vunpack.c.l.b16 %v681_v51  ;;  %v572_v17 = vpop.xlane.xlu1 %571 }
 0x560   :  { %v691_v54 = vpack.c.b16 %v5693_v53, %v5691_v52 }
 0x562   :  { %v5697_v61 = vpop.f32.mrf.mxu2 }
 0x563   :  { %v676_v60 = vpop.f32.mrf.mxu3 }
 0x56a   :  { %v779_v63 = vpop.f32.mrf.mxu2 }
 0x56b   :  { %v800_v0 = vpop.f32.mrf.mxu3 }
 0x56c   :  { %v853_v1 = vsel %vm225_vm2, %v800_v0, -inf }
 0x56d   :  { %854 = vmax.xlane.f32.xlu1 %v853_v1 }
 0x572   :  { %v823_v7 = vpop.f32.mrf.mxu2 }
 0x573   :  { %v802_v4 = vpop.f32.mrf.mxu3  ;;  %v856_v9 = vsel %vm225_vm2, %v823_v7, -inf }
 0x574   :  { %857 = vmax.xlane.f32.xlu2 %v856_v9 }
 0x576   :  { %v920_v24 = vpop.permute.xlu1 %919 }
 0x577   :  { %v925_v26 = vsel %vm370_vm3, %v920_v24, 0 }
 0x57a   :  { %v825_v56 = vpop.f32.mrf.mxu2 }
 0x57b   :  { %v5702_v10 = vpop.f32.mrf.mxu3  ;;  %v850_v56 = vsel %vm225_vm2, %v5697_v61, -inf }
 0x583   :  { %v848_v11 = vpop.f32.mrf.mxu3 }
 0x584   :  { %v575_v13 = vpop.xlane.xlu0 %574 }
 0x585   :  { %5025 = vrcp.f32 %v575_v13 }
 0x586   :  { %1030 = vrot.lane.b32.xlu1 %v5535_v30, %s5411_s3  ;;  %5027 = vrcp.f32 %v572_v17 }
 0x58b   :  { %v5026_v18 = vpop.eup %5025 }
 0x58c   :  { %v587_v20 = vmul.f32 %v5026_v18, %v5024_v42  ;;  %1053 = vrot.lane.b32.xlu2 %v5539_v35, %s5411_s3  ;;  %v5028_v27 = vpop.eup %5027  ;;  %v159_v42 = vld [vmem:[#allocation7 + $0x4] sm:$0xf] }
 0x58d   :  { %v586_v28 = vmul.f32 %v5028_v27, %v5676_v62  ;;  %v859_v62 = vsel %vm225_vm2, %v5702_v10, -inf  ;;  %v699_v43 = vsel %vm370_vm3, %v159_v42, 0 }
 0x58e   :  { %961 = vrot.lane.b32.xlu1 %v5547_v45, %s5409_s12  ;;  %v591_v25 = vpack.c.bf16 %v587_v20, %v587_v20 }
 0x58f   :  { %v590_v32 = vpack.c.bf16 %v586_v28, %v586_v28 }
 0x590   :  { %4721 = vmatmul.msk.bf16.vlgmr.msrb.gmra.mxu1 %vm225_vm2, %v591_v25 }
 0x591   :  { %934 = vmatpush.bf16.msrb.mxu1 %v925_v26 }
 0x597   :  { %v595_v29 = vpop.permute.xlu0 %594 }
 0x598   :  { %v600_v31 = vsel %vm370_vm3, %v595_v29, 0 }
 0x599   :  { %609 = vmatpush.bf16.msrb.mxu0 %v600_v31 }
 0x59c   :  { %4720 = vmatmul.msk.bf16.vlgmr.msrb.gmra.mxu0 %vm225_vm2, %v590_v32 }
 0x59d   :  { %708 = vmatpush.bf16.msra.mxu0 %v699_v43 }
 0x5a0   :  { %4726 = vmatmul.msk.bf16.vlgmr.msra.gmra.mxu1 %vm225_vm2, %v728_v59 }
 0x5b0   :  { %4727 = vmatmul.msk.bf16.gmra.mxu1 %vm225_vm2, %v729_v8 }
 0x5b8   :  { %860 = vmax.xlane.f32.xlu1 %v859_v62 }
 0x5d1   :  { %1028 = vrot.lane.b32.xlu1 %v5535_v30, %s5410_s13 }
 0x5e0   :  { %v855_v33 = vpop.xlane.xlu1 %854 }
 0x5e1   :  { %v863_v37 = vsub.f32 %v800_v0, %v855_v33 }
 0x5e3   :  { %v868_v55 = vmul.f32 1.442695, %v863_v37 }
 0x5e7   :  { %v858_v34 = vpop.xlane.xlu2 %857 }
 0x5e8   :  { %v864_v36 = vsub.f32 %v823_v7, %v858_v34 }
 0x5ea   :  { %v870_v57 = vmul.f32 1.442695, %v864_v36 }
 0x5ec   :  { %5029 = vpow2.f32 %v870_v57 }
 0x5ed   :  { %5031 = vpow2.f32 %v868_v55 }
 0x5ef   :  { %v1054_v58 = vpop.permute.xlu2 %1053 }
 0x5f0   :  { %v1059_v5 = vsel %vm225_vm2, %v1054_v58, 0 }
 0x5f1   :  { %1068 = vmatpush.bf16.xpose.msra.mxu2 %v1059_v5 }
 0x5f2   :  { %v5030_v6 = vpop.eup %5029 }
 0x5f3   :  { %v880_v8 = vsel %vm225_vm2, %v5030_v6, 0.0  ;;  %v5032_v59 = vpop.eup %5031 }
 0x5f4   :  { %881 = vadd.xlane.f32.xlu0 %v880_v8  ;;  %v877_v41 = vsel %vm225_vm2, %v5032_v59, 0.0 }
 0x5f8   :  { %v1031_v38 = vpop.permute.xlu1 %1030 }
 0x5f9   :  { %v1036_v39 = vsel %vm225_vm2, %v1031_v38, 0 }
 0x5fa   :  { %1045 = vmatpush.bf16.xpose.msra.mxu1 %v1036_v39 }
 0x5fb   :  { %878 = vadd.xlane.f32.xlu1 %v877_v41 }
 0x600   :  { %v962_v44 = vpop.permute.xlu1 %961 }
 0x601   :  { %v967_v46 = vsel %vm370_vm3, %v962_v44, 0 }
 0x602   :  { %976 = vmatpush.bf16.msrb.mxu3 %v967_v46 }
 0x608   :  { %1076 = vrot.lane.b32.xlu0 %v5543_v40, %s5411_s3 }
 0x60d   :  { %v632_v47 = vpop.f32.mrf.mxu1 }
 0x60e   :  { %v679_v49 = vpack.c.bf16 %v632_v47, %v632_v47 }
 0x610   :  { %1097 = vrot.lane.b32.xlu0 %v5547_v45, %s5410_s13  ;;  %v687_v60 = vunpack.c.l.b16 %v679_v49 }
 0x614   :  { %1099 = vrot.lane.b32.xlu1 %v5547_v45, %s5411_s3 }
 0x615   :  { %v634_v48 = vpop.f32.mrf.mxu1 }
 0x619   :  { %v611_v50 = vpop.f32.mrf.mxu0 }
 0x61a   :  { %v678_v51 = vpack.c.bf16 %v611_v50, %v611_v50 }
 0x61c   :  { %v686_v63 = vunpack.c.l.b16 %v678_v51 }
 0x61d   :  { %v5764_v8 = vpop.f32.mrf.mxu1 }
 0x61e   :  { %v690_v0 = vpack.c.b16 %v687_v60, %v686_v63 }
 0x620   :  { %4724 = vmatmul.msk.bf16.vlgmr.msra.gmra.mxu0 %vm225_vm2, %v690_v0 }
 0x621   :  { %v613_v1 = vpop.f32.mrf.mxu0 }
 0x62b   :  { %v861_v2 = vpop.xlane.xlu1 %860 }
 0x62c   :  { %v865_v3 = vsub.f32 %v5702_v10, %v861_v2  ;;  %v1052_v10 = vpop.permute.xlu0 %1051 }
 0x62e   :  { %v872_v4 = vmul.f32 1.442695, %v865_v3 }
 0x630   :  { %5033 = vpow2.f32 %v872_v4  ;;  %4725 = vmatmul.msk.bf16.gmra.mxu0 %vm225_vm2, %v691_v54 }
 0x636   :  { %v5034_v7 = vpop.eup %5033 }
 0x637   :  { %v883_v9 = vsel %vm225_vm2, %v5034_v7, 0.0 }
 0x638   :  { %884 = vadd.xlane.f32.xlu2 %v883_v9 }
 0x63e   :  { %851 = vmax.xlane.f32.xlu1 %v850_v56 }
 0x643   :  { %v1029_v11 = vpop.permute.xlu1 %1028 }
 0x650   :  { %1074 = vrot.lane.b32.xlu2 %v5543_v40, %s5410_s13 }
 0x658   :  { %898 = vrot.lane.b32.xlu2 %v5535_v30, %s5409_s12 }
 0x667   :  { %v882_v13 = vpop.xlane.xlu0 %881 }
 0x668   :  { %5035 = vrcp.f32 %v882_v13 }
 0x66e   :  { %v879_v52 = vpop.xlane.xlu1 %878  ;;  %v5036_v53 = vpop.eup %5035 }
 0x66f   :  { %5037 = vrcp.f32 %v879_v52  ;;  %v892_v54 = vmul.f32 %v5036_v53, %v5030_v6 }
 0x671   :  { %v896_v17 = vpack.c.bf16 %v892_v54, %v892_v54 }
 0x673   :  { %4734 = vmatmul.msk.bf16.vlgmr.msrb.gmra.mxu2 %vm225_vm2, %v896_v17 }
 0x675   :  { %v5038_v18 = vpop.eup %5037 }
 0x676   :  { %v891_v20 = vmul.f32 %v5038_v18, %v5032_v59 }
 0x678   :  { %v895_v24 = vpack.c.bf16 %v891_v20, %v891_v20 }
 0x67a   :  { %4733 = vmatmul.msk.bf16.vlgmr.msrb.gmra.mxu1 %vm225_vm2, %v895_v24  ;;  %v1077_v25 = vpop.permute.xlu0 %1076 }
 0x67b   :  { %v1082_v26 = vsel %vm225_vm2, %v1077_v25, 0 }
 0x67c   :  { %1091 = vmatpush.bf16.xpose.msra.mxu3 %v1082_v26 }
 0x682   :  { %v1098_v29 = vpop.permute.xlu0 %1097 }
 0x683   :  { %4739 = vmatmul.msk.bf16.vlgmr.msra.gmra.mxu2 %vm225_vm2, %v1052_v10 }
 0x686   :  { %v1100_v27 = vpop.permute.xlu1 %1099 }
 0x687   :  { %v1105_v28 = vsel %vm225_vm2, %v1100_v27, 0 }
 0x688   :  { %1114 = vmatpush.bf16.xpose.msrb.mxu1 %v1105_v28 }
 0x68a   :  { %4738 = vmatmul.msk.bf16.vlgmr.msra.gmra.mxu1 %vm225_vm2, %v1029_v11 }
 0x69a   :  { %4741 = vmatmul.msk.bf16.vlgmr.msrb.gmra.mxu1 %vm225_vm2, %v1098_v29 }
 0x6ab   :  { %v885_v31 = vpop.xlane.xlu2 %884 }
 0x6ac   :  { %5039 = vrcp.f32 %v885_v31 }
 0x6b1   :  { %v852_v32 = vpop.xlane.xlu1 %851 }
 0x6b2   :  { %v5040_v62 = vpop.eup %5039  ;;  %v862_v33 = vsub.f32 %v5697_v61, %v852_v32  ;;  %v5766_v61 = vpop.f32.mrf.mxu1 }
 0x6b3   :  { %v893_v34 = vmul.f32 %v5040_v62, %v5034_v7  ;;  %v1075_v37 = vpop.permute.xlu2 %1074 }
 0x6b4   :  { %v866_v36 = vmul.f32 1.442695, %v862_v33 }
 0x6b5   :  { %v897_v57 = vpack.c.bf16 %v893_v34, %v893_v34 }
 0x6b6   :  { %5041 = vpow2.f32 %v866_v36  ;;  %v160_v36 = vld [vmem:[#allocation7 + $0x8] sm:$0xf] }
 0x6b7   :  { %4735 = vmatmul.msk.bf16.vlgmr.msrb.gmra.mxu3 %vm225_vm2, %v897_v57 }
 0x6ba   :  { %v5768_v59 = vpop.f32.mrf.mxu1 }
 0x6bb   :  { %v899_v55 = vpop.permute.xlu2 %898 }
 0x6bc   :  { %v5042_v58 = vpop.eup %5041  ;;  %v904_v5 = vsel %vm370_vm3, %v899_v55, 0  ;;  %v1003_v55 = vsel %vm370_vm3, %v160_v36, 0 }
 0x6bd   :  { %913 = vmatpush.bf16.msrb.mxu0 %v904_v5  ;;  %v874_v6 = vsel %vm225_vm2, %v5042_v58, 0.0 }
 0x6be   :  { %875 = vadd.xlane.f32.xlu0 %v874_v6 }
 0x6c1   :  { %1012 = vmatpush.bf16.msra.mxu0 %v1003_v55 }
 0x6c2   :  { %v5770_v38 = vpop.f32.mrf.mxu1 }
 0x6c7   :  { %4740 = vmatmul.msk.bf16.vlgmr.msra.gmra.mxu3 %vm225_vm2, %v1075_v37 }
 0x6f6   :  { %v957_v41 = vpop.f32.mrf.mxu2 }
 0x6f7   :  { %v5772_v39 = vpop.f32.mrf.mxu1  ;;  %v984_v2 = vpack.c.bf16 %v957_v41, %v957_v41 }
 0x6f8   :  { %v983_v6 = vpack.c.bf16 %v5772_v39, %v5772_v39 }
 0x6f9   :  { %v992_v56 = vunpack.c.l.b16 %v984_v2 }
 0x6fe   :  { %v959_v43 = vpop.f32.mrf.mxu2 }
 0x6ff   :  { %v938_v42 = vpop.f32.mrf.mxu1  ;;  %v991_v43 = vunpack.c.l.b16 %v983_v6 }
 0x706   :  { %v1070_v46 = vpop.f32.mrf.mxu2 }
 0x707   :  { %v1047_v44 = vpop.f32.mrf.mxu1  ;;  %v1123_v48 = vsel %vm225_vm2, %v1070_v46, -inf }
 0x708   :  { %v1120_v47 = vsel %vm225_vm2, %v1047_v44, -inf  ;;  %1124 = vmax.xlane.f32.xlu1 %v1123_v48 }
 0x709   :  { %1121 = vmax.xlane.f32.xlu2 %v1120_v47 }
 0x70e   :  { %v1072_v50 = vpop.f32.mrf.mxu2 }
 0x70f   :  { %v1049_v49 = vpop.f32.mrf.mxu1 }
 0x717   :  { %v1116_v51 = vpop.f32.mrf.mxu1 }
 0x718   :  { %v1129_v60 = vsel %vm225_vm2, %v1116_v51, -inf }
 0x719   :  { %1130 = vmax.xlane.f32.xlu1 %v1129_v60 }
 0x71f   :  { %v1118_v63 = vpop.f32.mrf.mxu1 }
 0x731   :  { %v876_v0 = vpop.xlane.xlu0 %875 }
 0x732   :  { %5043 = vrcp.f32 %v876_v0 }
 0x738   :  { %v5044_v1 = vpop.eup %5043 }
 0x739   :  { %v890_v3 = vmul.f32 %v5044_v1, %v5042_v58 }
 0x73a   :  { %v978_v4 = vpop.f32.mrf.mxu3 }
 0x73b   :  { %v894_v7 = vpack.c.bf16 %v890_v3, %v890_v3  ;;  %v985_v9 = vpack.c.bf16 %v978_v4, %v978_v4 }
 0x73d   :  { %v993_v10 = vunpack.c.l.b16 %v985_v9  ;;  %4732 = vmatmul.msk.bf16.vlgmr.msrb.gmra.mxu0 %vm225_vm2, %v894_v7 }
 0x73f   :  { %v995_v11 = vpack.c.b16 %v993_v10, %v992_v56 }
 0x742   :  { %v980_v13 = vpop.f32.mrf.mxu3 }
 0x74a   :  { %v1093_v52 = vpop.f32.mrf.mxu3 }
 0x74b   :  { %v1126_v53 = vsel %vm225_vm2, %v1093_v52, -inf }
 0x74c   :  { %1127 = vmax.xlane.f32.xlu0 %v1126_v53 }
 0x752   :  { %v1095_v54 = vpop.f32.mrf.mxu3 }
 0x760   :  { %1168 = vrot.lane.b32.xlu0 %v5535_v30, %s5412_s14  ;;  %v710_v30 = vpop.f32.mrf.mxu0 }
 0x761   :  { %v749_v54 = vadd.f32 %v5764_v8, %v710_v30 }
 0x768   :  { %v5784_v57 = vpop.f32.mrf.mxu0 }
 0x770   :  { %v715_v58 = vpop.f32.mrf.mxu0 }
 0x778   :  { %v5791_v5 = vpop.f32.mrf.mxu0 }
 0x779   :  { %v756_v12 = vadd.f32 %v5770_v38, %v5791_v5 }
 0x77b   :  { %v1125_v18 = vpop.xlane.xlu1 %1124 }
 0x77c   :  { %v1122_v17 = vpop.xlane.xlu2 %1121  ;;  %v1133_v24 = vsub.f32 %v1070_v46, %v1125_v18 }
 0x77d   :  { %v1132_v20 = vsub.f32 %v1047_v44, %v1122_v17 }
 0x77e   :  { %v1138_v26 = vmul.f32 1.442695, %v1133_v24 }
 0x77f   :  { %v1136_v25 = vmul.f32 1.442695, %v1132_v20 }
 0x781   :  { %5045 = vpow2.f32 %v1136_v25 }
 0x782   :  { %5047 = vpow2.f32 %v1138_v26 }
 0x787   :  { %v5046_v27 = vpop.eup %5045 }
 0x788   :  { %v5048_v28 = vpop.eup %5047  ;;  %v1144_v29 = vsel %vm225_vm2, %v5046_v27, 0.0 }
 0x789   :  { %v1147_v31 = vsel %vm225_vm2, %v5048_v28, 0.0 }
 0x78a   :  { %1148 = vadd.xlane.f32.xlu1 %v1147_v31  ;;  %1145 = vadd.xlane.f32.xlu0 %v1144_v29  ;;  %v754_v31 = vadd.f32 %v5768_v59, %v715_v58 }
 0x78c   :  { %v1131_v32 = vpop.xlane.xlu1 %1130 }
 0x78d   :  { %v1135_v62 = vsub.f32 %v1116_v51, %v1131_v32 }
 0x78f   :  { %v1142_v33 = vmul.f32 1.442695, %v1135_v62 }
 0x791   :  { %5049 = vpow2.f32 %v1142_v33  ;;  %v161_v33 = vld [vmem:[#allocation7 + $0xc] sm:$0xf] }
 0x792   :  { %v1273_v8 = vsel %vm370_vm3, %v161_v33, 0 }
 0x797   :  { %v5050_v34 = vpop.eup %5049 }
 0x798   :  { %v1153_v37 = vsel %vm225_vm2, %v5050_v34, 0.0 }
 0x799   :  { %1154 = vadd.xlane.f32.xlu2 %v1153_v37 }
 0x79e   :  { %1231 = vrot.lane.b32.xlu0 %v5547_v45, %s5412_s14 }
 0x7a3   :  { %1189 = vrot.lane.b32.xlu1 %v5539_v35, %s5412_s14 }
 0x7ba   :  { %v915_v41 = vpop.f32.mrf.mxu0 }
 0x7bb   :  { %v982_v42 = vpack.c.bf16 %v915_v41, %v915_v41 }
 0x7bd   :  { %v990_v44 = vunpack.c.l.b16 %v982_v42 }
 0x7bf   :  { %v994_v46 = vpack.c.b16 %v991_v43, %v990_v44  ;;  %v1128_v47 = vpop.xlane.xlu0 %1127 }
 0x7c0   :  { %v1134_v48 = vsub.f32 %v1093_v52, %v1128_v47 }
 0x7c1   :  { %4736 = vmatmul.msk.bf16.vlgmr.msra.gmra.mxu0 %vm225_vm2, %v994_v46 }
 0x7c2   :  { %v1140_v45 = vmul.f32 1.442695, %v1134_v48  ;;  %v917_v49 = vpop.f32.mrf.mxu0 }
 0x7c4   :  { %5051 = vpow2.f32 %v1140_v45 }
 0x7ca   :  { %v5052_v50 = vpop.eup %5051 }
 0x7cb   :  { %v1150_v35 = vsel %vm225_vm2, %v5052_v50, 0.0 }
 0x7cc   :  { %1151 = vadd.xlane.f32.xlu2 %v1150_v35 }
 0x7d1   :  { %4737 = vmatmul.msk.bf16.gmra.mxu0 %vm225_vm2, %v995_v11 }
 0x7d2   :  { %v1169_v51 = vpop.permute.xlu0 %1168 }
 0x7d3   :  { %v1174_v39 = vsel %vm370_vm3, %v1169_v51, 0  ;;  %v5816_v51 = vld [vmem:[%s6696_s8] sm:$0x7f] }
 0x7d4   :  { %1183 = vmatpush.bf16.msrb.mxu2 %v1174_v39  ;;  %v1298_v39 = vperm.slane %v5816_v51, 0 }
 0x7d8   :  { %1282 = vmatpush.bf16.msra.mxu2 %v1273_v8 }
 0x7e4   :  { %1210 = vrot.lane.b32.xlu2 %v5543_v40, %s5412_s14 }
 0x7fd   :  { %v1146_v60 = vpop.xlane.xlu0 %1145  ;;  %v1149_v1 = vpop.xlane.xlu1 %1148 }
 0x7fe   :  { %5053 = vrcp.f32 %v1146_v60 }
 0x7ff   :  { %5055 = vrcp.f32 %v1149_v1  ;;  %v751_v1 = vadd.f32 %v5766_v61, %v5784_v57 }
 0x804   :  { %v5054_v63 = vpop.eup %5053 }
 0x805   :  { %v1160_v0 = vmul.f32 %v5054_v63, %v5046_v27  ;;  %v5056_v7 = vpop.eup %5055 }
 0x806   :  { %v1161_v10 = vmul.f32 %v5056_v7, %v5048_v28 }
 0x807   :  { %v1164_v2 = vpack.c.bf16 %v1160_v0, %v1160_v0 }
 0x808   :  { %v1165_v53 = vpack.c.bf16 %v1161_v10, %v1161_v10 }
 0x809   :  { %4742 = vmatmul.msk.bf16.vlgmr.msrb.gmra.mxu2 %vm225_vm2, %v1164_v2 }
 0x80c   :  { %v1155_v3 = vpop.xlane.xlu2 %1154 }
 0x80d   :  { %5057 = vrcp.f32 %v1155_v3 }
 0x810   :  { %v1232_v4 = vpop.permute.xlu0 %1231 }
 0x811   :  { %v1237_v9 = vsel %vm370_vm3, %v1232_v4, 0 }
 0x812   :  { %1246 = vmatpush.bf16.msra.mxu1 %v1237_v9 }
 0x813   :  { %v5058_v56 = vpop.eup %5057 }
 0x814   :  { %v1163_v11 = vmul.f32 %v5058_v56, %v5050_v34 }
 0x815   :  { %v1190_v40 = vpop.permute.xlu1 %1189 }
 0x816   :  { %v1167_v13 = vpack.c.bf16 %v1163_v11, %v1163_v11  ;;  %v1195_v52 = vsel %vm370_vm3, %v1190_v40, 0 }
 0x817   :  { %1204 = vmatpush.bf16.msrb.mxu3 %v1195_v52 }
 0x818   :  { %4745 = vmatmul.msk.bf16.vlgmr.msra.gmra.mxu1 %vm225_vm2, %v1167_v13 }
 0x81a   :  { %4743 = vmatmul.msk.bf16.vlgmr.msrb.gmra.mxu3 %vm225_vm2, %v1165_v53 }
 0x83e   :  { %v1014_v17 = vpop.f32.mrf.mxu0 }
 0x83f   :  { %v1024_v18 = vadd.f32 %v1014_v17, %v749_v54  ;;  %v1152_v20 = vpop.xlane.xlu2 %1151 }
 0x840   :  { %5059 = vrcp.f32 %v1152_v20 }
 0x846   :  { %v5060_v24 = vpop.eup %5059  ;;  %v1016_v25 = vpop.f32.mrf.mxu0 }
 0x847   :  { %v1162_v26 = vmul.f32 %v5060_v24, %v5052_v50  ;;  %v1211_v27 = vpop.permute.xlu2 %1210  ;;  %v1025_v3 = vadd.f32 %v1016_v25, %v751_v1 }
 0x848   :  { %v1216_v28 = vsel %vm370_vm3, %v1211_v27, 0 }
 0x849   :  { %v1166_v29 = vpack.c.bf16 %v1162_v26, %v1162_v26  ;;  %1225 = vmatpush.bf16.msrb.mxu0 %v1216_v28 }
 0x84c   :  { %4744 = vmatmul.msk.bf16.vlgmr.msrb.gmra.mxu0 %vm225_vm2, %v1166_v29 }
 0x84e   :  { %v1019_v32 = vpop.f32.mrf.mxu0 }
 0x84f   :  { %v1026_v62 = vadd.f32 %v1019_v32, %v754_v31 }
 0x856   :  { %v1021_v59 = vpop.f32.mrf.mxu0 }
 0x857   :  { %v1027_v61 = vadd.f32 %v1021_v59, %v756_v12  ;;  %v4947_v59 = vld [vmem:[#allocation8] sm:$0xff] }
 0x88c   :  { %v1185_v30 = vpop.f32.mrf.mxu2 }
 0x88d   :  { %v1252_v36 = vpack.c.bf16 %v1185_v30, %v1185_v30 }
 0x88f   :  { %v1260_v42 = vunpack.c.l.b16 %v1252_v36 }
 0x894   :  { %v1187_v34 = vpop.f32.mrf.mxu2 }
 0x895   :  { %v1248_v37 = vpop.f32.mrf.mxu1 }
 0x896   :  { %v1255_v58 = vpack.c.bf16 %v1248_v37, %v1248_v37 }
 0x898   :  { %v1263_v45 = vunpack.c.l.b16 %v1255_v58 }
 0x89d   :  { %v1206_v55 = vpop.f32.mrf.mxu3  ;;  %v1250_v6 = vpop.f32.mrf.mxu1 }
 0x89e   :  { %v1253_v41 = vpack.c.bf16 %v1206_v55, %v1206_v55 }
 0x8a0   :  { %v1261_v43 = vunpack.c.l.b16 %v1253_v41 }
 0x8a2   :  { %v1264_v44 = vpack.c.b16 %v1261_v43, %v1260_v42  ;;  %v4948_v43 = vld [vmem:[#allocation8 + $0x8] sm:$0xff] }
 0x8a3   :  { %1439 = vmatpush.bf16.msra.mxu3 %v4948_v43 }
 0x8a4   :  { %4746 = vmatmul.msk.bf16.vlgmr.msra.gmra.mxu2 %vm225_vm2, %v1264_v44 }
 0x8a5   :  { %v1208_v46 = vpop.f32.mrf.mxu3 }
 0x8a7   :  { %1440 = vmatpush.bf16.msra.mxu3 %v4947_v59 }
 0x8c9   :  { %v1227_v47 = vpop.f32.mrf.mxu0 }
 0x8ca   :  { %v1254_v48 = vpack.c.bf16 %v1227_v47, %v1227_v47 }
 0x8cc   :  { %v1262_v49 = vunpack.c.l.b16 %v1254_v48 }
 0x8ce   :  { %v1265_v50 = vpack.c.b16 %v1263_v45, %v1262_v49 }
 0x8d0   :  { %4747 = vmatmul.msk.bf16.gmra.mxu2 %vm225_vm2, %v1265_v50 }
 0x8d1   :  { %v1229_v35 = vpop.f32.mrf.mxu0 }
 0x927   :  { %v1284_v60 = vpop.f32.mrf.mxu2 }
 0x928   :  { %v1294_v63 = vadd.f32 %v1284_v60, %v1024_v18  ;;  %v5413_v18 = vmov 32.0  }
 0x929   :  { %5061 = vrcp.f32 %v5413_v18 }
 0x92a   :  { %v1299_v0 = vadd.f32 %v1298_v39, %v1294_v63 }
 0x92c   :  { %v1303_v2 = vadd.f32 %v1299_v0, %v153_v15 }
 0x92e   :  { %v1307_v4 = vsel %vm190_vm1, %v1303_v2, 0.0 }
 0x92f   :  { %1308 = vadd.xlane.f32.xlu1 %v1307_v4  ;;  %v1286_v7 = vpop.f32.mrf.mxu2  ;;  %v5062_v20 = vpop.eup %5061 }
 0x930   :  { %v1295_v9 = vadd.f32 %v1286_v7, %v1025_v3  ;;  %v1320_v38 = vmul.f32 32.0, %v5062_v20  ;;  %vm1324_vm4 = vweird.f32 %v5062_v20 }
 0x932   :  { %v1300_v56 = vadd.f32 %v1298_v39, %v1295_v9  ;;  %v1321_v5 = vsub.f32 1.0, %v1320_v38  ;;  %v1402_v9 = vperm.slane %v5816_v51, 1 }
 0x934   :  { %v1304_v10 = vadd.f32 %v1300_v56, %v154_v16  ;;  %v1322_v19 = vmul.f32 %v5062_v20, %v1321_v5 }
 0x936   :  { %v1310_v11 = vsel %vm190_vm1, %v1304_v10, 0.0 }
 0x937   :  { %1311 = vadd.xlane.f32.xlu0 %v1310_v11 }
 0x953   :  { %v1289_v40 = vpop.f32.mrf.mxu2 }
 0x954   :  { %v1296_v13 = vadd.f32 %v1289_v40, %v1026_v62 }
 0x956   :  { %v1301_v52 = vadd.f32 %v1298_v39, %v1296_v13 }
 0x958   :  { %v1305_v15 = vadd.f32 %v1301_v52, %v155_v22  ;;  %v1323_v22 = vadd.f32 %v5062_v20, %v1322_v19  ;;  %v1407_v52 = vperm.slane %v5816_v51, 2 }
 0x95a   :  { %v1313_v57 = vsel %vm190_vm1, %v1305_v15, 0.0  ;;  %v5835_v24 = vsel %vm1324_vm4, %v5062_v20, %v1323_v22 }
 0x95b   :  { %1314 = vadd.xlane.f32.xlu2 %v1313_v57  ;;  %v1291_v53 = vpop.f32.mrf.mxu2 }
 0x95c   :  { %v1297_v54 = vadd.f32 %v1291_v53, %v1027_v61 }
 0x95e   :  { %v1302_v14 = vadd.f32 %v1298_v39, %v1297_v54 }
 0x960   :  { %v1306_v16 = vadd.f32 %v1302_v14, %v156_v23 }
 0x962   :  { %v1316_v17 = vsel %vm190_vm1, %v1306_v16, 0.0 }
 0x963   :  { %1317 = vadd.xlane.f32.xlu1 %v1316_v17 }
 0x9a2   :  { %v1309_v25 = vpop.xlane.xlu1 %1308 }
 0x9a3   :  { %v1326_v26 = vmul.f32 %v5835_v24, %v1309_v25 }
 0x9a5   :  { %v1330_v27 = vsub.f32 %v1303_v2, %v1326_v26 }
 0x9a7   :  { %v1334_v28 = vmul.f32 %v1330_v27, %v1330_v27 }
 0x9a9   :  { %v1338_v21 = vsel %vm190_vm1, %v1334_v28, 0.0 }
 0x9aa   :  { %1339 = vadd.xlane.f32.xlu0 %v1338_v21  ;;  %v1312_v23 = vpop.xlane.xlu0 %1311 }
 0x9ab   :  { %v1327_v29 = vmul.f32 %v5835_v24, %v1312_v23 }
 0x9ad   :  { %v1331_v31 = vsub.f32 %v1304_v10, %v1327_v29 }
 0x9af   :  { %v1335_v32 = vmul.f32 %v1331_v31, %v1331_v31 }
 0x9b1   :  { %v1341_v62 = vsel %vm190_vm1, %v1335_v32, 0.0 }
 0x9b2   :  { %1342 = vadd.xlane.f32.xlu1 %v1341_v62 }
 0x9ce   :  { %v1315_v33 = vpop.xlane.xlu2 %1314 }
 0x9cf   :  { %v1328_v8 = vmul.f32 %v5835_v24, %v1315_v33 }
 0x9d1   :  { %v5842_v30 = vsub.f32 %v1305_v15, %v1328_v8 }
 0x9d3   :  { %v1336_v34 = vmul.f32 %v5842_v30, %v5842_v30 }
 0x9d5   :  { %v1344_v37 = vsel %vm190_vm1, %v1336_v34, 0.0 }
 0x9d6   :  { %1345 = vadd.xlane.f32.xlu0 %v1344_v37  ;;  %v1318_v36 = vpop.xlane.xlu1 %1317 }
 0x9d7   :  { %v1329_v55 = vmul.f32 %v5835_v24, %v1318_v36 }
 0x9d9   :  { %v5848_v6 = vsub.f32 %v1306_v16, %v1329_v55 }
 0x9db   :  { %v1337_v41 = vmul.f32 %v5848_v6, %v5848_v6 }
 0x9dd   :  { %v1347_v42 = vsel %vm190_vm1, %v1337_v41, 0.0  ;;  %v4950_v41 = vld [vmem:[#allocation8 + $0x18] sm:$0xff] }
 0x9de   :  { %1348 = vadd.xlane.f32.xlu1 %v1347_v42  ;;  %1483 = vmatpush.bf16.msra.mxu0 %v4950_v41  ;;  %v4949_v42 = vld [vmem:[#allocation8 + $0x10] sm:$0xff] }
 0x9e2   :  { %1484 = vmatpush.bf16.msra.mxu0 %v4949_v42 }
 0xa1d   :  { %v1340_v44 = vpop.xlane.xlu0 %1339 }
 0xa1e   :  { %v1350_v46 = vmul.f32 %v1340_v44, %v5835_v24 }
 0xa20   :  { %v1354_v58 = vadd.f32 1e-05, %v1350_v46 }
 0xa22   :  { %5063 = vrsqrt.f32 %v1354_v58  ;;  %vm1364_vm6 = vweird.f32 %v1354_v58 }
 0xa25   :  { %v1343_v47 = vpop.xlane.xlu1 %1342 }
 0xa26   :  { %v1351_v48 = vmul.f32 %v1343_v47, %v5835_v24 }
 0xa28   :  { %v5064_v45 = vpop.eup %5063  ;;  %v1355_v49 = vadd.f32 1e-05, %v1351_v48 }
 0xa29   :  { %v1359_v50 = vmul.f32 %v5064_v45, %v1354_v58  ;;  %vm1365_vm5 = vweird.f32 %v5064_v45 }
 0xa2a   :  { %5065 = vrsqrt.f32 %v1355_v49  ;;  %vm1366_vm7 = vmor %vm1364_vm6, %vm1365_vm5  ;;  %vm1374_vm9 = vweird.f32 %v1355_v49 }
 0xa2b   :  { %v1360_v35 = vmul.f32 %v5064_v45, %v1359_v50 }
 0xa2d   :  { %v1361_v39 = vmul.f32 0.5, %v1360_v35 }
 0xa2f   :  { %v1362_v60 = vsub.f32 1.5, %v1361_v39 }
 0xa30   :  { %v5066_v63 = vpop.eup %5065 }
 0xa31   :  { %v1363_v0 = vmul.f32 %v5064_v45, %v1362_v60  ;;  %v1369_v1 = vmul.f32 %v5066_v63, %v1355_v49  ;;  %vm1375_vm8 = vweird.f32 %v5066_v63 }
 0xa32   :  { %vm1376_vm10 = vmor %vm1374_vm9, %vm1375_vm8 }
 0xa33   :  { %v1370_v2 = vmul.f32 %v5066_v63, %v1369_v1  ;;  %v1367_v3 = vsel %vm1366_vm7, %v5064_v45, %v1363_v0 }
 0xa34   :  { %v1398_v56 = vmul.f32 %v1367_v3, %v1330_v27 }
 0xa35   :  { %v1371_v4 = vmul.f32 0.5, %v1370_v2 }
 0xa36   :  { %v1403_v40 = vmul.f32 %v1402_v9, %v1398_v56 }
 0xa37   :  { %v1372_v7 = vsub.f32 1.5, %v1371_v4 }
 0xa38   :  { %v5857_v15 = vadd.f32 %v1407_v52, %v1403_v40 }
 0xa39   :  { %v1373_v10 = vmul.f32 %v5066_v63, %v1372_v7 }
 0xa3b   :  { %v1377_v11 = vsel %vm1376_vm10, %v5066_v63, %v1373_v10  ;;  %v1458_v63 = vperm.slane %v5816_v51, 6 }
 0xa3c   :  { %v1399_v13 = vmul.f32 %v1377_v11, %v1331_v31 }
 0xa3e   :  { %v1404_v12 = vmul.f32 %v1402_v9, %v1399_v13 }
 0xa40   :  { %v5859_v61 = vadd.f32 %v1407_v52, %v1404_v12 }
 0xa42   :  { %v1412_v57 = vpack.c.bf16 %v5859_v61, %v5857_v15 }
 0xa44   :  { %4756 = vmatmul.msk.bf16.vlgmr.msra.gmra.mxu3 %vm190_vm1, %v1412_v57 }
 0xa49   :  { %v1346_v53 = vpop.xlane.xlu0 %1345 }
 0xa4a   :  { %v1352_v54 = vmul.f32 %v1346_v53, %v5835_v24 }
 0xa4c   :  { %v1356_v14 = vadd.f32 1e-05, %v1352_v54 }
 0xa4e   :  { %5067 = vrsqrt.f32 %v1356_v14  ;;  %vm1384_vm12 = vweird.f32 %v1356_v14 }
 0xa51   :  { %v1349_v16 = vpop.xlane.xlu1 %1348 }
 0xa52   :  { %v1353_v17 = vmul.f32 %v1349_v16, %v5835_v24 }
 0xa54   :  { %v5068_v18 = vpop.eup %5067  ;;  %v1357_v20 = vadd.f32 1e-05, %v1353_v17 }
 0xa55   :  { %v1379_v38 = vmul.f32 %v5068_v18, %v1356_v14  ;;  %vm1385_vm11 = vweird.f32 %v5068_v18 }
 0xa56   :  { %5069 = vrsqrt.f32 %v1357_v20  ;;  %vm1386_vm13 = vmor %vm1384_vm12, %vm1385_vm11  ;;  %vm1394_vm15 = vweird.f32 %v1357_v20 }
 0xa57   :  { %v1380_v5 = vmul.f32 %v5068_v18, %v1379_v38 }
 0xa59   :  { %v1381_v19 = vmul.f32 0.5, %v1380_v5 }
 0xa5b   :  { %v1382_v22 = vsub.f32 1.5, %v1381_v19 }
 0xa5c   :  { %v5070_v25 = vpop.eup %5069 }
 0xa5d   :  { %v1383_v26 = vmul.f32 %v5068_v18, %v1382_v22  ;;  %v1389_v27 = vmul.f32 %v5070_v25, %v1357_v20  ;;  %vm1395_vm14 = vweird.f32 %v5070_v25 }
 0xa5e   :  { %vm1396_vm0 = vmor %vm1394_vm15, %vm1395_vm14 }
 0xa5f   :  { %v1390_v28 = vmul.f32 %v5070_v25, %v1389_v27  ;;  %v1387_v21 = vsel %vm1386_vm13, %v5068_v18, %v1383_v26 }
 0xa60   :  { %v1400_v31 = vmul.f32 %v1387_v21, %v5842_v30  ;;  %v1414_v30 = vperm.slane %v5816_v51, 5 }
 0xa61   :  { %v1391_v23 = vmul.f32 0.5, %v1390_v28 }
 0xa62   :  { %v1405_v8 = vmul.f32 %v1402_v9, %v1400_v31 }
 0xa63   :  { %v1392_v29 = vsub.f32 1.5, %v1391_v23 }
 0xa64   :  { %v1410_v37 = vadd.f32 %v1407_v52, %v1405_v8  ;;  %v4957_v8 = vld [vmem:[%s6692_s4 + $0x10] sm:$0xff] }
 0xa65   :  { %v1393_v32 = vmul.f32 %v5070_v25, %v1392_v29 }
 0xa67   :  { %v1397_v62 = vsel %vm1396_vm0, %v5070_v25, %v1393_v32  ;;  %v4958_v32 = vld [vmem:[%s6692_s4 + $0x18] sm:$0xff] }
 0xa68   :  { %v1401_v33 = vmul.f32 %v1397_v62, %v5848_v6  ;;  %1647 = vmatpush.bf16.msrb.mxu1 %v4958_v32 }
 0xa6a   :  { %v1406_v34 = vmul.f32 %v1402_v9, %v1401_v33 }
 0xa6c   :  { %v1411_v36 = vadd.f32 %v1407_v52, %v1406_v34  ;;  %1648 = vmatpush.bf16.msrb.mxu1 %v4957_v8 }
 0xa6e   :  { %v1413_v55 = vpack.c.bf16 %v1411_v36, %v1410_v37 }
 0xa70   :  { %4757 = vmatmul.msk.bf16.gmra.mxu3 %vm190_vm1, %v1413_v55 }
 0xac7   :  { %v1442_v43 = vpop.f32.mrf.mxu3 }
 0xac8   :  { %v1443_v44 = vadd.f32 %v1442_v43, %v1414_v30 }
 0xaca   :  { %v1452_v58 = vmax.f32 %v1443_v44, 0.0 }
 0xacf   :  { %v1444_v46 = vpop.f32.mrf.mxu3 }
 0xad0   :  { %v1445_v59 = vadd.f32 %v1444_v46, %v1414_v30 }
 0xad2   :  { %v1453_v47 = vmax.f32 %v1445_v59, 0.0 }
 0xad4   :  { %v1456_v6 = vpack.c.bf16 %v1453_v47, %v1452_v58 }
 0xad6   :  { %4766 = vmatmul.msk.bf16.vlgmr.msra.gmra.mxu0 %vm190_vm1, %v1456_v6 }
 0xaf3   :  { %v1447_v48 = vpop.f32.mrf.mxu3 }
 0xaf4   :  { %v1448_v45 = vadd.f32 %v1447_v48, %v1414_v30 }
 0xaf6   :  { %v1454_v35 = vmax.f32 %v1448_v45, 0.0 }
 0xafb   :  { %v1449_v49 = vpop.f32.mrf.mxu3 }
 0xafc   :  { %v1450_v50 = vadd.f32 %v1449_v49, %v1414_v30  ;;  %v1588_v49 = vperm.slane %v5816_v51, 3 }
 0xafe   :  { %v1455_v39 = vmax.f32 %v1450_v50, 0.0 }
 0xb00   :  { %v1457_v60 = vpack.c.bf16 %v1455_v39, %v1454_v35 }
 0xb02   :  { %4767 = vmatmul.msk.bf16.gmra.mxu0 %vm190_vm1, %v1457_v60 }
 0xb53   :  { %v1486_v0 = vpop.f32.mrf.mxu0 }
 0xb54   :  { %v1487_v1 = vadd.f32 %v1486_v0, %v1458_v63  ;;  %v1593_v0 = vperm.slane %v5816_v51, 4 }
 0xb56   :  { %v1496_v2 = vadd.f32 %v1487_v1, %v5857_v15 }
 0xb58   :  { %v1500_v3 = vsel %vm190_vm1, %v1496_v2, 0.0 }
 0xb59   :  { %1501 = vadd.xlane.f32.xlu2 %v1500_v3 }
 0xb5b   :  { %v1488_v4 = vpop.f32.mrf.mxu0 }
 0xb5c   :  { %v1489_v7 = vadd.f32 %v1488_v4, %v1458_v63 }
 0xb5e   :  { %v1497_v9 = vadd.f32 %v1489_v7, %v5859_v61 }
 0xb60   :  { %v1503_v56 = vsel %vm190_vm1, %v1497_v9, 0.0 }
 0xb61   :  { %1504 = vadd.xlane.f32.xlu0 %v1503_v56 }
 0xb7f   :  { %v1491_v10 = vpop.f32.mrf.mxu0 }
 0xb80   :  { %v1492_v11 = vadd.f32 %v1491_v10, %v1458_v63 }
 0xb82   :  { %v1498_v40 = vadd.f32 %v1492_v11, %v1410_v37 }
 0xb84   :  { %v1506_v13 = vsel %vm190_vm1, %v1498_v40, 0.0 }
 0xb85   :  { %1507 = vadd.xlane.f32.xlu1 %v1506_v13 }
 0xb87   :  { %v1493_v52 = vpop.f32.mrf.mxu0 }
 0xb88   :  { %v1494_v12 = vadd.f32 %v1493_v52, %v1458_v63 }
 0xb8a   :  { %v1499_v57 = vadd.f32 %v1494_v12, %v1411_v36 }
 0xb8c   :  { %v1509_v15 = vsel %vm190_vm1, %v1499_v57, 0.0 }
 0xb8d   :  { %1510 = vadd.xlane.f32.xlu2 %v1509_v15 }
 0xbcc   :  { %v1502_v53 = vpop.xlane.xlu2 %1501 }
 0xbcd   :  { %v1512_v54 = vmul.f32 %v1502_v53, %v5835_v24 }
 0xbcf   :  { %v1516_v14 = vsub.f32 %v1496_v2, %v1512_v54 }
 0xbd1   :  { %v1520_v61 = vmul.f32 %v1516_v14, %v1516_v14 }
 0xbd3   :  { %v1524_v16 = vsel %vm190_vm1, %v1520_v61, 0.0 }
 0xbd4   :  { %v1505_v17 = vpop.xlane.xlu0 %1504  ;;  %1525 = vadd.xlane.f32.xlu0 %v1524_v16 }
 0xbd5   :  { %v1513_v18 = vmul.f32 %v1505_v17, %v5835_v24 }
 0xbd7   :  { %v1517_v20 = vsub.f32 %v1497_v9, %v1513_v18 }
 0xbd9   :  { %v1521_v38 = vmul.f32 %v1517_v20, %v1517_v20 }
 0xbdb   :  { %v1527_v5 = vsel %vm190_vm1, %v1521_v38, 0.0 }
 0xbdc   :  { %1528 = vadd.xlane.f32.xlu1 %v1527_v5 }
 0xbf8   :  { %v1508_v19 = vpop.xlane.xlu1 %1507 }
 0xbf9   :  { %v1514_v22 = vmul.f32 %v1508_v19, %v5835_v24 }
 0xbfb   :  { %v5884_v25 = vsub.f32 %v1498_v40, %v1514_v22 }
 0xbfd   :  { %v1522_v26 = vmul.f32 %v5884_v25, %v5884_v25 }
 0xbff   :  { %v1530_v27 = vsel %vm190_vm1, %v1522_v26, 0.0 }
 0xc00   :  { %v1511_v28 = vpop.xlane.xlu2 %1510  ;;  %1531 = vadd.xlane.f32.xlu2 %v1530_v27 }
 0xc01   :  { %v1515_v21 = vmul.f32 %v1511_v28, %v5835_v24 }
 0xc03   :  { %v5890_v23 = vsub.f32 %v1499_v57, %v1515_v21  ;;  %v4995_v21 = vld [vmem:[#allocation5 + $0x1] ss:$0 sm:$0xff] }
 0xc05   :  { %v1523_v29 = vmul.f32 %v5890_v23, %v5890_v23 }
 0xc07   :  { %v1533_v31 = vsel %vm190_vm1, %v1523_v29, 0.0 }
 0xc08   :  { %1534 = vadd.xlane.f32.xlu0 %v1533_v31 }
 0xc47   :  { %v1526_v62 = vpop.xlane.xlu0 %1525 }
 0xc48   :  { %v1536_v33 = vmul.f32 %v1526_v62, %v5835_v24 }
 0xc4a   :  { %v1540_v34 = vadd.f32 1e-05, %v1536_v33 }
 0xc4c   :  { %5071 = vrsqrt.f32 %v1540_v34  ;;  %vm1550_vm5 = vweird.f32 %v1540_v34 }
 0xc4f   :  { %v1529_v37 = vpop.xlane.xlu1 %1528 }
 0xc50   :  { %v1537_v36 = vmul.f32 %v1529_v37, %v5835_v24 }
 0xc52   :  { %v5072_v55 = vpop.eup %5071  ;;  %v1541_v41 = vadd.f32 1e-05, %v1537_v36 }
 0xc53   :  { %v1545_v42 = vmul.f32 %v5072_v55, %v1540_v34  ;;  %vm1551_vm4 = vweird.f32 %v5072_v55 }
 0xc54   :  { %5073 = vrsqrt.f32 %v1541_v41  ;;  %vm1552_vm6 = vmor %vm1550_vm5, %vm1551_vm4  ;;  %vm1560_vm8 = vweird.f32 %v1541_v41 }
 0xc55   :  { %v1546_v43 = vmul.f32 %v5072_v55, %v1545_v42 }
 0xc57   :  { %v1547_v30 = vmul.f32 0.5, %v1546_v43 }
 0xc59   :  { %v1548_v44 = vsub.f32 1.5, %v1547_v30 }
 0xc5a   :  { %v5074_v46 = vpop.eup %5073 }
 0xc5b   :  { %v1549_v59 = vmul.f32 %v5072_v55, %v1548_v44  ;;  %v1555_v58 = vmul.f32 %v5074_v46, %v1541_v41  ;;  %vm1561_vm7 = vweird.f32 %v5074_v46 }
 0xc5c   :  { %vm1562_vm9 = vmor %vm1560_vm8, %vm1561_vm7 }
 0xc5d   :  { %v1556_v47 = vmul.f32 %v5074_v46, %v1555_v58  ;;  %v1553_v6 = vsel %vm1552_vm6, %v5072_v55, %v1549_v59 }
 0xc5e   :  { %v1584_v50 = vmul.f32 %v1553_v6, %v1516_v14 }
 0xc5f   :  { %v1557_v48 = vmul.f32 0.5, %v1556_v47 }
 0xc60   :  { %v1589_v60 = vmul.f32 %v1588_v49, %v1584_v50 }
 0xc61   :  { %v1558_v45 = vsub.f32 1.5, %v1557_v48 }
 0xc62   :  { %v5905_v2 = vadd.f32 %v1593_v0, %v1589_v60 }
 0xc63   :  { %v1559_v35 = vmul.f32 %v5074_v46, %v1558_v45 }
 0xc65   :  { %v1563_v39 = vsel %vm1562_vm9, %v5074_v46, %v1559_v35 }
 0xc66   :  { %v1585_v63 = vmul.f32 %v1563_v39, %v1517_v20 }
 0xc68   :  { %v1590_v1 = vmul.f32 %v1588_v49, %v1585_v63 }
 0xc6a   :  { %v5907_v3 = vadd.f32 %v1593_v0, %v1590_v1 }
 0xc6c   :  { %v1614_v4 = vpack.c.bf16 %v5907_v3, %v5905_v2 }
 0xc6e   :  { %4781 = vmatmul.msk.bf16.vlgmr.msrb.gmra.mxu1 %vm190_vm1, %v1614_v4 }
 0xc73   :  { %v1532_v7 = vpop.xlane.xlu2 %1531 }
 0xc74   :  { %v1538_v9 = vmul.f32 %v1532_v7, %v5835_v24 }
 0xc76   :  { %v1542_v56 = vadd.f32 1e-05, %v1538_v9 }
 0xc78   :  { %5075 = vrsqrt.f32 %v1542_v56  ;;  %vm1570_vm11 = vweird.f32 %v1542_v56 }
 0xc7b   :  { %v1535_v10 = vpop.xlane.xlu0 %1534 }
 0xc7c   :  { %v1539_v11 = vmul.f32 %v1535_v10, %v5835_v24 }
 0xc7e   :  { %v5076_v40 = vpop.eup %5075  ;;  %v1543_v51 = vadd.f32 1e-05, %v1539_v11 }
 0xc7f   :  { %v1565_v13 = vmul.f32 %v5076_v40, %v1542_v56  ;;  %vm1571_vm10 = vweird.f32 %v5076_v40 }
 0xc80   :  { %5077 = vrsqrt.f32 %v1543_v51  ;;  %vm1572_vm12 = vmor %vm1570_vm11, %vm1571_vm10  ;;  %vm1580_vm14 = vweird.f32 %v1543_v51 }
 0xc81   :  { %v1566_v52 = vmul.f32 %v5076_v40, %v1565_v13 }
 0xc83   :  { %v1567_v12 = vmul.f32 0.5, %v1566_v52 }
 0xc85   :  { %v1568_v57 = vsub.f32 1.5, %v1567_v12 }
 0xc86   :  { %v5078_v15 = vpop.eup %5077 }
 0xc87   :  { %v1569_v53 = vmul.f32 %v5076_v40, %v1568_v57  ;;  %v1575_v54 = vmul.f32 %v5078_v15, %v1543_v51  ;;  %vm1581_vm13 = vweird.f32 %v5078_v15 }
 0xc88   :  { %vm1582_vm15 = vmor %vm1580_vm14, %vm1581_vm13 }
 0xc89   :  { %v1576_v14 = vmul.f32 %v5078_v15, %v1575_v54  ;;  %v1573_v61 = vsel %vm1572_vm12, %v5076_v40, %v1569_v53 }
 0xc8a   :  { %v1586_v18 = vmul.f32 %v1573_v61, %v5884_v25 }
 0xc8b   :  { %v1577_v16 = vmul.f32 0.5, %v1576_v14 }
 0xc8c   :  { %v1591_v19 = vmul.f32 %v1588_v49, %v1586_v18 }
 0xc8d   :  { %v1578_v17 = vsub.f32 1.5, %v1577_v16 }
 0xc8e   :  { %v5916_v26 = vadd.f32 %v1593_v0, %v1591_v19 }
 0xc8f   :  { %v1579_v20 = vmul.f32 %v5078_v15, %v1578_v17 }
 0xc91   :  { %v1583_v38 = vsel %vm1582_vm15, %v5078_v15, %v1579_v20 }
 0xc92   :  { %v1587_v5 = vmul.f32 %v1583_v38, %v5890_v23 }
 0xc94   :  { %v1592_v22 = vmul.f32 %v1588_v49, %v1587_v5 }
 0xc96   :  { %v5918_v27 = vadd.f32 %v1593_v0, %v1592_v22 }
 0xc98   :  { %v1615_v28 = vpack.c.bf16 %v5918_v27, %v5916_v26 }
 0xc9a   :  { %4782 = vmatmul.msk.bf16.gmra.mxu1 %vm190_vm1, %v1615_v28 }
 0xceb   :  { %v1650_v29 = vpop.f32.mrf.mxu1 }
 0xcec   :  { %v1651_v25 = vadd.f32 %v4995_v21, %v1650_v29 }
 0xcee   :  { %v1660_v31 = vpack.c.bf16 %v1651_v25, %v1651_v25 }
 0xcf0   :  { %v1665_v32 = vunpack.c.l.b16 %v1660_v31 }
 0xcf2   :  { %v5923_v62 = vpack.c.b16 %v1665_v32, %v1665_v32 }
 0xcf3   :  { %v1652_v33 = vpop.f32.mrf.mxu1 }
 0xcf4   :  { %v1653_v23 = vadd.f32 %v4995_v21, %v1652_v33  ;;  %1667 = vrot.lane.b32.xlu0 %v5923_v62, %s5403_s0 }
 0xcf6   :  { %v1661_v8 = vpack.c.bf16 %v1653_v23, %v1653_v23 }
 0xcf8   :  { %v1689_v34 = vunpack.c.l.b16 %v1661_v8 }
 0xcfa   :  { %v5927_v37 = vpack.c.b16 %v1689_v34, %v1689_v34 }
 0xcfc   :  { %1691 = vrot.lane.b32.xlu0 %v5927_v37, %s5403_s0 }
 0xd17   :  { %v1655_v36 = vpop.f32.mrf.mxu1 }
 0xd18   :  { %v1656_v55 = vadd.f32 %v4995_v21, %v1655_v36 }
 0xd1a   :  { %v1662_v41 = vpack.c.bf16 %v1656_v55, %v1656_v55 }
 0xd1c   :  { %v1713_v42 = vunpack.c.l.b16 %v1662_v41 }
 0xd1e   :  { %v5931_v43 = vpack.c.b16 %v1713_v42, %v1713_v42 }
 0xd1f   :  { %v1657_v30 = vpop.f32.mrf.mxu1 }
 0xd20   :  { %v1658_v44 = vadd.f32 %v4995_v21, %v1657_v30  ;;  %1715 = vrot.lane.b32.xlu1 %v5931_v43, %s5403_s0 }
 0xd22   :  { %v1663_v46 = vpack.c.bf16 %v1658_v44, %v1658_v44 }
 0xd24   :  { %v1737_v59 = vunpack.c.l.b16 %v1663_v46 }
 0xd26   :  { %v5935_v58 = vpack.c.b16 %v1737_v59, %v1737_v59 }
 0xd28   :  { %1739 = vrot.lane.b32.xlu2 %v5935_v58, %s5403_s0  ;;  %1871 = vrot.lane.b32.xlu0 %v5935_v58, %s5398_s5 }
 0xd66   :  { %v1668_v47 = vpop.permute.xlu0 %1667 }
 0xd67   :  { %v1673_v6 = vsel %vm225_vm2, %v1668_v47, 0 }
 0xd68   :  { %1682 = vmatpush.bf16.xpose.msrb.mxu2 %v1673_v6 }
 0xd6e   :  { %v1692_v48 = vpop.permute.xlu0 %1691 }
 0xd6f   :  { %v1697_v45 = vsel %vm225_vm2, %v1692_v48, 0  ;;  %4783 = vmatmul.msk.bf16.vlgmr.msrb.gmra.mxu2 %vm225_vm2, %v1660_v31 }
 0xd70   :  { %1706 = vmatpush.bf16.xpose.msrb.mxu3 %v1697_v45 }
 0xd77   :  { %4784 = vmatmul.msk.bf16.vlgmr.msrb.gmra.mxu3 %vm225_vm2, %v1661_v8 }
 0xd82   :  { %v1740_v49 = vpop.permute.xlu2 %1739 }
 0xd83   :  { %v1745_v50 = vsel %vm225_vm2, %v1740_v49, 0 }
 0xd84   :  { %1754 = vmatpush.bf16.xpose.msra.mxu1 %v1745_v50 }
 0xd8b   :  { %4786 = vmatmul.msk.bf16.vlgmr.msra.gmra.mxu1 %vm225_vm2, %v1663_v46 }
 0xd92   :  { %v1716_v35 = vpop.permute.xlu1 %1715 }
 0xd93   :  { %v1721_v39 = vsel %vm225_vm2, %v1716_v35, 0 }
 0xd94   :  { %1730 = vmatpush.bf16.xpose.msrb.mxu0 %v1721_v39 }
 0xd9a   :  { %v1872_v60 = vpop.permute.xlu0 %1871 }
 0xd9b   :  { %v1877_v63 = vsel %vm370_vm3, %v1872_v60, 0  ;;  %4785 = vmatmul.msk.bf16.vlgmr.msrb.gmra.mxu0 %vm225_vm2, %v1662_v41 }
 0xd9c   :  { %1886 = vmatpush.bf16.msrb.mxu1 %v1877_v63 }
 0xdf2   :  { %v5950_v0 = vpop.f32.mrf.mxu2 }
 0xdf3   :  { %v1760_v29 = vsel %vm225_vm2, %v5950_v0, -inf }
 0xdfa   :  { %v1686_v1 = vpop.f32.mrf.mxu2  ;;  %v1708_v4 = vpop.f32.mrf.mxu3 }
 0xdfb   :  { %v1763_v13 = vsel %vm225_vm2, %v1708_v4, -inf }
 0xe02   :  { %v1710_v7 = vpop.f32.mrf.mxu3 }
 0xe08   :  { %v1756_v9 = vpop.f32.mrf.mxu1 }
 0xe09   :  { %v1769_v56 = vsel %vm225_vm2, %v1756_v9, -inf }
 0xe0a   :  { %1770 = vmax.xlane.f32.xlu1 %v1769_v56 }
 0xe10   :  { %v1758_v10 = vpop.f32.mrf.mxu1 }
 0xe18   :  { %v1732_v11 = vpop.f32.mrf.mxu0 }
 0xe19   :  { %v1766_v40 = vsel %vm225_vm2, %v1732_v11, -inf }
 0xe1a   :  { %1767 = vmax.xlane.f32.xlu2 %v1766_v40 }
 0xe20   :  { %v1734_v51 = vpop.f32.mrf.mxu0 }
 0xe23   :  { %1850 = vrot.lane.b32.xlu1 %v5931_v43, %s5398_s5 }
 0xe2b   :  { %1942 = vrot.lane.b32.xlu1 %v5931_v43, %s5405_s29 }
 0xe32   :  { %1944 = vrot.lane.b32.xlu2 %v5931_v43, %s5404_s28 }
 0xe55   :  { %1764 = vmax.xlane.f32.xlu1 %v1763_v13 }
 0xe6e   :  { %1808 = vrot.lane.b32.xlu1 %v5923_v62, %s5398_s5 }
 0xe76   :  { %1921 = vrot.lane.b32.xlu1 %v5927_v37, %s5404_s28 }
 0xe7d   :  { %v1771_v52 = vpop.xlane.xlu1 %1770 }
 0xe7e   :  { %v1775_v12 = vsub.f32 %v1756_v9, %v1771_v52  ;;  %1896 = vrot.lane.b32.xlu1 %v5923_v62, %s5405_s29 }
 0xe80   :  { %v1782_v57 = vmul.f32 1.442695, %v1775_v12 }
 0xe82   :  { %5079 = vpow2.f32 %v1782_v57 }
 0xe86   :  { %1919 = vrot.lane.b32.xlu1 %v5927_v37, %s5405_s29 }
 0xe88   :  { %v5080_v15 = vpop.eup %5079 }
 0xe89   :  { %v1793_v53 = vsel %vm225_vm2, %v5080_v15, 0.0 }
 0xe8a   :  { %1794 = vadd.xlane.f32.xlu2 %v1793_v53 }
 0xe8d   :  { %v1768_v54 = vpop.xlane.xlu2 %1767 }
 0xe8e   :  { %v1774_v14 = vsub.f32 %v1732_v11, %v1768_v54 }
 0xe90   :  { %v1780_v61 = vmul.f32 1.442695, %v1774_v14 }
 0xe92   :  { %5081 = vpow2.f32 %v1780_v61 }
 0xe95   :  { %v1945_v16 = vpop.permute.xlu2 %1944  ;;  %v1851_v17 = vpop.permute.xlu1 %1850 }
 0xe96   :  { %v1950_v18 = vsel %vm225_vm2, %v1945_v16, 0  ;;  %v1856_v20 = vsel %vm370_vm3, %v1851_v17, 0 }
 0xe97   :  { %1865 = vmatpush.bf16.msra.mxu0 %v1856_v20 }
 0xe98   :  { %v5082_v38 = vpop.eup %5081 }
 0xe99   :  { %v1790_v5 = vsel %vm225_vm2, %v5082_v38, 0.0 }
 0xe9a   :  { %1791 = vadd.xlane.f32.xlu0 %v1790_v5 }
 0xe9b   :  { %1959 = vmatpush.bf16.xpose.msrb.mxu0 %v1950_v18 }
 0xe9d   :  { %v1943_v19 = vpop.permute.xlu1 %1942 }
 0xea2   :  { %1965 = vrot.lane.b32.xlu2 %v5935_v58, %s5405_s29 }
 0xeae   :  { %1967 = vrot.lane.b32.xlu0 %v5935_v58, %s5404_s28 }
 0xec8   :  { %v1765_v22 = vpop.xlane.xlu1 %1764 }
 0xec9   :  { %v1773_v28 = vsub.f32 %v1708_v4, %v1765_v22 }
 0xecb   :  { %v1778_v21 = vmul.f32 1.442695, %v1773_v28 }
 0xecd   :  { %5083 = vpow2.f32 %v1778_v21 }
 0xed3   :  { %v5979_v25 = vpop.eup %5083 }
 0xed4   :  { %v1787_v31 = vsel %vm225_vm2, %v5979_v25, 0.0 }
 0xed8   :  { %1761 = vmax.xlane.f32.xlu0 %v1760_v29 }
 0xee0   :  { %1788 = vadd.xlane.f32.xlu0 %v1787_v31  ;;  %v1809_v32 = vpop.permute.xlu1 %1808 }
 0xee1   :  { %v1814_v33 = vsel %vm370_vm3, %v1809_v32, 0 }
 0xee2   :  { %1823 = vmatpush.bf16.msra.mxu2 %v1814_v33 }
 0xee8   :  { %v1922_v54 = vpop.permute.xlu1 %1921 }
 0xee9   :  { %v1927_v18 = vsel %vm225_vm2, %v1922_v54, 0 }
 0xef0   :  { %v1897_v22 = vpop.permute.xlu1 %1896 }
 0xef4   :  { %1898 = vrot.lane.b32.xlu0 %v5923_v62, %s5404_s28 }
 0xef8   :  { %v1920_v28 = vpop.permute.xlu1 %1919 }
 0xefd   :  { %v1795_v23 = vpop.xlane.xlu2 %1794 }
 0xefe   :  { %5085 = vrcp.f32 %v1795_v23 }
 0xf04   :  { %v5086_v8 = vpop.eup %5085 }
 0xf05   :  { %v1803_v34 = vmul.f32 %v5086_v8, %v5080_v15  ;;  %v1966_v59 = vpop.permute.xlu2 %1965 }
 0xf07   :  { %v1807_v36 = vpack.c.bf16 %v1803_v34, %v1803_v34 }
 0xf09   :  { %4790 = vmatmul.msk.bf16.vlgmr.msrb.gmra.mxu1 %vm225_vm2, %v1807_v36 }
 0xf0d   :  { %v1792_v55 = vpop.xlane.xlu0 %1791 }
 0xf0e   :  { %5087 = vrcp.f32 %v1792_v55 }
 0xf14   :  { %v5088_v41 = vpop.eup %5087 }
 0xf15   :  { %v1802_v42 = vmul.f32 %v5088_v41, %v5082_v38 }
 0xf17   :  { %v1806_v30 = vpack.c.bf16 %v1802_v42, %v1802_v42 }
 0xf19   :  { %4789 = vmatmul.msk.bf16.vlgmr.msra.gmra.mxu0 %vm225_vm2, %v1806_v30 }
 0xf20   :  { %v1968_v44 = vpop.permute.xlu0 %1967 }
 0xf21   :  { %v1973_v46 = vsel %vm225_vm2, %v1968_v44, 0 }
 0xf22   :  { %1982 = vmatpush.bf16.xpose.msra.mxu1 %v1973_v46 }
 0xf29   :  { %4793 = vmatmul.msk.bf16.vlgmr.msrb.gmra.mxu0 %vm225_vm2, %v1943_v19  ;;  %4794 = vmatmul.msk.bf16.vlgmr.msra.gmra.mxu1 %vm225_vm2, %v1966_v59 }
 0xf4b   :  { %v1762_v47 = vpop.xlane.xlu0 %1761 }
 0xf4c   :  { %v1772_v6 = vsub.f32 %v5950_v0, %v1762_v47 }
 0xf4e   :  { %v1776_v48 = vmul.f32 1.442695, %v1772_v6 }
 0xf50   :  { %5089 = vpow2.f32 %v1776_v48 }
 0xf53   :  { %v1789_v50 = vpop.xlane.xlu0 %1788 }
 0xf54   :  { %5091 = vrcp.f32 %v1789_v50 }
 0xf56   :  { %v5090_v45 = vpop.eup %5089 }
 0xf57   :  { %v1784_v49 = vsel %vm225_vm2, %v5090_v45, 0.0 }
 0xf58   :  { %1785 = vadd.xlane.f32.xlu2 %v1784_v49 }
 0xf5a   :  { %v5092_v15 = vpop.eup %5091 }
 0xf5b   :  { %v1801_v14 = vmul.f32 %v5092_v15, %v5979_v25 }
 0xf5d   :  { %v1805_v38 = vpack.c.bf16 %v1801_v14, %v1801_v14 }
 0xf66   :  { %v1899_v35 = vpop.permute.xlu0 %1898 }
 0xf67   :  { %v1904_v39 = vsel %vm225_vm2, %v1899_v35, 0 }
 0xf68   :  { %1913 = vmatpush.bf16.xpose.msrb.mxu2 %v1904_v39 }
 0xf70   :  { %1829 = vrot.lane.b32.xlu2 %v5927_v37, %s5398_s5 }
 0xf78   :  { %2099 = vrot.lane.b32.xlu2 %v5935_v58, %s5408_s11 }
 0xf86   :  { %v1888_v60 = vpop.f32.mrf.mxu1 }
 0xf87   :  { %v1895_v0 = vpack.c.bf16 %v1888_v60, %v1888_v60 }
 0xf89   :  { %v5998_v7 = vunpack.c.l.b16 %v1895_v0 }
 0xf8e   :  { %v1890_v63 = vpop.f32.mrf.mxu1 }
 0xf96   :  { %v1867_v1 = vpop.f32.mrf.mxu0 }
 0xf97   :  { %v1894_v4 = vpack.c.bf16 %v1867_v1, %v1867_v1 }
 0xf99   :  { %v6000_v9 = vunpack.c.l.b16 %v1894_v4 }
 0xf9b   :  { %v2171_v56 = vpack.c.b16 %v5998_v7, %v6000_v9 }
 0xf9e   :  { %v1869_v10 = vpop.f32.mrf.mxu0 }
 0xfa6   :  { %v1961_v11 = vpop.f32.mrf.mxu0  ;;  %v1984_v40 = vpop.f32.mrf.mxu1 }
 0xfa7   :  { %v1994_v51 = vsel %vm225_vm2, %v1961_v11, -inf  ;;  %v1997_v13 = vsel %vm225_vm2, %v1984_v40, -inf }
 0xfa8   :  { %1995 = vmax.xlane.f32.xlu0 %v1994_v51  ;;  %1998 = vmax.xlane.f32.xlu2 %v1997_v13 }
 0xfae   :  { %v1963_v52 = vpop.f32.mrf.mxu0  ;;  %v1986_v12 = vpop.f32.mrf.mxu1 }
 0xfbc   :  { %2078 = vrot.lane.b32.xlu0 %v5931_v43, %s5408_s11 }
 0xfc0   :  { %2223 = vrot.lane.b32.xlu2 %v5927_v37, %s5407_s7 }
 0xfc4   :  { %2202 = vrot.lane.b32.xlu0 %v5923_v62, %s5406_s30 }
 0xfcb   :  { %v1786_v57 = vpop.xlane.xlu2 %1785 }
 0xfcc   :  { %5093 = vrcp.f32 %v1786_v57  ;;  %2200 = vrot.lane.b32.xlu0 %v5923_v62, %s5407_s7 }
 0xfd2   :  { %v5094_v53 = vpop.eup %5093 }
 0xfd3   :  { %v1800_v61 = vmul.f32 %v5094_v53, %v5090_v45  ;;  %v1830_v16 = vpop.permute.xlu2 %1829 }
 0xfd4   :  { %v1835_v17 = vsel %vm370_vm3, %v1830_v16, 0  ;;  %2248 = vrot.lane.b32.xlu0 %v5931_v43, %s5406_s30 }
 0xfd5   :  { %v1804_v20 = vpack.c.bf16 %v1800_v61, %v1800_v61  ;;  %1844 = vmatpush.bf16.msra.mxu3 %v1835_v17 }
 0xfd7   :  { %4787 = vmatmul.msk.bf16.vlgmr.msra.gmra.mxu2 %vm225_vm2, %v1804_v20 }
 0xfd8   :  { %4788 = vmatmul.msk.bf16.vlgmr.msra.gmra.mxu3 %vm225_vm2, %v1805_v38 }
 0xfd9   :  { %1936 = vmatpush.bf16.xpose.msrb.mxu3 %v1927_v18 }
 0xfdb   :  { %v2100_v5 = vpop.permute.xlu2 %2099 }
 0xfdc   :  { %v2105_v19 = vsel %vm370_vm3, %v2100_v5, 0  ;;  %2271 = vrot.lane.b32.xlu0 %v5935_v58, %s5406_s30 }
 0xfdd   :  { %2114 = vmatpush.bf16.msrb.mxu1 %v2105_v19 }
 0xfe7   :  { %4791 = vmatmul.msk.bf16.vlgmr.msrb.gmra.mxu2 %vm225_vm2, %v1897_v22 }
 0xfe8   :  { %4792 = vmatmul.msk.bf16.vlgmr.msrb.gmra.mxu3 %vm225_vm2, %v1920_v28 }
0x101b   :  { %v1999_v21 = vpop.xlane.xlu2 %1998  ;;  %v1996_v29 = vpop.xlane.xlu0 %1995 }
0x101c   :  { %v2003_v25 = vsub.f32 %v1984_v40, %v1999_v21  ;;  %v2002_v31 = vsub.f32 %v1961_v11, %v1996_v29 }
0x101e   :  { %v2010_v32 = vmul.f32 1.442695, %v2003_v25  ;;  %v2008_v33 = vmul.f32 1.442695, %v2002_v31 }
0x1020   :  { %5095 = vpow2.f32 %v2010_v32 }
0x1021   :  { %5097 = vpow2.f32 %v2008_v33 }
0x1023   :  { %v2224_v4 = vpop.permute.xlu2 %2223 }
0x1026   :  { %v5096_v23 = vpop.eup %5095 }
0x1027   :  { %v5098_v8 = vpop.eup %5097  ;;  %v2021_v34 = vsel %vm225_vm2, %v5096_v23, 0.0 }
0x1028   :  { %2022 = vadd.xlane.f32.xlu2 %v2021_v34  ;;  %v2018_v36 = vsel %vm225_vm2, %v5098_v8, 0.0 }
0x1029   :  { %2019 = vadd.xlane.f32.xlu1 %v2018_v36 }
0x102e   :  { %v2079_v55 = vpop.permute.xlu0 %2078 }
0x102f   :  { %v2084_v41 = vsel %vm370_vm3, %v2079_v55, 0 }
0x1030   :  { %2093 = vmatpush.bf16.msra.mxu0 %v2084_v41 }
0x1036   :  { %v2203_v42 = vpop.permute.xlu0 %2202 }
0x1037   :  { %v2208_v30 = vsel %vm225_vm2, %v2203_v42, 0 }
0x1038   :  { %2217 = vmatpush.bf16.xpose.msrb.mxu0 %v2208_v30 }
0x103e   :  { %v2201_v10 = vpop.permute.xlu0 %2200 }
0x1040   :  { %2246 = vrot.lane.b32.xlu2 %v5931_v43, %s5407_s7 }
0x1042   :  { %2225 = vrot.lane.b32.xlu1 %v5927_v37, %s5406_s30 }
0x1046   :  { %v2249_v57 = vpop.permute.xlu0 %2248 }
0x1047   :  { %v2254_v54 = vsel %vm225_vm2, %v2249_v57, 0 }
0x104a   :  { %2269 = vrot.lane.b32.xlu1 %v5935_v58, %s5407_s7 }
0x104e   :  { %v2272_v14 = vpop.permute.xlu0 %2271 }
0x104f   :  { %v2277_v17 = vsel %vm225_vm2, %v2272_v14, 0 }
0x105a   :  { %v1825_v44 = vpop.f32.mrf.mxu2 }
0x105b   :  { %v1892_v46 = vpack.c.bf16 %v1825_v44, %v1825_v44  ;;  %v1846_v59 = vpop.f32.mrf.mxu3 }
0x105c   :  { %v1893_v47 = vpack.c.bf16 %v1846_v59, %v1846_v59 }
0x105d   :  { %v6036_v6 = vunpack.c.l.b16 %v1892_v46 }
0x105e   :  { %v6038_v48 = vunpack.c.l.b16 %v1893_v47 }
0x1060   :  { %v2170_v45 = vpack.c.b16 %v6038_v48, %v6036_v6 }
0x1062   :  { %v1827_v49 = vpop.f32.mrf.mxu2 }
0x1063   :  { %v1848_v50 = vpop.f32.mrf.mxu3 }
0x106a   :  { %v1915_v35 = vpop.f32.mrf.mxu2 }
0x106b   :  { %v1938_v39 = vpop.f32.mrf.mxu3  ;;  %v1988_v60 = vsel %vm225_vm2, %v1915_v35, -inf }
0x106c   :  { %1989 = vmax.xlane.f32.xlu2 %v1988_v60  ;;  %v1991_v63 = vsel %vm225_vm2, %v1938_v39, -inf }
0x106d   :  { %1992 = vmax.xlane.f32.xlu0 %v1991_v63 }
0x1072   :  { %v1917_v0 = vpop.f32.mrf.mxu2 }
0x1073   :  { %v1940_v1 = vpop.f32.mrf.mxu3 }
0x1081   :  { %2036 = vrot.lane.b32.xlu0 %v5923_v62, %s5408_s11 }
0x109b   :  { %v2023_v11 = vpop.xlane.xlu2 %2022 }
0x109c   :  { %5099 = vrcp.f32 %v2023_v11  ;;  %v2020_v40 = vpop.xlane.xlu1 %2019 }
0x109d   :  { %5101 = vrcp.f32 %v2020_v40 }
0x10a2   :  { %v5100_v51 = vpop.eup %5099 }
0x10a3   :  { %v5102_v13 = vpop.eup %5101  ;;  %v2031_v52 = vmul.f32 %v5100_v51, %v5096_v23  ;;  %v2247_v18 = vpop.permute.xlu2 %2246 }
0x10a4   :  { %v2030_v12 = vmul.f32 %v5102_v13, %v5098_v8 }
0x10a5   :  { %v2035_v15 = vpack.c.bf16 %v2031_v52, %v2031_v52 }
0x10a6   :  { %v2034_v53 = vpack.c.bf16 %v2030_v12, %v2030_v12  ;;  %v1601_v12 = vld [vmem:[#allocation7 + $0x10] sm:$0xf] }
0x10a7   :  { %4798 = vmatmul.msk.bf16.vlgmr.msrb.gmra.mxu1 %vm225_vm2, %v2035_v15 }
0x10a8   :  { %4797 = vmatmul.msk.bf16.vlgmr.msra.gmra.mxu0 %vm225_vm2, %v2034_v53  ;;  %v2179_v53 = vsel %vm370_vm3, %v1601_v12, 0 }
0x10a9   :  { %2263 = vmatpush.bf16.xpose.msra.mxu0 %v2254_v54 }
0x10b4   :  { %v2226_v61 = vpop.permute.xlu1 %2225 }
0x10b5   :  { %v2231_v16 = vsel %vm225_vm2, %v2226_v61, 0 }
0x10b6   :  { %2240 = vmatpush.bf16.xpose.msra.mxu1 %v2231_v16 }
0x10b8   :  { %4803 = vmatmul.msk.bf16.vlgmr.msrb.gmra.mxu0 %vm225_vm2, %v2201_v10 }
0x10bc   :  { %v2270_v20 = vpop.permute.xlu1 %2269 }
0x10bd   :  { %4804 = vmatmul.msk.bf16.vlgmr.msra.gmra.mxu1 %vm225_vm2, %v2224_v4 }
0x10be   :  { %2286 = vmatpush.bf16.xpose.msrb.mxu1 %v2277_v17 }
0x10c8   :  { %4805 = vmatmul.msk.bf16.vlgmr.msra.gmra.mxu0 %vm225_vm2, %v2247_v18 }
0x10cd   :  { %4806 = vmatmul.msk.bf16.vlgmr.msrb.gmra.mxu1 %vm225_vm2, %v2270_v20 }
0x10df   :  { %v1990_v38 = vpop.xlane.xlu2 %1989 }
0x10e0   :  { %v2000_v5 = vsub.f32 %v1915_v35, %v1990_v38  ;;  %v1993_v19 = vpop.xlane.xlu0 %1992 }
0x10e1   :  { %v2001_v22 = vsub.f32 %v1938_v39, %v1993_v19 }
0x10e2   :  { %v2004_v28 = vmul.f32 1.442695, %v2000_v5 }
0x10e3   :  { %v2006_v21 = vmul.f32 1.442695, %v2001_v22 }
0x10e4   :  { %5103 = vpow2.f32 %v2004_v28 }
0x10e5   :  { %5105 = vpow2.f32 %v2006_v21 }
0x10ea   :  { %v5104_v29 = vpop.eup %5103 }
0x10eb   :  { %v5106_v25 = vpop.eup %5105  ;;  %v2012_v31 = vsel %vm225_vm2, %v5104_v29, 0.0 }
0x10ec   :  { %2013 = vadd.xlane.f32.xlu1 %v2012_v31  ;;  %v2015_v32 = vsel %vm225_vm2, %v5106_v25, 0.0 }
0x10ed   :  { %2016 = vadd.xlane.f32.xlu2 %v2015_v32 }
0x10f3   :  { %v2037_v33 = vpop.permute.xlu0 %2036 }
0x10f4   :  { %v2042_v23 = vsel %vm370_vm3, %v2037_v33, 0 }
0x10f5   :  { %2051 = vmatpush.bf16.msra.mxu2 %v2042_v23 }
0x1105   :  { %2057 = vrot.lane.b32.xlu1 %v5927_v37, %s5408_s11  ;;  %2361 = vrot.lane.b32.xlu2 %v5927_v37, %s5409_s12 }
0x1124   :  { %v2116_v8 = vpop.f32.mrf.mxu1 }
0x1125   :  { %v2095_v34 = vpop.f32.mrf.mxu0  ;;  %v2123_v36 = vpack.c.bf16 %v2116_v8, %v2116_v8 }
0x1126   :  { %v2122_v55 = vpack.c.bf16 %v2095_v34, %v2095_v34 }
0x1127   :  { %v6062_v41 = vunpack.c.l.b16 %v2123_v36 }
0x1128   :  { %v6064_v42 = vunpack.c.l.b16 %v2122_v55 }
0x112a   :  { %v2133_v30 = vpack.c.b16 %v6062_v41, %v6064_v42 }
0x112c   :  { %v2118_v44 = vpop.f32.mrf.mxu1 }
0x112d   :  { %v2097_v46 = vpop.f32.mrf.mxu0 }
0x1135   :  { %v6068_v59 = vpop.f32.mrf.mxu0 }
0x113a   :  { %v2242_v47 = vpop.f32.mrf.mxu1 }
0x113b   :  { %v2295_v49 = vsel %vm225_vm2, %v2242_v47, -inf }
0x113c   :  { %2296 = vmax.xlane.f32.xlu2 %v2295_v49 }
0x113d   :  { %v2221_v50 = vpop.f32.mrf.mxu0 }
0x1142   :  { %v2244_v35 = vpop.f32.mrf.mxu1 }
0x1143   :  { %v2292_v35 = vsel %vm225_vm2, %v6068_v59, -inf }
0x1145   :  { %v2265_v39 = vpop.f32.mrf.mxu0 }
0x1146   :  { %v2298_v60 = vsel %vm225_vm2, %v2265_v39, -inf }
0x1147   :  { %2299 = vmax.xlane.f32.xlu2 %v2298_v60 }
0x114a   :  { %v6072_v63 = vpop.f32.mrf.mxu1 }
0x114b   :  { %v2301_v1 = vsel %vm225_vm2, %v6072_v63, -inf }
0x114d   :  { %v2267_v0 = vpop.f32.mrf.mxu0 }
0x114f   :  { %2302 = vmax.xlane.f32.xlu2 %v2301_v1 }
0x1152   :  { %v2290_v4 = vpop.f32.mrf.mxu1 }
0x115f   :  { %v2014_v10 = vpop.xlane.xlu1 %2013 }
0x1160   :  { %5107 = vrcp.f32 %v2014_v10  ;;  %v2017_v13 = vpop.xlane.xlu2 %2016 }
0x1161   :  { %5109 = vrcp.f32 %v2017_v13 }
0x1166   :  { %v5108_v11 = vpop.eup %5107 }
0x1167   :  { %v2028_v40 = vmul.f32 %v5108_v11, %v5104_v29  ;;  %2382 = vrot.lane.b32.xlu2 %v5931_v43, %s5409_s12  ;;  %v5110_v52 = vpop.eup %5109  ;;  %v1602_v29 = vld [vmem:[#allocation7 + $0x14] sm:$0xf] }
0x1168   :  { %v2029_v57 = vmul.f32 %v5110_v52, %v5106_v25  ;;  %v2362_v14 = vpop.permute.xlu2 %2361  ;;  %v2141_v25 = vsel %vm370_vm3, %v1602_v29, 0 }
0x1169   :  { %v2032_v51 = vpack.c.bf16 %v2028_v40, %v2028_v40  ;;  %v2367_v16 = vsel %vm370_vm3, %v2362_v14, 0  ;;  %2150 = vmatpush.bf16.msrb.mxu2 %v2141_v25 }
0x116a   :  { %v2033_v61 = vpack.c.bf16 %v2029_v57, %v2029_v57 }
0x116b   :  { %4795 = vmatmul.msk.bf16.vlgmr.msra.gmra.mxu2 %vm225_vm2, %v2032_v51 }
0x116f   :  { %2472 = vrot.lane.b32.xlu2 %v5923_v62, %s5411_s3 }
0x1177   :  { %2470 = vrot.lane.b32.xlu2 %v5923_v62, %s5410_s13  ;;  %v2058_v15 = vpop.permute.xlu1 %2057 }
0x1178   :  { %v2063_v54 = vsel %vm370_vm3, %v2058_v15, 0 }
0x1179   :  { %2072 = vmatpush.bf16.msra.mxu3 %v2063_v54 }
0x117c   :  { %4796 = vmatmul.msk.bf16.vlgmr.msra.gmra.mxu3 %vm225_vm2, %v2033_v61 }
0x117d   :  { %2188 = vmatpush.bf16.msrb.mxu3 %v2179_v53 }
0x117f   :  { %2541 = vrot.lane.b32.xlu2 %v5935_v58, %s5411_s3 }
0x1181   :  { %2376 = vmatpush.bf16.msra.mxu3 %v2367_v16 }
0x1187   :  { %2493 = vrot.lane.b32.xlu2 %v5927_v37, %s5410_s13 }
0x118c   :  { %4801 = vmatmul.msk.bf16.vlgmr.msrb.gmra.mxu3 %vm225_vm2, %v2170_v45 }
0x118f   :  { %2539 = vrot.lane.b32.xlu2 %v5935_v58, %s5410_s13 }
0x119c   :  { %4802 = vmatmul.msk.bf16.gmra.mxu3 %vm225_vm2, %v2171_v56 }
0x11af   :  { %v2297_v17 = vpop.xlane.xlu2 %2296 }
0x11b0   :  { %v2305_v18 = vsub.f32 %v2242_v47, %v2297_v17 }
0x11b2   :  { %v2310_v20 = vmul.f32 1.442695, %v2305_v18 }
0x11b4   :  { %5111 = vpow2.f32 %v2310_v20 }
0x11ba   :  { %v5112_v38 = vpop.eup %5111  ;;  %v2300_v5 = vpop.xlane.xlu2 %2299 }
0x11bb   :  { %v2306_v19 = vsub.f32 %v2265_v39, %v2300_v5  ;;  %v2319_v22 = vsel %vm225_vm2, %v5112_v38, 0.0 }
0x11bc   :  { %2320 = vadd.xlane.f32.xlu0 %v2319_v22 }
0x11bd   :  { %v2312_v6 = vmul.f32 1.442695, %v2306_v19 }
0x11bf   :  { %5113 = vpow2.f32 %v2312_v6 }
0x11c2   :  { %v2303_v48 = vpop.xlane.xlu2 %2302 }
0x11c3   :  { %v2307_v32 = vsub.f32 %v6072_v63, %v2303_v48 }
0x11c5   :  { %v5114_v45 = vpop.eup %5113  ;;  %v2314_v33 = vmul.f32 1.442695, %v2307_v32 }
0x11c6   :  { %v2322_v28 = vsel %vm225_vm2, %v5114_v45, 0.0 }
0x11c7   :  { %2323 = vadd.xlane.f32.xlu1 %v2322_v28  ;;  %5115 = vpow2.f32 %v2314_v33 }
0x11ca   :  { %v2383_v7 = vpop.permute.xlu2 %2382 }
0x11cb   :  { %v2388_v9 = vsel %vm370_vm3, %v2383_v7, 0 }
0x11cc   :  { %2397 = vmatpush.bf16.msrb.mxu0 %v2388_v9 }
0x11cd   :  { %v5116_v8 = vpop.eup %5115 }
0x11ce   :  { %v2325_v44 = vsel %vm225_vm2, %v5116_v8, 0.0 }
0x11d0   :  { %2495 = vrot.lane.b32.xlu0 %v5927_v37, %s5411_s3 }
0x11d2   :  { %v2473_v56 = vpop.permute.xlu2 %2472 }
0x11d3   :  { %v2478_v21 = vsel %vm225_vm2, %v2473_v56, 0 }
0x11d4   :  { %2487 = vmatpush.bf16.xpose.msrb.mxu3 %v2478_v21 }
0x11d8   :  { %2518 = vrot.lane.b32.xlu0 %v5931_v43, %s5411_s3 }
0x11da   :  { %v2471_v39 = vpop.permute.xlu2 %2470 }
0x11e0   :  { %2403 = vrot.lane.b32.xlu1 %v5935_v58, %s5409_s12 }
0x11e2   :  { %v2542_v1 = vpop.permute.xlu2 %2541 }
0x11e3   :  { %v2547_v11 = vsel %vm225_vm2, %v2542_v1, 0 }
0x11ea   :  { %v2494_v13 = vpop.permute.xlu2 %2493 }
0x11ee   :  { %v2053_v31 = vpop.f32.mrf.mxu2 }
0x11ef   :  { %v2120_v34 = vpack.c.bf16 %v2053_v31, %v2053_v31 }
0x11f1   :  { %v2128_v46 = vunpack.c.l.b16 %v2120_v34 }
0x11f2   :  { %v2540_v53 = vpop.permute.xlu2 %2539 }
0x11f6   :  { %v2055_v23 = vpop.f32.mrf.mxu2 }
0x11ff   :  { %v2074_v36 = vpop.f32.mrf.mxu3 }
0x1200   :  { %v2121_v55 = vpack.c.bf16 %v2074_v36, %v2074_v36 }
0x1202   :  { %v2129_v47 = vunpack.c.l.b16 %v2121_v55  ;;  %2326 = vadd.xlane.f32.xlu0 %v2325_v44 }
0x1204   :  { %v2132_v49 = vpack.c.b16 %v2129_v47, %v2128_v46 }
0x1206   :  { %4799 = vmatmul.msk.bf16.vlgmr.msrb.gmra.mxu2 %vm225_vm2, %v2132_v49 }
0x1207   :  { %v2076_v50 = vpop.f32.mrf.mxu3 }
0x120a   :  { %2293 = vmax.xlane.f32.xlu1 %v2292_v35 }
0x120f   :  { %v6139_v48 = vpop.f32.mrf.mxu3 }
0x1216   :  { %2516 = vrot.lane.b32.xlu0 %v5931_v43, %s5410_s13  ;;  %4800 = vmatmul.msk.bf16.gmra.mxu2 %vm225_vm2, %v2133_v30 }
0x121e   :  { %2340 = vrot.lane.b32.xlu0 %v5923_v62, %s5409_s12 }
0x122f   :  { %v2321_v60 = vpop.xlane.xlu0 %2320 }
0x1230   :  { %5117 = vrcp.f32 %v2321_v60 }
0x1236   :  { %v5118_v63 = vpop.eup %5117 }
0x1237   :  { %v2333_v0 = vmul.f32 %v5118_v63, %v5112_v38 }
0x1239   :  { %v2337_v4 = vpack.c.bf16 %v2333_v0, %v2333_v0 }
0x123a   :  { %v2324_v10 = vpop.xlane.xlu1 %2323 }
0x123b   :  { %5119 = vrcp.f32 %v2324_v10  ;;  %4808 = vmatmul.msk.bf16.vlgmr.msra.gmra.mxu3 %vm225_vm2, %v2337_v4  ;;  %v1603_v4 = vld [vmem:[#allocation7 + $0x18] sm:$0xf] }
0x123c   :  { %2556 = vmatpush.bf16.xpose.msra.mxu3 %v2547_v11  ;;  %v2445_v10 = vsel %vm370_vm3, %v1603_v4, 0 }
0x1241   :  { %v5120_v41 = vpop.eup %5119 }
0x1242   :  { %v2334_v42 = vmul.f32 %v5120_v41, %v5114_v45  ;;  %v2496_v30 = vpop.permute.xlu0 %2495  ;;  %v6141_v45 = vpop.f32.mrf.mxu3 }
0x1243   :  { %v2501_v40 = vsel %vm225_vm2, %v2496_v30, 0 }
0x1244   :  { %v2338_v51 = vpack.c.bf16 %v2334_v42, %v2334_v42  ;;  %2510 = vmatpush.bf16.xpose.msra.mxu0 %v2501_v40 }
0x1246   :  { %4809 = vmatmul.msk.bf16.vlgmr.msrb.gmra.mxu0 %vm225_vm2, %v2338_v51 }
0x124a   :  { %v2519_v52 = vpop.permute.xlu0 %2518 }
0x124b   :  { %4813 = vmatmul.msk.bf16.vlgmr.msrb.gmra.mxu3 %vm225_vm2, %v2471_v39  ;;  %v2524_v15 = vsel %vm225_vm2, %v2519_v52, 0 }
0x1252   :  { %v2404_v12 = vpop.permute.xlu1 %2403 }
0x1253   :  { %v2409_v57 = vsel %vm370_vm3, %v2404_v12, 0 }
0x1254   :  { %2418 = vmatpush.bf16.msra.mxu1 %v2409_v57 }
0x1256   :  { %4814 = vmatmul.msk.bf16.vlgmr.msra.gmra.mxu0 %vm225_vm2, %v2494_v13 }
0x1258   :  { %2533 = vmatpush.bf16.xpose.msrb.mxu1 %v2524_v15 }
0x125b   :  { %4816 = vmatmul.msk.bf16.vlgmr.msra.gmra.mxu3 %vm225_vm2, %v2540_v53 }
0x1275   :  { %v2327_v54 = vpop.xlane.xlu0 %2326 }
0x1276   :  { %5121 = vrcp.f32 %v2327_v54 }
0x127c   :  { %v5122_v14 = vpop.eup %5121 }
0x127d   :  { %v2335_v61 = vmul.f32 %v5122_v14, %v5116_v8  ;;  %v2294_v16 = vpop.xlane.xlu1 %2293 }
0x127e   :  { %v2304_v17 = vsub.f32 %v6068_v59, %v2294_v16  ;;  %v6143_v59 = vpop.f32.mrf.mxu3 }
0x127f   :  { %v2339_v18 = vpack.c.bf16 %v2335_v61, %v2335_v61 }
0x1280   :  { %v2308_v20 = vmul.f32 1.442695, %v2304_v17 }
0x1281   :  { %4810 = vmatmul.msk.bf16.vlgmr.msra.gmra.mxu1 %vm225_vm2, %v2339_v18 }
0x1282   :  { %5123 = vpow2.f32 %v2308_v20 }
0x1286   :  { %v6145_v28 = vpop.f32.mrf.mxu3 }
0x1288   :  { %v5124_v38 = vpop.eup %5123  ;;  %v2517_v5 = vpop.permute.xlu0 %2516 }
0x1289   :  { %v2316_v19 = vsel %vm225_vm2, %v5124_v38, 0.0  ;;  %v2152_v61 = vpop.f32.mrf.mxu2 }
0x128a   :  { %2317 = vadd.xlane.f32.xlu2 %v2316_v19 }
0x1290   :  { %v2341_v22 = vpop.permute.xlu0 %2340 }
0x1291   :  { %v2346_v6 = vsel %vm370_vm3, %v2341_v22, 0  ;;  %4815 = vmatmul.msk.bf16.vlgmr.msrb.gmra.mxu1 %vm225_vm2, %v2517_v5  ;;  %v6168_v16 = vpop.f32.mrf.mxu2 }
0x1292   :  { %2355 = vmatpush.bf16.msra.mxu2 %v2346_v6 }
0x1296   :  { %2454 = vmatpush.bf16.msrb.mxu2 %v2445_v10 }
0x1299   :  { %v2157_v17 = vpop.f32.mrf.mxu2 }
0x12be   :  { %v6147_v7 = vpop.f32.mrf.mxu3 }
0x12c3   :  { %v2399_v9 = vpop.f32.mrf.mxu0 }
0x12c4   :  { %v2426_v55 = vpack.c.bf16 %v2399_v9, %v2399_v9  ;;  %v2425_v9 = vpack.c.bf16 %v6147_v7, %v6147_v7 }
0x12c6   :  { %v2380_v56 = vpop.f32.mrf.mxu3  ;;  %v6156_v49 = vunpack.c.l.b16 %v2426_v55 }
0x12cb   :  { %v2401_v21 = vpop.f32.mrf.mxu0 }
0x12ce   :  { %v2489_v29 = vpop.f32.mrf.mxu3 }
0x12cf   :  { %v2562_v25 = vsel %vm225_vm2, %v2489_v29, -inf }
0x12d0   :  { %2563 = vmax.xlane.f32.xlu0 %v2562_v25 }
0x12d3   :  { %v2512_v31 = vpop.f32.mrf.mxu0 }
0x12d4   :  { %v2565_v32 = vsel %vm225_vm2, %v2512_v31, -inf }
0x12d5   :  { %2566 = vmax.xlane.f32.xlu1 %v2565_v32 }
0x12d6   :  { %v2491_v33 = vpop.f32.mrf.mxu3 }
0x12db   :  { %v2514_v23 = vpop.f32.mrf.mxu0 }
0x12de   :  { %v2558_v8 = vpop.f32.mrf.mxu3 }
0x12df   :  { %v2571_v34 = vsel %vm225_vm2, %v2558_v8, -inf }
0x12e0   :  { %2572 = vmax.xlane.f32.xlu1 %v2571_v34 }
0x12e4   :  { %2631 = vrot.lane.b32.xlu0 %v5927_v37, %s5412_s14 }
0x12e6   :  { %v2560_v36 = vpop.f32.mrf.mxu3 }
0x12ec   :  { %2652 = vrot.lane.b32.xlu0 %v5931_v43, %s5412_s14 }
0x12fd   :  { %v2318_v44 = vpop.xlane.xlu2 %2317 }
0x12fe   :  { %5125 = vrcp.f32 %v2318_v44  ;;  %v2420_v46 = vpop.f32.mrf.mxu1 }
0x12ff   :  { %v2427_v47 = vpack.c.bf16 %v2420_v46, %v2420_v46 }
0x1301   :  { %v2435_v50 = vunpack.c.l.b16 %v2427_v47 }
0x1303   :  { %v2437_v35 = vpack.c.b16 %v2435_v50, %v6156_v49 }
0x1304   :  { %v5126_v39 = vpop.eup %5125 }
0x1305   :  { %v2332_v60 = vmul.f32 %v5126_v39, %v5124_v38  ;;  %v6170_v38 = vpop.f32.mrf.mxu2 }
0x1306   :  { %v2422_v63 = vpop.f32.mrf.mxu1 }
0x1307   :  { %v2336_v0 = vpack.c.bf16 %v2332_v60, %v2332_v60 }
0x1309   :  { %4807 = vmatmul.msk.bf16.vlgmr.msra.gmra.mxu2 %vm225_vm2, %v2336_v0  ;;  %v2191_v0 = vadd.f32 %v6139_v48, %v2152_v61 }
0x130e   :  { %v2535_v37 = vpop.f32.mrf.mxu1 }
0x130f   :  { %v2568_v1 = vsel %vm225_vm2, %v2535_v37, -inf }
0x1310   :  { %2569 = vmax.xlane.f32.xlu2 %v2568_v1 }
0x1316   :  { %v2537_v43 = vpop.f32.mrf.mxu1 }
0x1343   :  { %v2564_v11 = vpop.xlane.xlu0 %2563 }
0x1344   :  { %v2574_v41 = vsub.f32 %v2489_v29, %v2564_v11 }
0x1346   :  { %v2578_v42 = vmul.f32 1.442695, %v2574_v41 }
0x1348   :  { %5127 = vpow2.f32 %v2578_v42  ;;  %v2567_v30 = vpop.xlane.xlu1 %2566 }
0x1349   :  { %v2575_v40 = vsub.f32 %v2512_v31, %v2567_v30  ;;  %v2196_v30 = vadd.f32 %v6143_v59, %v2157_v17 }
0x134b   :  { %v2580_v51 = vmul.f32 1.442695, %v2575_v40 }
0x134d   :  { %5129 = vpow2.f32 %v2580_v51 }
0x134e   :  { %v5128_v13 = vpop.eup %5127 }
0x134f   :  { %v2586_v52 = vsel %vm225_vm2, %v5128_v13, 0.0 }
0x1350   :  { %2587 = vadd.xlane.f32.xlu2 %v2586_v52  ;;  %v1604_v52 = vld [vmem:[#allocation7 + $0x1c] sm:$0xf] }
0x1351   :  { %v2715_v48 = vsel %vm370_vm3, %v1604_v52, 0 }
0x1353   :  { %v5130_v12 = vpop.eup %5129  ;;  %v2573_v18 = vpop.xlane.xlu1 %2572 }
0x1354   :  { %v2589_v57 = vsel %vm225_vm2, %v5130_v12, 0.0  ;;  %v2577_v19 = vsub.f32 %v2558_v8, %v2573_v18 }
0x1355   :  { %2590 = vadd.xlane.f32.xlu1 %v2589_v57 }
0x1356   :  { %v2632_v15 = vpop.permute.xlu0 %2631  ;;  %v2584_v6 = vmul.f32 1.442695, %v2577_v19 }
0x1357   :  { %v2637_v53 = vsel %vm370_vm3, %v2632_v15, 0 }
0x1358   :  { %2646 = vmatpush.bf16.msra.mxu1 %v2637_v53 }
0x135e   :  { %v2653_v54 = vpop.permute.xlu0 %2652 }
0x135f   :  { %v2658_v14 = vsel %vm370_vm3, %v2653_v54, 0 }
0x1360   :  { %2667 = vmatpush.bf16.msra.mxu2 %v2658_v14 }
0x1368   :  { %2610 = vrot.lane.b32.xlu2 %v5923_v62, %s5412_s14  ;;  %v2433_v62 = vunpack.c.l.b16 %v2425_v9 }
0x1383   :  { %v2570_v20 = vpop.xlane.xlu2 %2569 }
0x1384   :  { %v2576_v5 = vsub.f32 %v2535_v37, %v2570_v20 }
0x1386   :  { %v2582_v22 = vmul.f32 1.442695, %v2576_v5 }
0x1388   :  { %5131 = vpow2.f32 %v2582_v22 }
0x1389   :  { %5133 = vpow2.f32 %v2584_v6 }
0x138c   :  { %v2357_v56 = vpop.f32.mrf.mxu2 }
0x138d   :  { %v2424_v21 = vpack.c.bf16 %v2357_v56, %v2357_v56 }
0x138e   :  { %v5132_v29 = vpop.eup %5131 }
0x138f   :  { %v2432_v25 = vunpack.c.l.b16 %v2424_v21  ;;  %v2592_v31 = vsel %vm225_vm2, %v5132_v29, 0.0  ;;  %v5134_v33 = vpop.eup %5133 }
0x1390   :  { %2593 = vadd.xlane.f32.xlu1 %v2592_v31  ;;  %v2595_v8 = vsel %vm225_vm2, %v5134_v33, 0.0 }
0x1391   :  { %v2436_v32 = vpack.c.b16 %v2433_v62, %v2432_v25  ;;  %v6194_v62 = vld [vmem:[%s6696_s8 + $0x8] sm:$0x7f] }
0x1392   :  { %v2740_v25 = vperm.slane %v6194_v62, 0 }
0x1393   :  { %4811 = vmatmul.msk.bf16.vlgmr.msrb.gmra.mxu2 %vm225_vm2, %v2436_v32 }
0x1394   :  { %v2359_v23 = vpop.f32.mrf.mxu2 }
0x1395   :  { %v2193_v23 = vadd.f32 %v6141_v45, %v6168_v16  ;;  %v2198_v45 = vadd.f32 %v6145_v28, %v6170_v38 }
0x1398   :  { %2596 = vadd.xlane.f32.xlu1 %v2595_v8 }
0x13a3   :  { %4812 = vmatmul.msk.bf16.gmra.mxu2 %vm225_vm2, %v2437_v35 }
0x13b1   :  { %2673 = vrot.lane.b32.xlu1 %v5935_v58, %s5412_s14 }
0x13c3   :  { %v2588_v7 = vpop.xlane.xlu2 %2587 }
0x13c4   :  { %5135 = vrcp.f32 %v2588_v7 }
0x13c8   :  { %v2591_v34 = vpop.xlane.xlu1 %2590 }
0x13c9   :  { %5137 = vrcp.f32 %v2591_v34 }
0x13ca   :  { %v5136_v36 = vpop.eup %5135 }
0x13cb   :  { %v2602_v55 = vmul.f32 %v5136_v36, %v5128_v13  ;;  %v2611_v44 = vpop.permute.xlu2 %2610 }
0x13cc   :  { %v2616_v46 = vsel %vm370_vm3, %v2611_v44, 0 }
0x13cd   :  { %v2606_v47 = vpack.c.bf16 %v2602_v55, %v2602_v55  ;;  %2625 = vmatpush.bf16.msrb.mxu0 %v2616_v46 }
0x13cf   :  { %v5138_v49 = vpop.eup %5137 }
0x13d0   :  { %v2603_v50 = vmul.f32 %v5138_v49, %v5130_v12  ;;  %4817 = vmatmul.msk.bf16.vlgmr.msrb.gmra.mxu0 %vm225_vm2, %v2606_v47 }
0x13d1   :  { %2724 = vmatpush.bf16.msra.mxu0 %v2715_v48 }
0x13d2   :  { %v2607_v39 = vpack.c.bf16 %v2603_v50, %v2603_v50 }
0x13d4   :  { %4818 = vmatmul.msk.bf16.vlgmr.msra.gmra.mxu1 %vm225_vm2, %v2607_v39 }
0x1403   :  { %v2594_v35 = vpop.xlane.xlu1 %2593 }
0x1404   :  { %5139 = vrcp.f32 %v2594_v35 }
0x140a   :  { %v5140_v58 = vpop.eup %5139 }
0x140b   :  { %v2604_v60 = vmul.f32 %v5140_v58, %v5132_v29  ;;  %v2597_v37 = vpop.xlane.xlu1 %2596 }
0x140c   :  { %5141 = vrcp.f32 %v2597_v37 }
0x140d   :  { %v2608_v63 = vpack.c.bf16 %v2604_v60, %v2604_v60 }
0x140f   :  { %4819 = vmatmul.msk.bf16.vlgmr.msra.gmra.mxu2 %vm225_vm2, %v2608_v63 }
0x1412   :  { %v5142_v10 = vpop.eup %5141 }
0x1413   :  { %v2605_v11 = vmul.f32 %v5142_v10, %v5134_v33 }
0x1415   :  { %v2609_v40 = vpack.c.bf16 %v2605_v11, %v2605_v11 }
0x1416   :  { %v2456_v1 = vpop.f32.mrf.mxu2 }
0x1417   :  { %v2466_v43 = vadd.f32 %v2456_v1, %v2191_v0 }
0x141e   :  { %v2458_v4 = vpop.f32.mrf.mxu2 }
0x141f   :  { %v2467_v7 = vadd.f32 %v2458_v4, %v2193_v23 }
0x1423   :  { %v2674_v41 = vpop.permute.xlu1 %2673 }
0x1424   :  { %v2679_v42 = vsel %vm370_vm3, %v2674_v41, 0 }
0x1425   :  { %2688 = vmatpush.bf16.msrb.mxu3 %v2679_v42 }
0x1426   :  { %v2461_v51 = vpop.f32.mrf.mxu2 }
0x1427   :  { %v2468_v13 = vadd.f32 %v2461_v51, %v2196_v30 }
0x1428   :  { %4820 = vmatmul.msk.bf16.vlgmr.msrb.gmra.mxu3 %vm225_vm2, %v2609_v40 }
0x142e   :  { %v2463_v17 = vpop.f32.mrf.mxu2 }
0x142f   :  { %v2469_v16 = vadd.f32 %v2463_v17, %v2198_v45 }
0x144d   :  { %v2627_v12 = vpop.f32.mrf.mxu0 }
0x144e   :  { %v2694_v57 = vpack.c.bf16 %v2627_v12, %v2627_v12 }
0x1450   :  { %v2702_v54 = vunpack.c.l.b16 %v2694_v57 }
0x1451   :  { %v2648_v15 = vpop.f32.mrf.mxu1 }
0x1452   :  { %v2695_v53 = vpack.c.bf16 %v2648_v15, %v2648_v15  ;;  %v4954_v15 = vld [vmem:[#allocation8 + $0x28] sm:$0xff] }
0x1453   :  { %2874 = vmatpush.bf16.msrb.mxu1 %v4954_v15 }
0x1454   :  { %v2703_v14 = vunpack.c.l.b16 %v2695_v53 }
0x1455   :  { %v2629_v61 = vpop.f32.mrf.mxu0 }
0x1456   :  { %v2706_v18 = vpack.c.b16 %v2703_v14, %v2702_v54  ;;  %v4953_v61 = vld [vmem:[#allocation8 + $0x20] sm:$0xff] }
0x1457   :  { %2875 = vmatpush.bf16.msrb.mxu1 %v4953_v61 }
0x1458   :  { %4821 = vmatmul.msk.bf16.vlgmr.msra.gmra.mxu0 %vm225_vm2, %v2706_v18 }
0x1459   :  { %v2650_v59 = vpop.f32.mrf.mxu1 }
0x1492   :  { %v2669_v20 = vpop.f32.mrf.mxu2 }
0x1493   :  { %v2696_v19 = vpack.c.bf16 %v2669_v20, %v2669_v20 }
0x1495   :  { %v2704_v9 = vunpack.c.l.b16 %v2696_v19 }
0x149a   :  { %v2671_v5 = vpop.f32.mrf.mxu2 }
0x14ab   :  { %v2690_v22 = vpop.f32.mrf.mxu3 }
0x14ac   :  { %v2697_v6 = vpack.c.bf16 %v2690_v22, %v2690_v22 }
0x14ae   :  { %v2705_v56 = vunpack.c.l.b16 %v2697_v6 }
0x14b0   :  { %v2707_v21 = vpack.c.b16 %v2705_v56, %v2704_v9 }
0x14b2   :  { %4822 = vmatmul.msk.bf16.gmra.mxu0 %vm225_vm2, %v2707_v21 }
0x14b3   :  { %v2692_v29 = vpop.f32.mrf.mxu3 }
0x14d5   :  { %v2726_v31 = vpop.f32.mrf.mxu0 }
0x14d6   :  { %v2736_v32 = vadd.f32 %v2726_v31, %v2466_v43 }
0x14d8   :  { %v2741_v33 = vadd.f32 %v2740_v25, %v2736_v32 }
0x14da   :  { %v2745_v8 = vadd.f32 %v2741_v33, %v5905_v2  ;;  %v2837_v33 = vperm.slane %v6194_v62, 1 }
0x14dc   :  { %v2749_v34 = vsel %vm190_vm1, %v2745_v8, 0.0 }
0x14dd   :  { %2750 = vadd.xlane.f32.xlu2 %v2749_v34  ;;  %v2728_v36 = vpop.f32.mrf.mxu0  ;;  %v2842_v34 = vperm.slane %v6194_v62, 2 }
0x14de   :  { %v2737_v55 = vadd.f32 %v2728_v36, %v2467_v7 }
0x14e0   :  { %v2742_v44 = vadd.f32 %v2740_v25, %v2737_v55 }
0x14e2   :  { %v2746_v46 = vadd.f32 %v2742_v44, %v5907_v3 }
0x14e4   :  { %v2752_v47 = vsel %vm190_vm1, %v2746_v46, 0.0 }
0x14e5   :  { %2753 = vadd.xlane.f32.xlu0 %v2752_v47 }
0x152f   :  { %v2731_v49 = vpop.f32.mrf.mxu0 }
0x1530   :  { %v2738_v50 = vadd.f32 %v2731_v49, %v2468_v13 }
0x1532   :  { %v2743_v39 = vadd.f32 %v2740_v25, %v2738_v50 }
0x1534   :  { %v2747_v2 = vadd.f32 %v2743_v39, %v5916_v26 }
0x1536   :  { %v2755_v35 = vsel %vm190_vm1, %v2747_v2, 0.0 }
0x1537   :  { %2756 = vadd.xlane.f32.xlu1 %v2755_v35  ;;  %v2733_v58 = vpop.f32.mrf.mxu0 }
0x1538   :  { %v2739_v60 = vadd.f32 %v2733_v58, %v2469_v16 }
0x153a   :  { %v2744_v63 = vadd.f32 %v2740_v25, %v2739_v60 }
0x153c   :  { %v2748_v3 = vadd.f32 %v2744_v63, %v5918_v27 }
0x153e   :  { %v2758_v0 = vsel %vm190_vm1, %v2748_v3, 0.0 }
0x153f   :  { %2759 = vadd.xlane.f32.xlu2 %v2758_v0 }
0x1550   :  { %v2751_v37 = vpop.xlane.xlu2 %2750 }
0x1551   :  { %v2761_v1 = vmul.f32 %v2751_v37, %v5835_v24 }
0x1553   :  { %v2765_v43 = vsub.f32 %v2745_v8, %v2761_v1 }
0x1555   :  { %v2769_v4 = vmul.f32 %v2765_v43, %v2765_v43 }
0x1557   :  { %v2773_v28 = vsel %vm190_vm1, %v2769_v4, 0.0 }
0x1558   :  { %2774 = vadd.xlane.f32.xlu0 %v2773_v28  ;;  %v2754_v26 = vpop.xlane.xlu0 %2753 }
0x1559   :  { %v2762_v38 = vmul.f32 %v2754_v26, %v5835_v24 }
0x155b   :  { %v2766_v10 = vsub.f32 %v2746_v46, %v2762_v38 }
0x155d   :  { %v2770_v11 = vmul.f32 %v2766_v10, %v2766_v10 }
0x155f   :  { %v2776_v41 = vsel %vm190_vm1, %v2770_v11, 0.0 }
0x1560   :  { %2777 = vadd.xlane.f32.xlu2 %v2776_v41 }
0x15aa   :  { %v2757_v27 = vpop.xlane.xlu1 %2756 }
0x15ab   :  { %v2763_v42 = vmul.f32 %v2757_v27, %v5835_v24 }
0x15ad   :  { %v6214_v30 = vsub.f32 %v2747_v2, %v2763_v42 }
0x15af   :  { %v2771_v40 = vmul.f32 %v6214_v30, %v6214_v30 }
0x15b1   :  { %v2779_v51 = vsel %vm190_vm1, %v2771_v40, 0.0 }
0x15b2   :  { %2780 = vadd.xlane.f32.xlu0 %v2779_v51  ;;  %v2760_v13 = vpop.xlane.xlu2 %2759 }
0x15b3   :  { %v2764_v52 = vmul.f32 %v2760_v13, %v5835_v24 }
0x15b5   :  { %v6220_v48 = vsub.f32 %v2748_v3, %v2764_v52 }
0x15b7   :  { %v2772_v12 = vmul.f32 %v6220_v48, %v6220_v48 }
0x15b9   :  { %v2782_v57 = vsel %vm190_vm1, %v2772_v12, 0.0  ;;  %v4956_v12 = vld [vmem:[#allocation8 + $0x38] sm:$0xff] }
0x15ba   :  { %2783 = vadd.xlane.f32.xlu2 %v2782_v57  ;;  %2918 = vmatpush.bf16.msrb.mxu2 %v4956_v12  ;;  %v4955_v57 = vld [vmem:[#allocation8 + $0x30] sm:$0xff] }
0x15be   :  { %2919 = vmatpush.bf16.msrb.mxu2 %v4955_v57 }
0x15cb   :  { %v2775_v53 = vpop.xlane.xlu0 %2774 }
0x15cc   :  { %v2785_v54 = vmul.f32 %v2775_v53, %v5835_v24 }
0x15ce   :  { %v2789_v14 = vadd.f32 1e-05, %v2785_v54 }
0x15d0   :  { %5143 = vrsqrt.f32 %v2789_v14  ;;  %vm2799_vm4 = vweird.f32 %v2789_v14 }
0x15d3   :  { %v2778_v18 = vpop.xlane.xlu2 %2777 }
0x15d4   :  { %v2786_v59 = vmul.f32 %v2778_v18, %v5835_v24 }
0x15d6   :  { %v5144_v17 = vpop.eup %5143  ;;  %v2790_v20 = vadd.f32 1e-05, %v2786_v59 }
0x15d7   :  { %v2794_v5 = vmul.f32 %v5144_v17, %v2789_v14  ;;  %vm2800_vm0 = vweird.f32 %v5144_v17 }
0x15d8   :  { %5145 = vrsqrt.f32 %v2790_v20  ;;  %vm2801_vm5 = vmor %vm2799_vm4, %vm2800_vm0  ;;  %vm2809_vm7 = vweird.f32 %v2790_v20 }
0x15d9   :  { %v2795_v19 = vmul.f32 %v5144_v17, %v2794_v5 }
0x15db   :  { %v2796_v22 = vmul.f32 0.5, %v2795_v19 }
0x15dd   :  { %v2797_v6 = vsub.f32 1.5, %v2796_v22 }
0x15de   :  { %v5146_v9 = vpop.eup %5145 }
0x15df   :  { %v2798_v56 = vmul.f32 %v5144_v17, %v2797_v6  ;;  %v2804_v21 = vmul.f32 %v5146_v9, %v2790_v20  ;;  %vm2810_vm6 = vweird.f32 %v5146_v9 }
0x15e0   :  { %vm2811_vm8 = vmor %vm2809_vm7, %vm2810_vm6 }
0x15e1   :  { %v2805_v29 = vmul.f32 %v5146_v9, %v2804_v21  ;;  %v2802_v25 = vsel %vm2801_vm5, %v5144_v17, %v2798_v56 }
0x15e2   :  { %v2833_v23 = vmul.f32 %v2802_v25, %v2765_v43 }
0x15e3   :  { %v2806_v31 = vmul.f32 0.5, %v2805_v29 }
0x15e4   :  { %v2838_v36 = vmul.f32 %v2837_v33, %v2833_v23 }
0x15e5   :  { %v2807_v32 = vsub.f32 1.5, %v2806_v31 }
0x15e6   :  { %v6229_v46 = vadd.f32 %v2842_v34, %v2838_v36 }
0x15e7   :  { %v2808_v8 = vmul.f32 %v5146_v9, %v2807_v32 }
0x15e9   :  { %v2812_v7 = vsel %vm2811_vm8, %v5146_v9, %v2808_v8  ;;  %v2893_v9 = vperm.slane %v6194_v62, 6 }
0x15ea   :  { %v2834_v55 = vmul.f32 %v2812_v7, %v2766_v10 }
0x15ec   :  { %v2839_v44 = vmul.f32 %v2837_v33, %v2834_v55 }
0x15ee   :  { %v6231_v47 = vadd.f32 %v2842_v34, %v2839_v44 }
0x15f0   :  { %v2847_v49 = vpack.c.bf16 %v6231_v47, %v6229_v46 }
0x15f2   :  { %4831 = vmatmul.msk.bf16.vlgmr.msrb.gmra.mxu1 %vm190_vm1, %v2847_v49 }
0x1625   :  { %v2781_v50 = vpop.xlane.xlu0 %2780 }
0x1626   :  { %v2787_v39 = vmul.f32 %v2781_v50, %v5835_v24 }
0x1628   :  { %v2791_v45 = vadd.f32 1e-05, %v2787_v39 }
0x162a   :  { %5147 = vrsqrt.f32 %v2791_v45  ;;  %vm2819_vm10 = vweird.f32 %v2791_v45 }
0x162d   :  { %v2784_v2 = vpop.xlane.xlu2 %2783 }
0x162e   :  { %v2788_v16 = vmul.f32 %v2784_v2, %v5835_v24 }
0x1630   :  { %v5148_v35 = vpop.eup %5147  ;;  %v2792_v58 = vadd.f32 1e-05, %v2788_v16 }
0x1631   :  { %v2814_v60 = vmul.f32 %v5148_v35, %v2791_v45  ;;  %vm2820_vm9 = vweird.f32 %v5148_v35 }
0x1632   :  { %5149 = vrsqrt.f32 %v2792_v58  ;;  %vm2821_vm11 = vmor %vm2819_vm10, %vm2820_vm9  ;;  %vm2829_vm13 = vweird.f32 %v2792_v58 }
0x1633   :  { %v2815_v63 = vmul.f32 %v5148_v35, %v2814_v60 }
0x1635   :  { %v2816_v3 = vmul.f32 0.5, %v2815_v63 }
0x1637   :  { %v2817_v0 = vsub.f32 1.5, %v2816_v3 }
0x1638   :  { %v5150_v37 = vpop.eup %5149 }
0x1639   :  { %v2818_v1 = vmul.f32 %v5148_v35, %v2817_v0  ;;  %v2824_v43 = vmul.f32 %v5150_v37, %v2792_v58  ;;  %vm2830_vm12 = vweird.f32 %v5150_v37 }
0x163a   :  { %vm2831_vm14 = vmor %vm2829_vm13, %vm2830_vm12 }
0x163b   :  { %v2825_v4 = vmul.f32 %v5150_v37, %v2824_v43  ;;  %v2822_v28 = vsel %vm2821_vm11, %v5148_v35, %v2818_v1 }
0x163c   :  { %v2835_v10 = vmul.f32 %v2822_v28, %v6214_v30  ;;  %v2849_v30 = vperm.slane %v6194_v62, 5 }
0x163d   :  { %v2826_v26 = vmul.f32 0.5, %v2825_v4 }
0x163e   :  { %v2840_v42 = vmul.f32 %v2837_v33, %v2835_v10 }
0x163f   :  { %v2827_v38 = vsub.f32 1.5, %v2826_v26 }
0x1640   :  { %v2845_v51 = vadd.f32 %v2842_v34, %v2840_v42 }
0x1641   :  { %v2828_v11 = vmul.f32 %v5150_v37, %v2827_v38 }
0x1643   :  { %v2832_v41 = vsel %vm2831_vm14, %v5150_v37, %v2828_v11  ;;  %v4964_v11 = vld [vmem:[%s6692_s4 + $0x28] sm:$0xff] }
0x1644   :  { %v2836_v27 = vmul.f32 %v2832_v41, %v6220_v48  ;;  %3082 = vmatpush.bf16.msra.mxu3 %v4964_v11 }
0x1646   :  { %v2841_v40 = vmul.f32 %v2837_v33, %v2836_v27 }
0x1648   :  { %v2846_v13 = vadd.f32 %v2842_v34, %v2841_v40  ;;  %v4963_v40 = vld [vmem:[%s6692_s4 + $0x20] sm:$0xff] }
0x1649   :  { %3083 = vmatpush.bf16.msra.mxu3 %v4963_v40 }
0x164a   :  { %v2848_v52 = vpack.c.bf16 %v2846_v13, %v2845_v51 }
0x164c   :  { %4832 = vmatmul.msk.bf16.gmra.mxu1 %vm190_vm1, %v2848_v52 }
0x166f   :  { %v2877_v15 = vpop.f32.mrf.mxu1 }
0x1670   :  { %v2878_v53 = vadd.f32 %v2877_v15, %v2849_v30 }
0x1672   :  { %v2887_v61 = vmax.f32 %v2878_v53, 0.0 }
0x1677   :  { %v2879_v54 = vpop.f32.mrf.mxu1 }
0x1678   :  { %v2880_v14 = vadd.f32 %v2879_v54, %v2849_v30 }
0x167a   :  { %v2888_v18 = vmax.f32 %v2880_v14, 0.0 }
0x167c   :  { %v2891_v48 = vpack.c.bf16 %v2888_v18, %v2887_v61 }
0x167e   :  { %4841 = vmatmul.msk.bf16.vlgmr.msrb.gmra.mxu2 %vm190_vm1, %v2891_v48 }
0x16c9   :  { %v2882_v59 = vpop.f32.mrf.mxu1 }
0x16ca   :  { %v2883_v17 = vadd.f32 %v2882_v59, %v2849_v30 }
0x16cc   :  { %v2889_v19 = vmax.f32 %v2883_v17, 0.0 }
0x16d1   :  { %v2884_v20 = vpop.f32.mrf.mxu1 }
0x16d2   :  { %v2885_v5 = vadd.f32 %v2884_v20, %v2849_v30  ;;  %v3023_v20 = vperm.slane %v6194_v62, 3 }
0x16d4   :  { %v2890_v22 = vmax.f32 %v2885_v5, 0.0 }
0x16d6   :  { %v2892_v6 = vpack.c.bf16 %v2890_v22, %v2889_v19 }
0x16d8   :  { %4842 = vmatmul.msk.bf16.gmra.mxu2 %vm190_vm1, %v2892_v6  ;;  %v3028_v6 = vperm.slane %v6194_v62, 4 }
0x1701   :  { %v2921_v56 = vpop.f32.mrf.mxu2 }
0x1702   :  { %v2922_v21 = vadd.f32 %v2921_v56, %v2893_v9 }
0x1704   :  { %v2931_v29 = vadd.f32 %v2922_v21, %v6229_v46 }
0x1706   :  { %v2935_v25 = vsel %vm190_vm1, %v2931_v29, 0.0 }
0x1707   :  { %2936 = vadd.xlane.f32.xlu0 %v2935_v25 }
0x1709   :  { %v2923_v31 = vpop.f32.mrf.mxu2 }
0x170a   :  { %v2924_v32 = vadd.f32 %v2923_v31, %v2893_v9 }
0x170c   :  { %v2932_v33 = vadd.f32 %v2924_v32, %v6231_v47 }
0x170e   :  { %v2938_v23 = vsel %vm190_vm1, %v2932_v33, 0.0 }
0x170f   :  { %2939 = vadd.xlane.f32.xlu1 %v2938_v23 }
0x175b   :  { %v2926_v8 = vpop.f32.mrf.mxu2 }
0x175c   :  { %v2927_v7 = vadd.f32 %v2926_v8, %v2893_v9 }
0x175e   :  { %v2933_v34 = vadd.f32 %v2927_v7, %v2845_v51 }
0x1760   :  { %v2941_v36 = vsel %vm190_vm1, %v2933_v34, 0.0 }
0x1761   :  { %2942 = vadd.xlane.f32.xlu2 %v2941_v36 }
0x1763   :  { %v2928_v55 = vpop.f32.mrf.mxu2 }
0x1764   :  { %v2929_v44 = vadd.f32 %v2928_v55, %v2893_v9 }
0x1766   :  { %v2934_v49 = vadd.f32 %v2929_v44, %v2846_v13 }
0x1768   :  { %v2944_v46 = vsel %vm190_vm1, %v2934_v49, 0.0 }
0x1769   :  { %2945 = vadd.xlane.f32.xlu0 %v2944_v46 }
0x177a   :  { %v2937_v50 = vpop.xlane.xlu0 %2936 }
0x177b   :  { %v2947_v39 = vmul.f32 %v2937_v50, %v5835_v24 }
0x177d   :  { %v2951_v45 = vsub.f32 %v2931_v29, %v2947_v39 }
0x177f   :  { %v2955_v47 = vmul.f32 %v2951_v45, %v2951_v45 }
0x1781   :  { %v2959_v2 = vsel %vm190_vm1, %v2955_v47, 0.0 }
0x1782   :  { %v2940_v16 = vpop.xlane.xlu1 %2939  ;;  %2960 = vadd.xlane.f32.xlu1 %v2959_v2 }
0x1783   :  { %v2948_v35 = vmul.f32 %v2940_v16, %v5835_v24 }
0x1785   :  { %v2952_v58 = vsub.f32 %v2932_v33, %v2948_v35 }
0x1787   :  { %v2956_v60 = vmul.f32 %v2952_v58, %v2952_v58 }
0x1789   :  { %v2962_v63 = vsel %vm190_vm1, %v2956_v60, 0.0 }
0x178a   :  { %2963 = vadd.xlane.f32.xlu2 %v2962_v63 }
0x17d4   :  { %v2943_v3 = vpop.xlane.xlu2 %2942 }
0x17d5   :  { %v2949_v0 = vmul.f32 %v2943_v3, %v5835_v24 }
0x17d7   :  { %v6256_v37 = vsub.f32 %v2933_v34, %v2949_v0 }
0x17d9   :  { %v2957_v1 = vmul.f32 %v6256_v37, %v6256_v37 }
0x17db   :  { %v2965_v43 = vsel %vm190_vm1, %v2957_v1, 0.0 }
0x17dc   :  { %2966 = vadd.xlane.f32.xlu0 %v2965_v43  ;;  %v2946_v4 = vpop.xlane.xlu0 %2945 }
0x17dd   :  { %v2950_v28 = vmul.f32 %v2946_v4, %v5835_v24 }
0x17df   :  { %v6262_v26 = vsub.f32 %v2934_v49, %v2950_v28 }
0x17e1   :  { %v2958_v38 = vmul.f32 %v6262_v26, %v6262_v26 }
0x17e3   :  { %v2968_v10 = vsel %vm190_vm1, %v2958_v38, 0.0 }
0x17e4   :  { %2969 = vadd.xlane.f32.xlu1 %v2968_v10 }
0x17f5   :  { %v2961_v41 = vpop.xlane.xlu1 %2960 }
0x17f6   :  { %v2971_v27 = vmul.f32 %v2961_v41, %v5835_v24 }
0x17f8   :  { %v2975_v42 = vadd.f32 1e-05, %v2971_v27 }
0x17fa   :  { %5151 = vrsqrt.f32 %v2975_v42  ;;  %vm2985_vm0 = vweird.f32 %v2975_v42 }
0x17fd   :  { %v2964_v51 = vpop.xlane.xlu2 %2963 }
0x17fe   :  { %v2972_v13 = vmul.f32 %v2964_v51, %v5835_v24 }
0x1800   :  { %v5152_v52 = vpop.eup %5151  ;;  %v2976_v12 = vadd.f32 1e-05, %v2972_v13 }
0x1801   :  { %v2980_v57 = vmul.f32 %v5152_v52, %v2975_v42  ;;  %vm2986_vm15 = vweird.f32 %v5152_v52 }
0x1802   :  { %5153 = vrsqrt.f32 %v2976_v12  ;;  %vm2987_vm4 = vmor %vm2985_vm0, %vm2986_vm15  ;;  %vm2995_vm6 = vweird.f32 %v2976_v12 }
0x1803   :  { %v2981_v15 = vmul.f32 %v5152_v52, %v2980_v57 }
0x1805   :  { %v2982_v30 = vmul.f32 0.5, %v2981_v15 }
0x1807   :  { %v2983_v53 = vsub.f32 1.5, %v2982_v30 }
0x1808   :  { %v5154_v54 = vpop.eup %5153 }
0x1809   :  { %v2984_v14 = vmul.f32 %v5152_v52, %v2983_v53  ;;  %v2990_v61 = vmul.f32 %v5154_v54, %v2976_v12  ;;  %vm2996_vm5 = vweird.f32 %v5154_v54 }
0x180a   :  { %vm2997_vm7 = vmor %vm2995_vm6, %vm2996_vm5 }
0x180b   :  { %v2991_v18 = vmul.f32 %v5154_v54, %v2990_v61  ;;  %v2988_v48 = vsel %vm2987_vm4, %v5152_v52, %v2984_v14 }
0x180c   :  { %v3019_v5 = vmul.f32 %v2988_v48, %v2951_v45 }
0x180d   :  { %v2992_v59 = vmul.f32 0.5, %v2991_v18 }
0x180e   :  { %v3024_v9 = vmul.f32 %v3023_v20, %v3019_v5 }
0x180f   :  { %v2993_v17 = vsub.f32 1.5, %v2992_v59 }
0x1810   :  { %v6277_v29 = vadd.f32 %v3028_v6, %v3024_v9 }
0x1811   :  { %v2994_v19 = vmul.f32 %v5154_v54, %v2993_v17 }
0x1813   :  { %v2998_v22 = vsel %vm2997_vm7, %v5154_v54, %v2994_v19 }
0x1814   :  { %v3020_v56 = vmul.f32 %v2998_v22, %v2952_v58 }
0x1816   :  { %v3025_v21 = vmul.f32 %v3023_v20, %v3020_v56 }
0x1818   :  { %v6279_v25 = vadd.f32 %v3028_v6, %v3025_v21 }
0x181a   :  { %v3049_v31 = vpack.c.bf16 %v6279_v25, %v6277_v29 }
0x181c   :  { %4856 = vmatmul.msk.bf16.vlgmr.msra.gmra.mxu3 %vm190_vm1, %v3049_v31 }
0x184f   :  { %v2967_v32 = vpop.xlane.xlu0 %2966 }
0x1850   :  { %v2973_v33 = vmul.f32 %v2967_v32, %v5835_v24 }
0x1852   :  { %v2977_v23 = vadd.f32 1e-05, %v2973_v33 }
0x1854   :  { %5155 = vrsqrt.f32 %v2977_v23  ;;  %vm3005_vm9 = vweird.f32 %v2977_v23 }
0x1857   :  { %v2970_v8 = vpop.xlane.xlu1 %2969 }
0x1858   :  { %v2974_v62 = vmul.f32 %v2970_v8, %v5835_v24 }
0x185a   :  { %v5156_v7 = vpop.eup %5155  ;;  %v2978_v34 = vadd.f32 1e-05, %v2974_v62 }
0x185b   :  { %v3000_v36 = vmul.f32 %v5156_v7, %v2977_v23  ;;  %vm3006_vm8 = vweird.f32 %v5156_v7 }
0x185c   :  { %5157 = vrsqrt.f32 %v2978_v34  ;;  %vm3007_vm10 = vmor %vm3005_vm9, %vm3006_vm8  ;;  %vm3015_vm12 = vweird.f32 %v2978_v34 }
0x185d   :  { %v3001_v55 = vmul.f32 %v5156_v7, %v3000_v36 }
0x185f   :  { %v3002_v44 = vmul.f32 0.5, %v3001_v55 }
0x1861   :  { %v3003_v49 = vsub.f32 1.5, %v3002_v44 }
0x1862   :  { %v5158_v46 = vpop.eup %5157 }
0x1863   :  { %v3004_v50 = vmul.f32 %v5156_v7, %v3003_v49  ;;  %v3010_v39 = vmul.f32 %v5158_v46, %v2978_v34  ;;  %vm3016_vm11 = vweird.f32 %v5158_v46 }
0x1864   :  { %vm3017_vm13 = vmor %vm3015_vm12, %vm3016_vm11 }
0x1865   :  { %v3011_v45 = vmul.f32 %v5158_v46, %v3010_v39  ;;  %v3008_v47 = vsel %vm3007_vm10, %v5156_v7, %v3004_v50 }
0x1866   :  { %v3021_v35 = vmul.f32 %v3008_v47, %v6256_v37  ;;  %v4996_v37 = vld [vmem:[#allocation5 + $0x2] ss:$0 sm:$0xff] }
0x1867   :  { %v3012_v2 = vmul.f32 0.5, %v3011_v45 }
0x1868   :  { %v3026_v3 = vmul.f32 %v3023_v20, %v3021_v35 }
0x1869   :  { %v3013_v16 = vsub.f32 1.5, %v3012_v2 }
0x186a   :  { %v6288_v1 = vadd.f32 %v3028_v6, %v3026_v3 }
0x186b   :  { %v3014_v58 = vmul.f32 %v5158_v46, %v3013_v16 }
0x186d   :  { %v3018_v60 = vsel %vm3017_vm13, %v5158_v46, %v3014_v58 }
0x186e   :  { %v3022_v63 = vmul.f32 %v3018_v60, %v6262_v26 }
0x1870   :  { %v3027_v0 = vmul.f32 %v3023_v20, %v3022_v63 }
0x1872   :  { %v6290_v43 = vadd.f32 %v3028_v6, %v3027_v0 }
0x1874   :  { %v3050_v4 = vpack.c.bf16 %v6290_v43, %v6288_v1 }
0x1876   :  { %4857 = vmatmul.msk.bf16.gmra.mxu3 %vm190_vm1, %v3050_v4 }
0x189f   :  { %v3085_v28 = vpop.f32.mrf.mxu3 }
0x18a0   :  { %v3086_v34 = vadd.f32 %v4996_v37, %v3085_v28 }
0x18a2   :  { %v3095_v36 = vpack.c.bf16 %v3086_v34, %v3086_v34 }
0x18a4   :  { %v3100_v55 = vunpack.c.l.b16 %v3095_v36 }
0x18a6   :  { %v6331_v44 = vpack.c.b16 %v3100_v55, %v3100_v55 }
0x18a7   :  { %v3087_v38 = vpop.f32.mrf.mxu3 }
0x18a8   :  { %v3088_v41 = vadd.f32 %v4996_v37, %v3087_v38 }
0x18aa   :  { %v3096_v26 = vpack.c.bf16 %v3088_v41, %v3088_v41 }
0x18ac   :  { %v3124_v52 = vunpack.c.l.b16 %v3096_v26 }
0x18ae   :  { %v6299_v15 = vpack.c.b16 %v3124_v52, %v3124_v52 }
0x18f9   :  { %v3090_v10 = vpop.f32.mrf.mxu3 }
0x18fa   :  { %v3091_v11 = vadd.f32 %v4996_v37, %v3090_v10 }
0x18fc   :  { %v3097_v27 = vpack.c.bf16 %v3091_v11, %v3091_v11 }
0x18fe   :  { %v3148_v42 = vunpack.c.l.b16 %v3097_v27 }
0x1900   :  { %v6295_v40 = vpack.c.b16 %v3148_v42, %v3148_v42 }
0x1901   :  { %v3092_v51 = vpop.f32.mrf.mxu3 }
0x1902   :  { %v3093_v13 = vadd.f32 %v4996_v37, %v3092_v51  ;;  %3150 = vrot.lane.b32.xlu2 %v6295_v40, %s5403_s0 }
0x1904   :  { %v3098_v12 = vpack.c.bf16 %v3093_v13, %v3093_v13 }
0x1906   :  { %v3172_v57 = vunpack.c.l.b16 %v3098_v12 }
0x1908   :  { %v6301_v30 = vpack.c.b16 %v3172_v57, %v3172_v57 }
0x190a   :  { %3174 = vrot.lane.b32.xlu0 %v6301_v30, %s5403_s0  ;;  %3126 = vrot.lane.b32.xlu2 %v6299_v15, %s5403_s0 }
0x1912   :  { %3285 = vrot.lane.b32.xlu2 %v6295_v40, %s5398_s5 }
0x191a   :  { %3379 = vrot.lane.b32.xlu2 %v6295_v40, %s5404_s28 }
0x1922   :  { %3377 = vrot.lane.b32.xlu2 %v6295_v40, %s5405_s29 }
0x192a   :  { %3306 = vrot.lane.b32.xlu2 %v6301_v30, %s5398_s5 }
0x1932   :  { %3402 = vrot.lane.b32.xlu2 %v6301_v30, %s5404_s28 }
0x195c   :  { %v3151_v53 = vpop.permute.xlu2 %3150 }
0x195d   :  { %v3156_v54 = vsel %vm225_vm2, %v3151_v53, 0 }
0x195e   :  { %3165 = vmatpush.bf16.xpose.msra.mxu2 %v3156_v54 }
0x1964   :  { %v3127_v14 = vpop.permute.xlu2 %3126 }
0x1965   :  { %v3132_v61 = vsel %vm225_vm2, %v3127_v14, 0  ;;  %4860 = vmatmul.msk.bf16.vlgmr.msra.gmra.mxu2 %vm225_vm2, %v3097_v27 }
0x1966   :  { %3141 = vmatpush.bf16.xpose.msra.mxu1 %v3132_v61 }
0x196c   :  { %v3286_v18 = vpop.permute.xlu2 %3285 }
0x196d   :  { %v3291_v48 = vsel %vm370_vm3, %v3286_v18, 0  ;;  %4859 = vmatmul.msk.bf16.vlgmr.msra.gmra.mxu1 %vm225_vm2, %v3096_v26 }
0x196e   :  { %3300 = vmatpush.bf16.msrb.mxu2 %v3291_v48 }
0x1974   :  { %v3380_v59 = vpop.permute.xlu2 %3379 }
0x1975   :  { %v3385_v17 = vsel %vm225_vm2, %v3380_v59, 0 }
0x1976   :  { %3394 = vmatpush.bf16.xpose.msra.mxu2 %v3385_v17 }
0x197c   :  { %v3175_v20 = vpop.permute.xlu0 %3174  ;;  %v3378_v5 = vpop.permute.xlu2 %3377 }
0x197d   :  { %v3180_v19 = vsel %vm225_vm2, %v3175_v20, 0 }
0x197e   :  { %3189 = vmatpush.bf16.xpose.msrb.mxu3 %v3180_v19 }
0x1984   :  { %v3307_v22 = vpop.permute.xlu2 %3306 }
0x1985   :  { %v3312_v6 = vsel %vm370_vm3, %v3307_v22, 0  ;;  %4861 = vmatmul.msk.bf16.vlgmr.msrb.gmra.mxu3 %vm225_vm2, %v3098_v12 }
0x1986   :  { %3321 = vmatpush.bf16.msra.mxu3 %v3312_v6 }
0x198c   :  { %v3403_v9 = vpop.permute.xlu2 %3402 }
0x198d   :  { %v3408_v56 = vsel %vm225_vm2, %v3403_v9, 0 }
0x198e   :  { %3417 = vmatpush.bf16.xpose.msrb.mxu3 %v3408_v56 }
0x19e8   :  { %v3167_v21 = vpop.f32.mrf.mxu2 }
0x19e9   :  { %v3201_v31 = vsel %vm225_vm2, %v3167_v21, -inf }
0x19ea   :  { %3202 = vmax.xlane.f32.xlu1 %v3201_v31  ;;  %v6328_v32 = vpop.f32.mrf.mxu1 }
0x19eb   :  { %v3198_v3 = vsel %vm225_vm2, %v6328_v32, -inf }
0x19f0   :  { %v3169_v33 = vpop.f32.mrf.mxu2 }
0x19f2   :  { %v3145_v23 = vpop.f32.mrf.mxu1 }
0x1a08   :  { %v3191_v8 = vpop.f32.mrf.mxu3 }
0x1a09   :  { %v3204_v62 = vsel %vm225_vm2, %v3191_v8, -inf }
0x1a0a   :  { %3205 = vmax.xlane.f32.xlu1 %v3204_v62 }
0x1a10   :  { %v3193_v7 = vpop.f32.mrf.mxu3 }
0x1a23   :  { %3102 = vrot.lane.b32.xlu1 %v6331_v44, %s5403_s0 }
0x1a5d   :  { %v3203_v49 = vpop.xlane.xlu1 %3202 }
0x1a5e   :  { %v3209_v46 = vsub.f32 %v3167_v21, %v3203_v49 }
0x1a60   :  { %v3215_v50 = vmul.f32 1.442695, %v3209_v46 }
0x1a62   :  { %5159 = vpow2.f32 %v3215_v50 }
0x1a68   :  { %v5160_v39 = vpop.eup %5159 }
0x1a69   :  { %v3225_v45 = vsel %vm225_vm2, %v5160_v39, 0.0 }
0x1a6a   :  { %3226 = vadd.xlane.f32.xlu0 %v3225_v45 }
0x1a7d   :  { %v3206_v47 = vpop.xlane.xlu1 %3205 }
0x1a7e   :  { %v3210_v2 = vsub.f32 %v3191_v8, %v3206_v47  ;;  %3400 = vrot.lane.b32.xlu0 %v6301_v30, %s5405_s29 }
0x1a80   :  { %v3217_v16 = vmul.f32 1.442695, %v3210_v2 }
0x1a82   :  { %5161 = vpow2.f32 %v3217_v16 }
0x1a88   :  { %v5162_v35 = vpop.eup %5161 }
0x1a89   :  { %v3228_v58 = vsel %vm225_vm2, %v5162_v35, 0.0 }
0x1a8a   :  { %3229 = vadd.xlane.f32.xlu1 %v3228_v58 }
0x1a95   :  { %v3103_v60 = vpop.permute.xlu1 %3102 }
0x1a96   :  { %v3108_v63 = vsel %vm225_vm2, %v3103_v60, 0 }
0x1a97   :  { %3117 = vmatpush.bf16.xpose.msrb.mxu0 %v3108_v63 }
0x1a9e   :  { %4858 = vmatmul.msk.bf16.vlgmr.msrb.gmra.mxu0 %vm225_vm2, %v3095_v36 }
0x1aa8   :  { %3199 = vmax.xlane.f32.xlu0 %v3198_v3 }
0x1abc   :  { %3333 = vrot.lane.b32.xlu0 %v6331_v44, %s5404_s28 }
0x1add   :  { %v3227_v0 = vpop.xlane.xlu0 %3226 }
0x1ade   :  { %5163 = vrcp.f32 %v3227_v0 }
0x1ae4   :  { %v5164_v4 = vpop.eup %5163 }
0x1ae5   :  { %v3237_v28 = vmul.f32 %v5164_v4, %v5160_v39 }
0x1ae7   :  { %v3241_v38 = vpack.c.bf16 %v3237_v28, %v3237_v28 }
0x1ae9   :  { %4864 = vmatmul.msk.bf16.vlgmr.msrb.gmra.mxu2 %vm225_vm2, %v3241_v38 }
0x1af0   :  { %v3401_v27 = vpop.permute.xlu0 %3400 }
0x1af9   :  { %4868 = vmatmul.msk.bf16.vlgmr.msra.gmra.mxu2 %vm225_vm2, %v3378_v5 }
0x1afd   :  { %v3230_v37 = vpop.xlane.xlu1 %3229 }
0x1afe   :  { %5165 = vrcp.f32 %v3230_v37 }
0x1b04   :  { %v5166_v10 = vpop.eup %5165 }
0x1b05   :  { %v3238_v11 = vmul.f32 %v5166_v10, %v5162_v35 }
0x1b07   :  { %v3242_v41 = vpack.c.bf16 %v3238_v11, %v3238_v11 }
0x1b09   :  { %4865 = vmatmul.msk.bf16.vlgmr.msra.gmra.mxu3 %vm225_vm2, %v3242_v41 }
0x1b19   :  { %4869 = vmatmul.msk.bf16.vlgmr.msrb.gmra.mxu3 %vm225_vm2, %v3401_v27 }
0x1b1b   :  { %v3119_v42 = vpop.f32.mrf.mxu0  ;;  %v3200_v48 = vpop.xlane.xlu0 %3199 }
0x1b1c   :  { %v3195_v26 = vsel %vm225_vm2, %v3119_v42, -inf  ;;  %v3208_v5 = vsub.f32 %v6328_v32, %v3200_v48 }
0x1b1d   :  { %3196 = vmax.xlane.f32.xlu2 %v3195_v26 }
0x1b1e   :  { %v3213_v6 = vmul.f32 1.442695, %v3208_v5 }
0x1b23   :  { %v3121_v51 = vpop.f32.mrf.mxu0 }
0x1b2e   :  { %v3334_v63 = vpop.permute.xlu0 %3333 }
0x1b2f   :  { %v3339_v28 = vsel %vm225_vm2, %v3334_v63, 0 }
0x1b35   :  { %3264 = vrot.lane.b32.xlu2 %v6299_v15, %s5398_s5 }
0x1b3d   :  { %3331 = vrot.lane.b32.xlu2 %v6331_v44, %s5405_s29 }
0x1b6c   :  { %v3302_v13 = vpop.f32.mrf.mxu2 }
0x1b6d   :  { %v3329_v53 = vpack.c.bf16 %v3302_v13, %v3302_v13 }
0x1b6f   :  { %v6356_v61 = vunpack.c.l.b16 %v3329_v53 }
0x1b74   :  { %v3304_v52 = vpop.f32.mrf.mxu2 }
0x1b7c   :  { %v6354_v12 = vpop.f32.mrf.mxu2 }
0x1b7d   :  { %v3429_v7 = vsel %vm225_vm2, %v6354_v12, -inf }
0x1b84   :  { %v3398_v57 = vpop.f32.mrf.mxu2 }
0x1b8c   :  { %v3323_v54 = vpop.f32.mrf.mxu3 }
0x1b8d   :  { %v3330_v14 = vpack.c.bf16 %v3323_v54, %v3323_v54 }
0x1b8f   :  { %v6358_v18 = vunpack.c.l.b16 %v3330_v14 }
0x1b90   :  { %v3197_v59 = vpop.xlane.xlu2 %3196 }
0x1b91   :  { %v3606_v17 = vpack.c.b16 %v6358_v18, %v6356_v61  ;;  %v3207_v20 = vsub.f32 %v3119_v42, %v3197_v59  ;;  %v3037_v18 = vld [vmem:[#allocation7 + $0x24] sm:$0xf] }
0x1b93   :  { %v3211_v19 = vmul.f32 1.442695, %v3207_v20 }
0x1b94   :  { %v3325_v22 = vpop.f32.mrf.mxu3 }
0x1b95   :  { %5167 = vpow2.f32 %v3211_v19 }
0x1b96   :  { %5169 = vpow2.f32 %v3213_v6 }
0x1b98   :  { %v3265_v9 = vpop.permute.xlu2 %3264 }
0x1b99   :  { %v3270_v56 = vsel %vm370_vm3, %v3265_v9, 0 }
0x1b9a   :  { %3279 = vmatpush.bf16.msrb.mxu1 %v3270_v56 }
0x1b9b   :  { %v5168_v21 = vpop.eup %5167 }
0x1b9c   :  { %v3419_v31 = vpop.f32.mrf.mxu3  ;;  %v3219_v33 = vsel %vm225_vm2, %v5168_v21, 0.0  ;;  %v5170_v8 = vpop.eup %5169 }
0x1b9d   :  { %3220 = vadd.xlane.f32.xlu1 %v3219_v33  ;;  %v3432_v23 = vsel %vm225_vm2, %v3419_v31, -inf  ;;  %v3222_v32 = vsel %vm225_vm2, %v5170_v8, 0.0 }
0x1b9e   :  { %3433 = vmax.xlane.f32.xlu2 %v3432_v23 }
0x1ba0   :  { %v3332_v34 = vpop.permute.xlu2 %3331 }
0x1ba4   :  { %v3421_v62 = vpop.f32.mrf.mxu3 }
0x1ba5   :  { %3223 = vadd.xlane.f32.xlu1 %v3222_v32 }
0x1bb6   :  { %3513 = vrot.lane.b32.xlu2 %v6295_v40, %s5408_s11 }
0x1bbe   :  { %3243 = vrot.lane.b32.xlu1 %v6331_v44, %s5398_s5 }
0x1be8   :  { %3430 = vmax.xlane.f32.xlu1 %v3429_v7 }
0x1c01   :  { %3356 = vrot.lane.b32.xlu1 %v6299_v15, %s5404_s28 }
0x1c09   :  { %3354 = vrot.lane.b32.xlu1 %v6299_v15, %s5405_s29 }
0x1c10   :  { %v3221_v36 = vpop.xlane.xlu1 %3220 }
0x1c11   :  { %3637 = vrot.lane.b32.xlu1 %v6331_v44, %s5406_s30  ;;  %v3434_v55 = vpop.xlane.xlu2 %3433 }
0x1c12   :  { %v3438_v49 = vsub.f32 %v3419_v31, %v3434_v55 }
0x1c14   :  { %v3445_v46 = vmul.f32 1.442695, %v3438_v49 }
0x1c16   :  { %5171 = vpow2.f32 %v3445_v46 }
0x1c18   :  { %v3224_v50 = vpop.xlane.xlu1 %3223 }
0x1c19   :  { %5173 = vrcp.f32 %v3224_v50  ;;  %3635 = vrot.lane.b32.xlu1 %v6331_v44, %s5407_s7  ;;  %v3514_v39 = vpop.permute.xlu2 %3513 }
0x1c1a   :  { %v3519_v45 = vsel %vm370_vm3, %v3514_v39, 0  ;;  %5175 = vrcp.f32 %v3221_v36 }
0x1c1b   :  { %3528 = vmatpush.bf16.msrb.mxu2 %v3519_v45 }
0x1c1c   :  { %v5172_v47 = vpop.eup %5171 }
0x1c1d   :  { %v3456_v2 = vsel %vm225_vm2, %v5172_v47, 0.0 }
0x1c1e   :  { %3457 = vadd.xlane.f32.xlu2 %v3456_v2 }
0x1c1f   :  { %v5174_v16 = vpop.eup %5173 }
0x1c20   :  { %v3236_v35 = vmul.f32 %v5174_v16, %v5170_v8  ;;  %v5176_v60 = vpop.eup %5175 }
0x1c21   :  { %3534 = vrot.lane.b32.xlu1 %v6301_v30, %s5408_s11  ;;  %v3235_v3 = vmul.f32 %v5176_v60, %v5168_v21 }
0x1c22   :  { %v3240_v58 = vpack.c.bf16 %v3236_v35, %v3236_v35 }
0x1c23   :  { %v3239_v38 = vpack.c.bf16 %v3235_v3, %v3235_v3 }
0x1c24   :  { %4863 = vmatmul.msk.bf16.vlgmr.msrb.gmra.mxu1 %vm225_vm2, %v3240_v58 }
0x1c29   :  { %3683 = vrot.lane.b32.xlu1 %v6295_v40, %s5406_s30 }
0x1c30   :  { %v3244_v0 = vpop.permute.xlu1 %3243 }
0x1c31   :  { %v3249_v4 = vsel %vm370_vm3, %v3244_v0, 0  ;;  %3660 = vrot.lane.b32.xlu1 %v6299_v15, %s5406_s30 }
0x1c32   :  { %3258 = vmatpush.bf16.msra.mxu0 %v3249_v4 }
0x1c35   :  { %4862 = vmatmul.msk.bf16.vlgmr.msra.gmra.mxu0 %vm225_vm2, %v3239_v38 }
0x1c36   :  { %3348 = vmatpush.bf16.xpose.msrb.mxu0 %v3339_v28  ;;  %3706 = vrot.lane.b32.xlu2 %v6301_v30, %s5406_s30 }
0x1c39   :  { %3658 = vrot.lane.b32.xlu1 %v6299_v15, %s5407_s7 }
0x1c41   :  { %3704 = vrot.lane.b32.xlu1 %v6301_v30, %s5407_s7 }
0x1c45   :  { %4866 = vmatmul.msk.bf16.vlgmr.msrb.gmra.mxu0 %vm225_vm2, %v3332_v34 }
0x1c5b   :  { %v3431_v37 = vpop.xlane.xlu1 %3430 }
0x1c5c   :  { %v3437_v10 = vsub.f32 %v6354_v12, %v3431_v37 }
0x1c5e   :  { %v3443_v11 = vmul.f32 1.442695, %v3437_v10 }
0x1c60   :  { %5177 = vpow2.f32 %v3443_v11 }
0x1c66   :  { %v5178_v41 = vpop.eup %5177 }
0x1c67   :  { %v3453_v27 = vsel %vm225_vm2, %v5178_v41, 0.0 }
0x1c68   :  { %3454 = vadd.xlane.f32.xlu0 %v3453_v27 }
0x1c73   :  { %v3357_v42 = vpop.permute.xlu1 %3356 }
0x1c74   :  { %v3362_v26 = vsel %vm225_vm2, %v3357_v42, 0 }
0x1c75   :  { %3371 = vmatpush.bf16.xpose.msra.mxu1 %v3362_v26 }
0x1c7b   :  { %v3355_v51 = vpop.permute.xlu1 %3354 }
0x1c7c   :  { %3681 = vrot.lane.b32.xlu0 %v6295_v40, %s5407_s7  ;;  %4867 = vmatmul.msk.bf16.vlgmr.msra.gmra.mxu1 %vm225_vm2, %v3355_v51 }
0x1c83   :  { %v3638_v13 = vpop.permute.xlu1 %3637 }
0x1c84   :  { %v3643_v52 = vsel %vm225_vm2, %v3638_v13, 0 }
0x1c85   :  { %3652 = vmatpush.bf16.xpose.msra.mxu2 %v3643_v52 }
0x1c8b   :  { %v3636_v12 = vpop.permute.xlu1 %3635 }
0x1c91   :  { %v3458_v57 = vpop.xlane.xlu2 %3457 }
0x1c92   :  { %5179 = vrcp.f32 %v3458_v57 }
0x1c93   :  { %v3535_v53 = vpop.permute.xlu1 %3534 }
0x1c94   :  { %v3540_v54 = vsel %vm370_vm3, %v3535_v53, 0 }
0x1c95   :  { %3549 = vmatpush.bf16.msra.mxu3 %v3540_v54 }
0x1c98   :  { %v5180_v14 = vpop.eup %5179 }
0x1c99   :  { %v3466_v48 = vmul.f32 %v5180_v14, %v5172_v47  ;;  %v3707_v19 = vpop.permute.xlu2 %3706 }
0x1c9a   :  { %v3712_v9 = vsel %vm225_vm2, %v3707_v19, 0 }
0x1c9b   :  { %v3470_v59 = vpack.c.bf16 %v3466_v48, %v3466_v48  ;;  %v3684_v20 = vpop.permute.xlu1 %3683 }
0x1c9c   :  { %v3689_v47 = vsel %vm225_vm2, %v3684_v20, 0 }
0x1c9d   :  { %4873 = vmatmul.msk.bf16.vlgmr.msra.gmra.mxu3 %vm225_vm2, %v3470_v59 }
0x1ca1   :  { %v3281_v5 = vpop.f32.mrf.mxu1 }
0x1ca2   :  { %v3328_v31 = vpack.c.bf16 %v3281_v5, %v3281_v5 }
0x1ca3   :  { %v3661_v22 = vpop.permute.xlu1 %3660 }
0x1ca4   :  { %v3666_v6 = vsel %vm225_vm2, %v3661_v22, 0  ;;  %v6412_v8 = vunpack.c.l.b16 %v3328_v31  ;;  %v3036_v31 = vld [vmem:[#allocation7 + $0x20] sm:$0xf] }
0x1ca5   :  { %3675 = vmatpush.bf16.xpose.msrb.mxu3 %v3666_v6 }
0x1ca9   :  { %v3283_v56 = vpop.f32.mrf.mxu1 }
0x1cab   :  { %v3659_v21 = vpop.permute.xlu1 %3658 }
0x1cad   :  { %3721 = vmatpush.bf16.xpose.msra.mxu3 %v3712_v9 }
0x1cae   :  { %4879 = vmatmul.msk.bf16.vlgmr.msrb.gmra.mxu3 %vm225_vm2, %v3659_v21 }
0x1cb2   :  { %v3260_v33 = vpop.f32.mrf.mxu0 }
0x1cb3   :  { %v3327_v23 = vpack.c.bf16 %v3260_v33, %v3260_v33  ;;  %v3705_v34 = vpop.permute.xlu1 %3704  ;;  %v3614_v33 = vsel %vm370_vm3, %v3036_v31, 0 }
0x1cb5   :  { %v6414_v62 = vunpack.c.l.b16 %v3327_v23 }
0x1cb7   :  { %v3605_v32 = vpack.c.b16 %v6412_v8, %v6414_v62 }
0x1cba   :  { %v3262_v7 = vpop.f32.mrf.mxu0 }
0x1cbe   :  { %4881 = vmatmul.msk.bf16.vlgmr.msra.gmra.mxu3 %vm225_vm2, %v3705_v34 }
0x1cc2   :  { %v3350_v36 = vpop.f32.mrf.mxu0 }
0x1cc3   :  { %v3423_v55 = vsel %vm225_vm2, %v3350_v36, -inf }
0x1cc4   :  { %3424 = vmax.xlane.f32.xlu1 %v3423_v55 }
0x1cca   :  { %v3352_v49 = vpop.f32.mrf.mxu0 }
0x1cdb   :  { %v3455_v46 = vpop.xlane.xlu0 %3454 }
0x1cdc   :  { %5181 = vrcp.f32 %v3455_v46 }
0x1ce2   :  { %v5182_v50 = vpop.eup %5181 }
0x1ce3   :  { %v3465_v39 = vmul.f32 %v5182_v50, %v5178_v41 }
0x1ce5   :  { %v3469_v45 = vpack.c.bf16 %v3465_v39, %v3465_v39 }
0x1ce7   :  { %4872 = vmatmul.msk.bf16.vlgmr.msrb.gmra.mxu2 %vm225_vm2, %v3469_v45 }
0x1ce8   :  { %3698 = vmatpush.bf16.xpose.msrb.mxu2 %v3689_v47 }
0x1cee   :  { %v3682_v58 = vpop.permute.xlu0 %3681 }
0x1cf7   :  { %4878 = vmatmul.msk.bf16.vlgmr.msra.gmra.mxu2 %vm225_vm2, %v3636_v12 }
0x1cf9   :  { %v3373_v2 = vpop.f32.mrf.mxu1 }
0x1cfa   :  { %v3426_v16 = vsel %vm225_vm2, %v3373_v2, -inf }
0x1cfb   :  { %3427 = vmax.xlane.f32.xlu0 %v3426_v16 }
0x1d01   :  { %v3375_v35 = vpop.f32.mrf.mxu1 }
0x1d07   :  { %4880 = vmatmul.msk.bf16.vlgmr.msrb.gmra.mxu2 %vm225_vm2, %v3682_v58 }
0x1d0f   :  { %3492 = vrot.lane.b32.xlu0 %v6299_v15, %s5408_s11 }
0x1d20   :  { %v3551_v60 = vpop.f32.mrf.mxu3 }
0x1d21   :  { %v3558_v27 = vpack.c.bf16 %v3551_v60, %v3551_v60 }
0x1d23   :  { %v6438_v51 = vunpack.c.l.b16 %v3558_v27 }
0x1d28   :  { %v3553_v63 = vpop.f32.mrf.mxu3 }
0x1d31   :  { %v6427_v3 = vpop.f32.mrf.mxu3 }
0x1d32   :  { %v3730_v56 = vsel %vm225_vm2, %v6427_v3, -inf }
0x1d37   :  { %v3425_v0 = vpop.xlane.xlu1 %3424 }
0x1d38   :  { %v3435_v4 = vsub.f32 %v3350_v36, %v3425_v0 }
0x1d39   :  { %v3679_v28 = vpop.f32.mrf.mxu3 }
0x1d3a   :  { %v3439_v38 = vmul.f32 1.442695, %v3435_v4 }
0x1d3c   :  { %5183 = vpow2.f32 %v3439_v38 }
0x1d41   :  { %v6429_v37 = vpop.f32.mrf.mxu3 }
0x1d42   :  { %v5184_v10 = vpop.eup %5183  ;;  %v3736_v21 = vsel %vm225_vm2, %v6429_v37, -inf }
0x1d43   :  { %v3447_v11 = vsel %vm225_vm2, %v5184_v10, 0.0 }
0x1d44   :  { %3448 = vadd.xlane.f32.xlu2 %v3447_v11 }
0x1d49   :  { %v3725_v41 = vpop.f32.mrf.mxu3 }
0x1d5c   :  { %3796 = vrot.lane.b32.xlu2 %v6299_v15, %s5409_s12 }
0x1d64   :  { %3907 = vrot.lane.b32.xlu2 %v6331_v44, %s5411_s3 }
0x1d6a   :  { %v3530_v42 = vpop.f32.mrf.mxu2 }
0x1d6b   :  { %v3557_v26 = vpack.c.bf16 %v3530_v42, %v3530_v42 }
0x1d6c   :  { %3928 = vrot.lane.b32.xlu2 %v6299_v15, %s5410_s13 }
0x1d6d   :  { %v6440_v13 = vunpack.c.l.b16 %v3557_v26 }
0x1d6e   :  { %v3428_v52 = vpop.xlane.xlu0 %3427 }
0x1d6f   :  { %v3568_v12 = vpack.c.b16 %v6438_v51, %v6440_v13  ;;  %v3436_v57 = vsub.f32 %v3373_v2, %v3428_v52 }
0x1d71   :  { %v3441_v53 = vmul.f32 1.442695, %v3436_v57 }
0x1d72   :  { %v3532_v54 = vpop.f32.mrf.mxu2 }
0x1d73   :  { %5185 = vpow2.f32 %v3441_v53 }
0x1d79   :  { %v5186_v14 = vpop.eup %5185 }
0x1d7a   :  { %v6444_v48 = vpop.f32.mrf.mxu2  ;;  %v3450_v59 = vsel %vm225_vm2, %v5186_v14, 0.0 }
0x1d7b   :  { %3451 = vadd.xlane.f32.xlu1 %v3450_v59  ;;  %v3727_v61 = vsel %vm225_vm2, %v6444_v48, -inf }
0x1d81   :  { %v3493_v20 = vpop.permute.xlu0 %3492 }
0x1d82   :  { %v3498_v5 = vsel %vm370_vm3, %v3493_v20, 0  ;;  %v3656_v19 = vpop.f32.mrf.mxu2 }
0x1d83   :  { %3507 = vmatpush.bf16.msrb.mxu1 %v3498_v5 }
0x1d87   :  { %3623 = vmatpush.bf16.msra.mxu1 %v3614_v33 }
0x1d8a   :  { %v3700_v22 = vpop.f32.mrf.mxu2 }
0x1d8b   :  { %v3733_v6 = vsel %vm225_vm2, %v3700_v22, -inf }
0x1d8c   :  { %3734 = vmax.xlane.f32.xlu0 %v3733_v6 }
0x1d92   :  { %v3702_v9 = vpop.f32.mrf.mxu2 }
0x1d94   :  { %3471 = vrot.lane.b32.xlu1 %v6331_v44, %s5408_s11 }
0x1d95   :  { %3731 = vmax.xlane.f32.xlu2 %v3730_v56 }
0x1d9c   :  { %3817 = vrot.lane.b32.xlu1 %v6295_v40, %s5409_s12 }
0x1d9d   :  { %3737 = vmax.xlane.f32.xlu2 %v3736_v21 }
0x1da0   :  { %3838 = vrot.lane.b32.xlu0 %v6301_v30, %s5409_s12 }
0x1da4   :  { %3930 = vrot.lane.b32.xlu1 %v6299_v15, %s5411_s3 }
0x1db5   :  { %3905 = vrot.lane.b32.xlu2 %v6331_v44, %s5410_s13 }
0x1db7   :  { %v3449_v23 = vpop.xlane.xlu2 %3448 }
0x1dbf   :  { %v3797_v7 = vpop.permute.xlu2 %3796 }
0x1dc0   :  { %v3802_v50 = vsel %vm370_vm3, %v3797_v7, 0 }
0x1dc7   :  { %v3908_v55 = vpop.permute.xlu2 %3907 }
0x1dc8   :  { %v3913_v38 = vsel %vm225_vm2, %v3908_v55, 0 }
0x1dcf   :  { %v6466_v45 = vpop.permute.xlu2 %3928 }
0x1dee   :  { %v3452_v34 = vpop.xlane.xlu1 %3451 }
0x1def   :  { %5187 = vrcp.f32 %v3452_v34 }
0x1df0   :  { %5189 = vrcp.f32 %v3449_v23 }
0x1df5   :  { %v5188_v36 = vpop.eup %5187 }
0x1df6   :  { %v3464_v49 = vmul.f32 %v5188_v36, %v5186_v14  ;;  %v5190_v2 = vpop.eup %5189 }
0x1df7   :  { %v3463_v35 = vmul.f32 %v5190_v2, %v5184_v10 }
0x1df8   :  { %v3468_v46 = vpack.c.bf16 %v3464_v49, %v3464_v49 }
0x1df9   :  { %v3467_v0 = vpack.c.bf16 %v3463_v35, %v3463_v35 }
0x1dfa   :  { %4871 = vmatmul.msk.bf16.vlgmr.msrb.gmra.mxu1 %vm225_vm2, %v3468_v46 }
0x1dfb   :  { %3811 = vmatpush.bf16.msrb.mxu1 %v3802_v50 }
0x1dff   :  { %v3735_v39 = vpop.xlane.xlu0 %3734 }
0x1e00   :  { %v3741_v47 = vsub.f32 %v3700_v22, %v3735_v39 }
0x1e02   :  { %v3747_v16 = vmul.f32 1.442695, %v3741_v47 }
0x1e04   :  { %5191 = vpow2.f32 %v3747_v16 }
0x1e06   :  { %v3472_v58 = vpop.permute.xlu1 %3471 }
0x1e07   :  { %v3477_v60 = vsel %vm370_vm3, %v3472_v58, 0 }
0x1e08   :  { %3486 = vmatpush.bf16.msra.mxu0 %v3477_v60  ;;  %v3732_v63 = vpop.xlane.xlu2 %3731 }
0x1e09   :  { %v3740_v4 = vsub.f32 %v6427_v3, %v3732_v63 }
0x1e0a   :  { %v5192_v28 = vpop.eup %5191  ;;  %4876 = vmatmul.msk.bf16.vlgmr.msra.gmra.mxu1 %vm225_vm2, %v3605_v32 }
0x1e0b   :  { %v3745_v11 = vmul.f32 1.442695, %v3740_v4  ;;  %3922 = vmatpush.bf16.xpose.msra.mxu1 %v3913_v38  ;;  %4870 = vmatmul.msk.bf16.vlgmr.msra.gmra.mxu0 %vm225_vm2, %v3467_v0  ;;  %v3757_v10 = vsel %vm225_vm2, %v5192_v28, 0.0 }
0x1e0c   :  { %3758 = vadd.xlane.f32.xlu0 %v3757_v10 }
0x1e0d   :  { %5193 = vpow2.f32 %v3745_v11 }
0x1e0e   :  { %v3818_v41 = vpop.permute.xlu1 %3817 }
0x1e0f   :  { %v3823_v27 = vsel %vm370_vm3, %v3818_v41, 0 }
0x1e10   :  { %3832 = vmatpush.bf16.msra.mxu2 %v3823_v27  ;;  %v3738_v3 = vpop.xlane.xlu2 %3737 }
0x1e11   :  { %v3742_v42 = vsub.f32 %v6429_v37, %v3738_v3 }
0x1e12   :  { %v3839_v26 = vpop.permute.xlu0 %3838 }
0x1e13   :  { %v5194_v52 = vpop.eup %5193  ;;  %v3749_v8 = vmul.f32 1.442695, %v3742_v42  ;;  %v3844_v62 = vsel %vm370_vm3, %v3839_v26, 0 }
0x1e14   :  { %3853 = vmatpush.bf16.msrb.mxu3 %v3844_v62  ;;  %v3754_v32 = vsel %vm225_vm2, %v5194_v52, 0.0 }
0x1e15   :  { %5195 = vpow2.f32 %v3749_v8  ;;  %3755 = vadd.xlane.f32.xlu2 %v3754_v32 }
0x1e16   :  { %v3931_v57 = vpop.permute.xlu1 %3930 }
0x1e17   :  { %v3936_v53 = vsel %vm225_vm2, %v3931_v57, 0 }
0x1e18   :  { %3945 = vmatpush.bf16.xpose.msrb.mxu2 %v3936_v53  ;;  %v3906_v5 = vpop.permute.xlu2 %3905 }
0x1e1a   :  { %4877 = vmatmul.msk.bf16.gmra.mxu1 %vm225_vm2, %v3606_v17  ;;  %v3576_v17 = vsel %vm370_vm3, %v3037_v18, 0 }
0x1e1b   :  { %v5196_v37 = vpop.eup %5195  ;;  %3585 = vmatpush.bf16.msrb.mxu0 %v3576_v17 }
0x1e1c   :  { %v3760_v54 = vsel %vm225_vm2, %v5196_v37, 0.0 }
0x1e1d   :  { %3761 = vadd.xlane.f32.xlu1 %v3760_v54 }
0x1e20   :  { %3976 = vrot.lane.b32.xlu0 %v6301_v30, %s5411_s3 }
0x1e2d   :  { %3953 = vrot.lane.b32.xlu2 %v6295_v40, %s5411_s3 }
0x1e35   :  { %3974 = vrot.lane.b32.xlu2 %v6301_v30, %s5410_s13 }
0x1e36   :  { %3951 = vrot.lane.b32.xlu1 %v6295_v40, %s5410_s13 }
0x1e3e   :  { %3775 = vrot.lane.b32.xlu1 %v6331_v44, %s5409_s12  ;;  %s4680_s12 = sshll.u32 %s6698_s10, 4  ;;  %s4681_s12 = int_to_ptr.hbm [resolvable:$true] %s4680_s12 }
0x1e4a   :  { %3728 = vmax.xlane.f32.xlu0 %v3727_v61 }
0x1e77   :  { %v3509_v14 = vpop.f32.mrf.mxu1 }
0x1e78   :  { %v3556_v22 = vpack.c.bf16 %v3509_v14, %v3509_v14 }
0x1e7a   :  { %v3564_v33 = vunpack.c.l.b16 %v3556_v22 }
0x1e7f   :  { %v3511_v59 = vpop.f32.mrf.mxu1  ;;  %v3759_v20 = vpop.xlane.xlu0 %3758 }
0x1e80   :  { %5197 = vrcp.f32 %v3759_v20 }
0x1e86   :  { %v5198_v19 = vpop.eup %5197 }
0x1e87   :  { %v3769_v6 = vmul.f32 %v5198_v19, %v5192_v28 }
0x1e88   :  { %v3488_v9 = vpop.f32.mrf.mxu0  ;;  %v3756_v56 = vpop.xlane.xlu2 %3755 }
0x1e89   :  { %v3773_v21 = vpack.c.bf16 %v3769_v6, %v3769_v6  ;;  %v3555_v31 = vpack.c.bf16 %v3488_v9, %v3488_v9  ;;  %5199 = vrcp.f32 %v3756_v56 }
0x1e8b   :  { %v3563_v23 = vunpack.c.l.b16 %v3555_v31  ;;  %4884 = vmatmul.msk.bf16.vlgmr.msra.gmra.mxu2 %vm225_vm2, %v3773_v21 }
0x1e8d   :  { %v3567_v7 = vpack.c.b16 %v3564_v33, %v3563_v23 }
0x1e8f   :  { %v5200_v34 = vpop.eup %5199  ;;  %4874 = vmatmul.msk.bf16.vlgmr.msrb.gmra.mxu0 %vm225_vm2, %v3567_v7 }
0x1e90   :  { %v3768_v36 = vmul.f32 %v5200_v34, %v5194_v52  ;;  %v3490_v55 = vpop.f32.mrf.mxu0  ;;  %v3762_v49 = vpop.xlane.xlu1 %3761 }
0x1e91   :  { %5201 = vrcp.f32 %v3762_v49  ;;  %v3954_v46 = vpop.permute.xlu2 %3953 }
0x1e92   :  { %v3772_v50 = vpack.c.bf16 %v3768_v36, %v3768_v36  ;;  %v3959_v39 = vsel %vm225_vm2, %v3954_v46, 0  ;;  %v3977_v47 = vpop.permute.xlu0 %3976 }
0x1e93   :  { %v3982_v2 = vsel %vm225_vm2, %v3977_v47, 0  ;;  %3968 = vmatpush.bf16.xpose.msra.mxu3 %v3959_v39 }
0x1e94   :  { %4883 = vmatmul.msk.bf16.vlgmr.msrb.gmra.mxu1 %vm225_vm2, %v3772_v50 }
0x1e95   :  { %3991 = vmatpush.bf16.xpose.msrb.mxu1 %v3982_v2 }
0x1e97   :  { %v5202_v16 = vpop.eup %5201 }
0x1e98   :  { %v3770_v35 = vmul.f32 %v5202_v16, %v5196_v37 }
0x1e99   :  { %v3975_v4 = vpop.permute.xlu2 %3974 }
0x1e9a   :  { %v3774_v58 = vpack.c.bf16 %v3770_v35, %v3770_v35 }
0x1e9b   :  { %4889 = vmatmul.msk.bf16.vlgmr.msrb.gmra.mxu2 %vm225_vm2, %v6466_v45 }
0x1e9c   :  { %4885 = vmatmul.msk.bf16.vlgmr.msrb.gmra.mxu3 %vm225_vm2, %v3774_v58 }
0x1e9f   :  { %4875 = vmatmul.msk.bf16.gmra.mxu0 %vm225_vm2, %v3568_v12  ;;  %v6518_v12 = vpop.f32.mrf.mxu1 }
0x1ea4   :  { %4888 = vmatmul.msk.bf16.vlgmr.msra.gmra.mxu1 %vm225_vm2, %v3906_v5 }
0x1ea7   :  { %v6520_v11 = vpop.f32.mrf.mxu1 }
0x1ea8   :  { %v3952_v60 = vpop.permute.xlu1 %3951 }
0x1eac   :  { %4890 = vmatmul.msk.bf16.vlgmr.msra.gmra.mxu3 %vm225_vm2, %v3952_v60  ;;  %v3038_v60 = vld [vmem:[#allocation7 + $0x28] sm:$0xf] }
0x1eaf   :  { %v6522_v10 = vpop.f32.mrf.mxu1 }
0x1eb0   :  { %v3776_v63 = vpop.permute.xlu1 %3775 }
0x1eb1   :  { %v3781_v0 = vsel %vm370_vm3, %v3776_v63, 0 }
0x1eb2   :  { %3790 = vmatpush.bf16.msra.mxu0 %v3781_v0  ;;  %v3880_v0 = vsel %vm370_vm3, %v3038_v60, 0 }
0x1eb4   :  { %4891 = vmatmul.msk.bf16.vlgmr.msrb.gmra.mxu1 %vm225_vm2, %v3975_v4 }
0x1eb6   :  { %3889 = vmatpush.bf16.msrb.mxu0 %v3880_v0 }
0x1eb7   :  { %v6524_v41 = vpop.f32.mrf.mxu1 }
0x1ebd   :  { %v3729_v45 = vpop.xlane.xlu0 %3728 }
0x1ebe   :  { %v3739_v28 = vsub.f32 %v6444_v48, %v3729_v45 }
0x1ec0   :  { %v3743_v38 = vmul.f32 1.442695, %v3739_v28 }
0x1ec2   :  { %5203 = vpow2.f32 %v3743_v38 }
0x1ec8   :  { %v5204_v51 = vpop.eup %5203 }
0x1ec9   :  { %v3751_v13 = vsel %vm225_vm2, %v5204_v51, 0.0 }
0x1eca   :  { %3752 = vadd.xlane.f32.xlu2 %v3751_v13 }
0x1f0c   :  { %v6542_v50 = vpop.f32.mrf.mxu0 }
0x1f0e   :  { %v3834_v27 = vpop.f32.mrf.mxu2 }
0x1f0f   :  { %v3861_v48 = vpack.c.bf16 %v3834_v27, %v3834_v27 }
0x1f11   :  { %v6526_v3 = vpop.f32.mrf.mxu1  ;;  %v6529_v53 = vunpack.c.l.b16 %v3861_v48 }
0x1f12   :  { %v3860_v48 = vpack.c.bf16 %v6526_v3, %v6526_v3 }
0x1f14   :  { %v6545_v63 = vpop.f32.mrf.mxu0 }
0x1f16   :  { %v3836_v42 = vpop.f32.mrf.mxu2 }
0x1f19   :  { %v3815_v26 = vpop.f32.mrf.mxu1 }
0x1f1c   :  { %v3592_v13 = vpop.f32.mrf.mxu0 }
0x1f1e   :  { %v3947_v52 = vpop.f32.mrf.mxu2 }
0x1f1f   :  { %v3855_v8 = vpop.f32.mrf.mxu3  ;;  %v4000_v62 = vsel %vm225_vm2, %v3947_v52, -inf }
0x1f20   :  { %v3862_v32 = vpack.c.bf16 %v3855_v8, %v3855_v8  ;;  %4001 = vmax.xlane.f32.xlu0 %v4000_v62  ;;  %v3868_v62 = vunpack.c.l.b16 %v3860_v48 }
0x1f21   :  { %v3924_v57 = vpop.f32.mrf.mxu1 }
0x1f22   :  { %v6531_v37 = vunpack.c.l.b16 %v3862_v32  ;;  %v3997_v54 = vsel %vm225_vm2, %v3924_v57, -inf }
0x1f23   :  { %3998 = vmax.xlane.f32.xlu1 %v3997_v54 }
0x1f24   :  { %v3872_v61 = vpack.c.b16 %v6531_v37, %v6529_v53  ;;  %v6555_v26 = vpop.f32.mrf.mxu0 }
0x1f26   :  { %v3949_v18 = vpop.f32.mrf.mxu2 }
0x1f27   :  { %v3857_v17 = vpop.f32.mrf.mxu3 }
0x1f29   :  { %v3926_v14 = vpop.f32.mrf.mxu1 }
0x1f2f   :  { %v3970_v59 = vpop.f32.mrf.mxu3 }
0x1f30   :  { %v4003_v20 = vsel %vm225_vm2, %v3970_v59, -inf }
0x1f31   :  { %4004 = vmax.xlane.f32.xlu2 %v4003_v20  ;;  %v3993_v5 = vpop.f32.mrf.mxu1 }
0x1f32   :  { %v4006_v19 = vsel %vm225_vm2, %v3993_v5, -inf }
0x1f33   :  { %4007 = vmax.xlane.f32.xlu0 %v4006_v19 }
0x1f37   :  { %v3972_v22 = vpop.f32.mrf.mxu3 }
0x1f39   :  { %v3995_v6 = vpop.f32.mrf.mxu1 }
0x1f3d   :  { %v3753_v9 = vpop.xlane.xlu2 %3752 }
0x1f3e   :  { %5205 = vrcp.f32 %v3753_v9 }
0x1f44   :  { %v5206_v56 = vpop.eup %5205 }
0x1f45   :  { %v3767_v21 = vmul.f32 %v5206_v56, %v5204_v51 }
0x1f47   :  { %v3771_v31 = vpack.c.bf16 %v3767_v21, %v3767_v21 }
0x1f49   :  { %4045 = vrot.lane.b32.xlu2 %v6331_v44, %s5412_s14  ;;  %4882 = vmatmul.msk.bf16.vlgmr.msra.gmra.mxu0 %vm225_vm2, %v3771_v31 }
0x1f93   :  { %v4002_v33 = vpop.xlane.xlu0 %4001 }
0x1f94   :  { %v4010_v23 = vsub.f32 %v3947_v52, %v4002_v33 }
0x1f96   :  { %v4015_v7 = vmul.f32 1.442695, %v4010_v23  ;;  %v3999_v34 = vpop.xlane.xlu1 %3998  ;;  %v3626_v23 = vadd.f32 %v6518_v12, %v6542_v50 }
0x1f97   :  { %v4009_v36 = vsub.f32 %v3924_v57, %v3999_v34 }
0x1f98   :  { %5207 = vpow2.f32 %v4015_v7 }
0x1f99   :  { %v4013_v55 = vmul.f32 1.442695, %v4009_v36 }
0x1f9b   :  { %5209 = vpow2.f32 %v4013_v55  ;;  %v3628_v55 = vadd.f32 %v6520_v11, %v6545_v63 }
0x1f9e   :  { %v5208_v49 = vpop.eup %5207 }
0x1f9f   :  { %v4024_v46 = vsel %vm225_vm2, %v5208_v49, 0.0 }
0x1fa0   :  { %4025 = vadd.xlane.f32.xlu0 %v4024_v46 }
0x1fa1   :  { %v5210_v39 = vpop.eup %5209 }
0x1fa2   :  { %v4021_v47 = vsel %vm225_vm2, %v5210_v39, 0.0 }
0x1fa3   :  { %4022 = vadd.xlane.f32.xlu2 %v4021_v47 }
0x1fa4   :  { %v4005_v44 = vpop.xlane.xlu2 %4004 }
0x1fa5   :  { %v4011_v35 = vsub.f32 %v3970_v59, %v4005_v44 }
0x1fa6   :  { %v4008_v2 = vpop.xlane.xlu0 %4007 }
0x1fa7   :  { %v4012_v16 = vsub.f32 %v3993_v5, %v4008_v2  ;;  %v4017_v45 = vmul.f32 1.442695, %v4011_v35  ;;  %v3039_v2 = vld [vmem:[#allocation7 + $0x2c] sm:$0xf] }
0x1fa9   :  { %v4019_v58 = vmul.f32 1.442695, %v4012_v16  ;;  %v4150_v16 = vsel %vm370_vm3, %v3039_v2, 0 }
0x1fab   :  { %5211 = vpow2.f32 %v4019_v58 }
0x1fac   :  { %v4046_v4 = vpop.permute.xlu2 %4045  ;;  %5213 = vpow2.f32 %v4017_v45 }
0x1fad   :  { %v4051_v28 = vsel %vm370_vm3, %v4046_v4, 0 }
0x1fae   :  { %4060 = vmatpush.bf16.msra.mxu2 %v4051_v28 }
0x1fb1   :  { %v5212_v38 = vpop.eup %5211 }
0x1fb2   :  { %v4030_v51 = vsel %vm225_vm2, %v5212_v38, 0.0  ;;  %v5214_v27 = vpop.eup %5213  ;;  %4159 = vmatpush.bf16.msrb.mxu2 %v4150_v16 }
0x1fb3   :  { %4031 = vadd.xlane.f32.xlu1 %v4030_v51  ;;  %v4027_v42 = vsel %vm225_vm2, %v5214_v27, 0.0 }
0x1fb4   :  { %4066 = vrot.lane.b32.xlu0 %v6299_v15, %s5412_s14 }
0x1fbb   :  { %4108 = vrot.lane.b32.xlu2 %v6301_v30, %s5412_s14  ;;  %4028 = vadd.xlane.f32.xlu1 %v4027_v42 }
0x1fc6   :  { %v3792_v52 = vpop.f32.mrf.mxu0 }
0x1fc7   :  { %v3859_v8 = vpack.c.bf16 %v3792_v52, %v3792_v52 }
0x1fc9   :  { %v3867_v32 = vunpack.c.l.b16 %v3859_v8  ;;  %v6584_v8 = vld [vmem:[%s6696_s8 + $0x10] sm:$0x7f] }
0x1fcb   :  { %v3871_v57 = vpack.c.b16 %v3868_v62, %v3867_v32  ;;  %v4175_v62 = vperm.slane %v6584_v8, 0 }
0x1fcd   :  { %4886 = vmatmul.msk.bf16.vlgmr.msrb.gmra.mxu0 %vm225_vm2, %v3871_v57 }
0x1fce   :  { %v3794_v15 = vpop.f32.mrf.mxu0 }
0x1fd4   :  { %4087 = vrot.lane.b32.xlu1 %v6295_v40, %s5412_s14 }
0x1fdd   :  { %4887 = vmatmul.msk.bf16.gmra.mxu0 %vm225_vm2, %v3872_v61 }
0x2013   :  { %v4026_v54 = vpop.xlane.xlu0 %4025 }
0x2016   :  { %v4023_v30 = vpop.xlane.xlu2 %4022 }
0x2017   :  { %5215 = vrcp.f32 %v4023_v30 }
0x2018   :  { %5217 = vrcp.f32 %v4026_v54 }
0x201d   :  { %v5216_v3 = vpop.eup %5215 }
0x201e   :  { %v4037_v18 = vmul.f32 %v5216_v3, %v5210_v39  ;;  %v4109_v17 = vpop.permute.xlu2 %4108  ;;  %v5218_v20 = vpop.eup %5217  ;;  %v3631_v39 = vadd.f32 %v6522_v10, %v3592_v13 }
0x201f   :  { %v4114_v14 = vsel %vm370_vm3, %v4109_v17, 0  ;;  %v4038_v40 = vmul.f32 %v5218_v20, %v5208_v49 }
0x2020   :  { %v4041_v59 = vpack.c.bf16 %v4037_v18, %v4037_v18  ;;  %4123 = vmatpush.bf16.msra.mxu1 %v4114_v14 }
0x2021   :  { %v4042_v37 = vpack.c.bf16 %v4038_v40, %v4038_v40 }
0x2022   :  { %4892 = vmatmul.msk.bf16.vlgmr.msra.gmra.mxu2 %vm225_vm2, %v4041_v59 }
0x2026   :  { %v4032_v5 = vpop.xlane.xlu1 %4031  ;;  %v4067_v19 = vpop.permute.xlu0 %4066 }
0x2027   :  { %5219 = vrcp.f32 %v4032_v5  ;;  %v4072_v53 = vsel %vm370_vm3, %v4067_v19, 0  ;;  %v3633_v19 = vadd.f32 %v6524_v41, %v6555_v26 }
0x2028   :  { %4081 = vmatpush.bf16.msrb.mxu3 %v4072_v53 }
0x202b   :  { %4893 = vmatmul.msk.bf16.vlgmr.msrb.gmra.mxu3 %vm225_vm2, %v4042_v37 }
0x202d   :  { %v5220_v61 = vpop.eup %5219 }
0x202e   :  { %v4040_v22 = vmul.f32 %v5220_v61, %v5212_v38  ;;  %v4029_v9 = vpop.xlane.xlu1 %4028 }
0x202f   :  { %5221 = vrcp.f32 %v4029_v9 }
0x2030   :  { %v4044_v6 = vpack.c.bf16 %v4040_v22, %v4040_v22 }
0x2032   :  { %4895 = vmatmul.msk.bf16.vlgmr.msra.gmra.mxu1 %vm225_vm2, %v4044_v6 }
0x2035   :  { %v5222_v56 = vpop.eup %5221 }
0x2036   :  { %v4039_v21 = vmul.f32 %v5222_v56, %v5214_v27 }
0x2038   :  { %v4043_v7 = vpack.c.bf16 %v4039_v21, %v4039_v21 }
0x2046   :  { %v4088_v31 = vpop.permute.xlu1 %4087 }
0x2047   :  { %v4093_v33 = vsel %vm370_vm3, %v4088_v31, 0 }
0x2048   :  { %4102 = vmatpush.bf16.msra.mxu0 %v4093_v33 }
0x204a   :  { %v3891_v34 = vpop.f32.mrf.mxu0 }
0x204b   :  { %v3901_v36 = vadd.f32 %v3891_v34, %v3626_v23  ;;  %4894 = vmatmul.msk.bf16.vlgmr.msra.gmra.mxu0 %vm225_vm2, %v4043_v7 }
0x2052   :  { %v3893_v49 = vpop.f32.mrf.mxu0 }
0x2053   :  { %v3902_v46 = vadd.f32 %v3893_v49, %v3628_v55 }
0x205a   :  { %v3896_v47 = vpop.f32.mrf.mxu0 }
0x205b   :  { %v3903_v44 = vadd.f32 %v3896_v47, %v3631_v39 }
0x2062   :  { %v3898_v10 = vpop.f32.mrf.mxu0 }
0x20a5   :  { %v4062_v35 = vpop.f32.mrf.mxu2 }
0x20a6   :  { %v4129_v12 = vpack.c.bf16 %v4062_v35, %v4062_v35  ;;  %v4960_v35 = vld [vmem:[#allocation8 + $0x48] sm:$0xff] }
0x20a7   :  { %4309 = vmatpush.bf16.msra.mxu3 %v4960_v35 }
0x20a8   :  { %v4137_v4 = vunpack.c.l.b16 %v4129_v12 }
0x20ad   :  { %v4064_v50 = vpop.f32.mrf.mxu2 }
0x20ae   :  { %v4083_v58 = vpop.f32.mrf.mxu3 }
0x20af   :  { %v4130_v60 = vpack.c.bf16 %v4083_v58, %v4083_v58  ;;  %v4125_v0 = vpop.f32.mrf.mxu1 }
0x20b0   :  { %v4132_v38 = vpack.c.bf16 %v4125_v0, %v4125_v0 }
0x20b1   :  { %v4138_v45 = vunpack.c.l.b16 %v4130_v60  ;;  %v4959_v60 = vld [vmem:[#allocation8 + $0x40] sm:$0xff] }
0x20b2   :  { %v4140_v27 = vunpack.c.l.b16 %v4132_v38  ;;  %4310 = vmatpush.bf16.msra.mxu3 %v4959_v60 }
0x20b3   :  { %v4141_v28 = vpack.c.b16 %v4138_v45, %v4137_v4 }
0x20b5   :  { %4896 = vmatmul.msk.bf16.vlgmr.msrb.gmra.mxu2 %vm225_vm2, %v4141_v28 }
0x20b6   :  { %v4085_v11 = vpop.f32.mrf.mxu3 }
0x20b7   :  { %v4127_v63 = vpop.f32.mrf.mxu1 }
0x20c8   :  { %v4104_v51 = vpop.f32.mrf.mxu0 }
0x20c9   :  { %v4131_v13 = vpack.c.bf16 %v4104_v51, %v4104_v51 }
0x20cb   :  { %v4139_v42 = vunpack.c.l.b16 %v4131_v13 }
0x20cd   :  { %v4142_v48 = vpack.c.b16 %v4140_v27, %v4139_v42 }
0x20cf   :  { %4897 = vmatmul.msk.bf16.gmra.mxu2 %vm225_vm2, %v4142_v48 }
0x20d0   :  { %v4106_v52 = vpop.f32.mrf.mxu0 }
0x2138   :  { %v4161_v32 = vpop.f32.mrf.mxu2 }
0x2139   :  { %v4171_v57 = vadd.f32 %v4161_v32, %v3901_v36 }
0x213b   :  { %v4176_v15 = vadd.f32 %v4175_v62, %v4171_v57  ;;  %v4272_v57 = vperm.slane %v6584_v8, 1 }
0x213d   :  { %v4180_v30 = vadd.f32 %v4176_v15, %v6277_v29  ;;  %v3904_v29 = vadd.f32 %v3898_v10, %v3633_v19 }
0x213f   :  { %v4184_v54 = vsel %vm190_vm1, %v4180_v30, 0.0 }
0x2140   :  { %4185 = vadd.xlane.f32.xlu0 %v4184_v54  ;;  %v4163_v3 = vpop.f32.mrf.mxu2 }
0x2141   :  { %v4172_v18 = vadd.f32 %v4163_v3, %v3902_v46 }
0x2143   :  { %v4177_v17 = vadd.f32 %v4175_v62, %v4172_v18 }
0x2145   :  { %v4181_v14 = vadd.f32 %v4177_v17, %v6279_v25  ;;  %v4277_v17 = vperm.slane %v6584_v8, 2 }
0x2147   :  { %v4187_v59 = vsel %vm190_vm1, %v4181_v14, 0.0 }
0x2148   :  { %4188 = vadd.xlane.f32.xlu2 %v4187_v59 }
0x2152   :  { %v4166_v20 = vpop.f32.mrf.mxu2 }
0x2153   :  { %v4173_v40 = vadd.f32 %v4166_v20, %v3903_v44 }
0x2155   :  { %v4178_v5 = vadd.f32 %v4175_v62, %v4173_v40 }
0x2157   :  { %v4182_v53 = vadd.f32 %v4178_v5, %v6288_v1 }
0x2159   :  { %v4190_v37 = vsel %vm190_vm1, %v4182_v53, 0.0 }
0x215a   :  { %4191 = vadd.xlane.f32.xlu1 %v4190_v37  ;;  %v4168_v61 = vpop.f32.mrf.mxu2 }
0x215b   :  { %v4174_v22 = vadd.f32 %v4168_v61, %v3904_v29 }
0x215d   :  { %v4179_v6 = vadd.f32 %v4175_v62, %v4174_v22 }
0x215f   :  { %v4183_v25 = vadd.f32 %v4179_v6, %v6290_v43 }
0x2161   :  { %v4193_v9 = vsel %vm190_vm1, %v4183_v25, 0.0 }
0x2162   :  { %4194 = vadd.xlane.f32.xlu0 %v4193_v9 }
0x21b3   :  { %v4186_v56 = vpop.xlane.xlu0 %4185 }
0x21b4   :  { %v4196_v21 = vmul.f32 %v4186_v56, %v5835_v24 }
0x21b6   :  { %v4200_v31 = vsub.f32 %v4180_v30, %v4196_v21 }
0x21b8   :  { %v4204_v33 = vmul.f32 %v4200_v31, %v4200_v31 }
0x21ba   :  { %v4208_v41 = vsel %vm190_vm1, %v4204_v33, 0.0 }
0x21bb   :  { %4209 = vadd.xlane.f32.xlu2 %v4208_v41  ;;  %v4189_v1 = vpop.xlane.xlu2 %4188 }
0x21bc   :  { %v4197_v26 = vmul.f32 %v4189_v1, %v5835_v24 }
0x21be   :  { %v4201_v23 = vsub.f32 %v4181_v14, %v4197_v26 }
0x21c0   :  { %v4205_v7 = vmul.f32 %v4201_v23, %v4201_v23 }
0x21c2   :  { %v4211_v34 = vsel %vm190_vm1, %v4205_v7, 0.0 }
0x21c3   :  { %4212 = vadd.xlane.f32.xlu0 %v4211_v34 }
0x21cd   :  { %v4192_v43 = vpop.xlane.xlu1 %4191 }
0x21ce   :  { %v4198_v36 = vmul.f32 %v4192_v43, %v5835_v24 }
0x21d0   :  { %v6602_v55 = vsub.f32 %v4182_v53, %v4198_v36 }
0x21d2   :  { %v4206_v49 = vmul.f32 %v6602_v55, %v6602_v55 }
0x21d4   :  { %v4214_v46 = vsel %vm190_vm1, %v4206_v49, 0.0 }
0x21d5   :  { %4215 = vadd.xlane.f32.xlu2 %v4214_v46  ;;  %v4195_v39 = vpop.xlane.xlu0 %4194 }
0x21d6   :  { %v4199_v47 = vmul.f32 %v4195_v39, %v5835_v24 }
0x21d8   :  { %v6608_v44 = vsub.f32 %v4183_v25, %v4199_v47 }
0x21da   :  { %v4207_v2 = vmul.f32 %v6608_v44, %v6608_v44 }
0x21dc   :  { %v4217_v16 = vsel %vm190_vm1, %v4207_v2, 0.0  ;;  %v4962_v2 = vld [vmem:[#allocation8 + $0x58] sm:$0xff] }
0x21dd   :  { %4218 = vadd.xlane.f32.xlu0 %v4217_v16  ;;  %4353 = vmatpush.bf16.msrb.mxu0 %v4962_v2  ;;  %v4961_v16 = vld [vmem:[#allocation8 + $0x50] sm:$0xff] }
0x21e1   :  { %4354 = vmatpush.bf16.msrb.mxu0 %v4961_v16 }
0x222e   :  { %v4210_v12 = vpop.xlane.xlu2 %4209 }
0x222f   :  { %v4220_v50 = vmul.f32 %v4210_v12, %v5835_v24 }
0x2231   :  { %v4224_v58 = vadd.f32 1e-05, %v4220_v50 }
0x2233   :  { %5223 = vrsqrt.f32 %v4224_v58  ;;  %vm4234_vm14 = vweird.f32 %v4224_v58 }
0x2236   :  { %v4213_v0 = vpop.xlane.xlu0 %4212 }
0x2237   :  { %v4221_v4 = vmul.f32 %v4213_v0, %v5835_v24 }
0x2239   :  { %v5224_v45 = vpop.eup %5223  ;;  %v4225_v28 = vadd.f32 1e-05, %v4221_v4 }
0x223a   :  { %v4229_v11 = vmul.f32 %v5224_v45, %v4224_v58  ;;  %vm4235_vm2 = vweird.f32 %v5224_v45 }
0x223b   :  { %5225 = vrsqrt.f32 %v4225_v28  ;;  %vm4236_vm15 = vmor %vm4234_vm14, %vm4235_vm2  ;;  %vm4244_vm4 = vweird.f32 %v4225_v28 }
0x223c   :  { %v4230_v63 = vmul.f32 %v5224_v45, %v4229_v11 }
0x223e   :  { %v4231_v10 = vmul.f32 0.5, %v4230_v63 }
0x2240   :  { %v4232_v38 = vsub.f32 1.5, %v4231_v10 }
0x2241   :  { %v5226_v51 = vpop.eup %5225 }
0x2242   :  { %v4233_v13 = vmul.f32 %v5224_v45, %v4232_v38  ;;  %v4239_v27 = vmul.f32 %v5226_v51, %v4225_v28  ;;  %vm4245_vm0 = vweird.f32 %v5226_v51 }
0x2243   :  { %vm4246_vm5 = vmor %vm4244_vm4, %vm4245_vm0 }
0x2244   :  { %v4240_v42 = vmul.f32 %v5226_v51, %v4239_v27  ;;  %v4237_v48 = vsel %vm4236_vm15, %v5224_v45, %v4233_v13 }
0x2245   :  { %v4268_v15 = vmul.f32 %v4237_v48, %v4200_v31 }
0x2246   :  { %v4241_v52 = vmul.f32 0.5, %v4240_v42 }
0x2247   :  { %v4273_v14 = vmul.f32 %v4272_v57, %v4268_v15 }
0x2248   :  { %v4242_v62 = vsub.f32 1.5, %v4241_v52  ;;  %v4216_v32 = vpop.xlane.xlu2 %4215 }
0x2249   :  { %v4222_v30 = vmul.f32 %v4216_v32, %v5835_v24  ;;  %v4278_v5 = vadd.f32 %v4277_v17, %v4273_v14  ;;  %v5414_v32 = vmov 0  }
0x224a   :  { %v4243_v54 = vmul.f32 %v5226_v51, %v4242_v62  ;;  %4992 = vset.pattern.permute.xlu2 %v5414_v32  ;;  %4991 = vset.pattern.permute.xlu0 %v5414_v32 }
0x224b   :  { %v4226_v3 = vadd.f32 1e-05, %v4222_v30  ;;  %4993 = vset.pattern.permute.xlu1 %v5414_v32 }
0x224c   :  { %v4247_v18 = vsel %vm4246_vm5, %v5226_v51, %v4243_v54  ;;  %v4328_v51 = vperm.slane %v6584_v8, 6 }
0x224d   :  { %v4269_v59 = vmul.f32 %v4247_v18, %v4201_v23  ;;  %5227 = vrsqrt.f32 %v4226_v3  ;;  %vm4254_vm7 = vweird.f32 %v4226_v3 }
0x224f   :  { %v4274_v20 = vmul.f32 %v4272_v57, %v4269_v59 }
0x2250   :  { %v4219_v40 = vpop.xlane.xlu0 %4218 }
0x2251   :  { %v6618_v19 = vadd.f32 %v4277_v17, %v4274_v20  ;;  %v4223_v53 = vmul.f32 %v4219_v40, %v5835_v24  ;;  %v4469_v40 = vld [vmem:[%s6689_s1 + $0x8] sm:$0xff] }
0x2253   :  { %v5228_v29 = vpop.eup %5227  ;;  %v4282_v37 = vpack.c.bf16 %v6618_v19, %v4278_v5  ;;  %v4227_v61 = vadd.f32 1e-05, %v4223_v53 }
0x2254   :  { %v4249_v22 = vmul.f32 %v5228_v29, %v4226_v3  ;;  %vm4255_vm6 = vweird.f32 %v5228_v29 }
0x2255   :  { %5229 = vrsqrt.f32 %v4227_v61  ;;  %4906 = vmatmul.msk.bf16.vlgmr.msra.gmra.mxu3 %vm190_vm1, %v4282_v37  ;;  %vm4256_vm8 = vmor %vm4254_vm7, %vm4255_vm6  ;;  %vm4264_vm10 = vweird.f32 %v4227_v61 }
0x2256   :  { %v4250_v6 = vmul.f32 %v5228_v29, %v4249_v22 }
0x2258   :  { %v4251_v25 = vmul.f32 0.5, %v4250_v6 }
0x225a   :  { %v4252_v9 = vsub.f32 1.5, %v4251_v25 }
0x225b   :  { %v5230_v56 = vpop.eup %5229 }
0x225c   :  { %v4253_v21 = vmul.f32 %v5228_v29, %v4252_v9  ;;  %v4259_v31 = vmul.f32 %v5230_v56, %v4227_v61  ;;  %vm4265_vm9 = vweird.f32 %v5230_v56 }
0x225d   :  { %vm4266_vm11 = vmor %vm4264_vm10, %vm4265_vm9  ;;  %vm4528_vm10 = vcmask 1041409  }
0x225e   :  { %v4260_v33 = vmul.f32 %v5230_v56, %v4259_v31  ;;  %v4257_v41 = vsel %vm4256_vm8, %v5228_v29, %v4253_v21 }
0x225f   :  { %v4270_v23 = vmul.f32 %v4257_v41, %v6602_v55  ;;  %v4284_v55 = vperm.slane %v6584_v8, 5 }
0x2260   :  { %v4261_v1 = vmul.f32 0.5, %v4260_v33 }
0x2261   :  { %v4275_v36 = vmul.f32 %v4272_v57, %v4270_v23 }
0x2262   :  { %v4262_v26 = vsub.f32 1.5, %v4261_v1  ;;  %v4468_v1 = vld [vmem:[%s6689_s1] sm:$0xff] }
0x2263   :  { %v4280_v46 = vadd.f32 %v4277_v17, %v4275_v36  ;;  %v4471_v36 = vld [vmem:[%s6689_s1 + $0x18] sm:$0xff] }
0x2264   :  { %v4263_v7 = vmul.f32 %v5230_v56, %v4262_v26 }
0x2266   :  { %v4267_v34 = vsel %vm4266_vm11, %v5230_v56, %v4263_v7  ;;  %vm4530_vm11 = vcmask 1042434  }
0x2267   :  { %v4271_v43 = vmul.f32 %v4267_v34, %v6608_v44 }
0x2269   :  { %v4276_v49 = vmul.f32 %v4272_v57, %v4271_v43 }
0x226b   :  { %v4281_v39 = vadd.f32 %v4277_v17, %v4276_v49  ;;  %v4470_v49 = vld [vmem:[%s6689_s1 + $0x10] sm:$0xff]  ;;  %s5415_s1 = smov [#allocation11]  }
0x226c   :  { %s4678_s30 = sshll.u32 %s5415_s1, 4  ;;  %s4679_s30 = int_to_ptr.vmem [resolvable:$true] %s4678_s30 }
0x226d   :  { %v4283_v47 = vpack.c.bf16 %v4281_v39, %v4280_v46 }
0x226f   :  { %4907 = vmatmul.msk.bf16.gmra.mxu3 %vm190_vm1, %v4283_v47 }
0x22d8   :  { %v4312_v35 = vpop.f32.mrf.mxu3 }
0x22d9   :  { %v4313_v12 = vadd.f32 %v4312_v35, %v4284_v55 }
0x22db   :  { %v4322_v60 = vmax.f32 %v4313_v12, 0.0 }
0x22e0   :  { %v4314_v50 = vpop.f32.mrf.mxu3 }
0x22e1   :  { %v4315_v58 = vadd.f32 %v4314_v50, %v4284_v55 }
0x22e3   :  { %v4323_v0 = vmax.f32 %v4315_v58, 0.0 }
0x22e5   :  { %v4326_v44 = vpack.c.bf16 %v4323_v0, %v4322_v60 }
0x22e7   :  { %4916 = vmatmul.msk.bf16.vlgmr.msrb.gmra.mxu0 %vm190_vm1, %v4326_v44 }
0x22f2   :  { %v4317_v4 = vpop.f32.mrf.mxu3 }
0x22f3   :  { %v4318_v45 = vadd.f32 %v4317_v4, %v4284_v55 }
0x22f5   :  { %v4324_v63 = vmax.f32 %v4318_v45, 0.0 }
0x22fa   :  { %v4319_v28 = vpop.f32.mrf.mxu3 }
0x22fb   :  { %v4320_v11 = vadd.f32 %v4319_v28, %v4284_v55 }
0x22fd   :  { %v4325_v10 = vmax.f32 %v4320_v11, 0.0 }
0x22ff   :  { %v4327_v38 = vpack.c.bf16 %v4325_v10, %v4324_v63 }
0x2301   :  { %4917 = vmatmul.msk.bf16.gmra.mxu0 %vm190_vm1, %v4327_v38 }
0x2364   :  { %v4356_v13 = vpop.f32.mrf.mxu0 }
0x2365   :  { %v4357_v27 = vadd.f32 %v4356_v13, %v4328_v51 }
0x2367   :  { %v4366_v42 = vadd.f32 %v4357_v27, %v4278_v5 }
0x2369   :  { %v4370_v48 = vsel %vm190_vm1, %v4366_v42, 0.0 }
0x236a   :  { %4371 = vadd.xlane.f32.xlu2 %v4370_v48 }
0x236c   :  { %v4358_v52 = vpop.f32.mrf.mxu0 }
0x236d   :  { %v4359_v62 = vadd.f32 %v4358_v52, %v4328_v51 }
0x236f   :  { %v4367_v57 = vadd.f32 %v4359_v62, %v6618_v19  ;;  %v4458_v62 = vperm.slane %v6584_v8, 3 }
0x2371   :  { %v4373_v15 = vsel %vm190_vm1, %v4367_v57, 0.0 }
0x2372   :  { %4374 = vadd.xlane.f32.xlu1 %v4373_v15 }
0x237e   :  { %v4361_v30 = vpop.f32.mrf.mxu0 }
0x237f   :  { %v4362_v54 = vadd.f32 %v4361_v30, %v4328_v51 }
0x2381   :  { %v4368_v3 = vadd.f32 %v4362_v54, %v4280_v46 }
0x2383   :  { %v4376_v18 = vsel %vm190_vm1, %v4368_v3, 0.0 }
0x2384   :  { %4377 = vadd.xlane.f32.xlu0 %v4376_v18  ;;  %v4463_v18 = vperm.slane %v6584_v8, 4 }
0x2386   :  { %v4363_v17 = vpop.f32.mrf.mxu0 }
0x2387   :  { %v4364_v14 = vadd.f32 %v4363_v17, %v4328_v51 }
0x2389   :  { %v4369_v59 = vadd.f32 %v4364_v14, %v4281_v39 }
0x238b   :  { %v4379_v20 = vsel %vm190_vm1, %v4369_v59, 0.0 }
0x238c   :  { %4380 = vadd.xlane.f32.xlu2 %v4379_v20 }
0x23a4   :  { %4479 = vperm.xlu2 %4992, %v4469_v40   ;;  %v4966_v40 = vld [vmem:[#allocation10 + $0x8] sm:$0xff] }
0x23a5   :  { %4571 = vmatpush.bf16.msrb.mxu1 %v4966_v40 }
0x23dd   :  { %v4372_v5 = vpop.xlane.xlu2 %4371 }
0x23de   :  { %v4382_v19 = vmul.f32 %v4372_v5, %v5835_v24 }
0x23e0   :  { %v6639_v53 = vsub.f32 %v4366_v42, %v4382_v19 }
0x23e2   :  { %v4390_v29 = vmul.f32 %v6639_v53, %v6639_v53 }
0x23e4   :  { %v4394_v37 = vsel %vm190_vm1, %v4390_v29, 0.0 }
0x23e5   :  { %v4375_v61 = vpop.xlane.xlu1 %4374  ;;  %4395 = vadd.xlane.f32.xlu1 %v4394_v37 }
0x23e6   :  { %v4383_v22 = vmul.f32 %v4375_v61, %v5835_v24 }
0x23e8   :  { %v4387_v6 = vsub.f32 %v4367_v57, %v4383_v22  ;;  %v4965_v22 = vld [vmem:[#allocation10] sm:$0xff] }
0x23e9   :  { %4572 = vmatpush.bf16.msrb.mxu1 %v4965_v22 }
0x23ea   :  { %v4391_v25 = vmul.f32 %v4387_v6, %v4387_v6 }
0x23ec   :  { %v4397_v9 = vsel %vm190_vm1, %v4391_v25, 0.0 }
0x23ed   :  { %4398 = vadd.xlane.f32.xlu0 %v4397_v9 }
0x23f7   :  { %v4378_v56 = vpop.xlane.xlu0 %4377 }
0x23f8   :  { %v4384_v21 = vmul.f32 %v4378_v56, %v5835_v24 }
0x23fa   :  { %v6647_v31 = vsub.f32 %v4368_v3, %v4384_v21 }
0x23fc   :  { %v4392_v33 = vmul.f32 %v6647_v31, %v6647_v31 }
0x23fe   :  { %v4400_v41 = vsel %vm190_vm1, %v4392_v33, 0.0 }
0x23ff   :  { %4401 = vadd.xlane.f32.xlu2 %v4400_v41  ;;  %v4381_v26 = vpop.xlane.xlu2 %4380 }
0x2400   :  { %v4385_v23 = vmul.f32 %v4381_v26, %v5835_v24 }
0x2401   :  { %4474 = vperm.xlu0 %4991, %v4468_v1  }
0x2402   :  { %v6656_v7 = vsub.f32 %v4369_v59, %v4385_v23 }
0x2404   :  { %v4393_v34 = vmul.f32 %v6656_v7, %v6656_v7 }
0x2406   :  { %v4403_v43 = vsel %vm190_vm1, %v4393_v34, 0.0 }
0x2407   :  { %4404 = vadd.xlane.f32.xlu1 %v4403_v43  ;;  %v4480_v58 = vpop.permute.xlu2 %4479 }
0x2417   :  { %4489 = vperm.xlu2 %4992, %v4471_v36  }
0x2420   :  { %4484 = vperm.xlu1 %4993, %v4470_v49  }
0x2458   :  { %v4396_v46 = vpop.xlane.xlu1 %4395 }
0x2459   :  { %v4406_v39 = vmul.f32 %v4396_v46, %v5835_v24 }
0x245b   :  { %v4410_v47 = vadd.f32 1e-05, %v4406_v39 }
0x245d   :  { %5231 = vrsqrt.f32 %v4410_v47  ;;  %vm4420_vm15 = vweird.f32 %v4410_v47 }
0x2460   :  { %v4399_v2 = vpop.xlane.xlu0 %4398 }
0x2461   :  { %v4407_v16 = vmul.f32 %v4399_v2, %v5835_v24 }
0x2463   :  { %v5232_v35 = vpop.eup %5231  ;;  %v4411_v55 = vadd.f32 1e-05, %v4407_v16 }
0x2464   :  { %v4415_v12 = vmul.f32 %v5232_v35, %v4410_v47  ;;  %vm4421_vm13 = vweird.f32 %v5232_v35 }
0x2465   :  { %5233 = vrsqrt.f32 %v4411_v55  ;;  %vm4430_vm2 = vweird.f32 %v4411_v55  ;;  %vm4422_vm0 = vmor %vm4420_vm15, %vm4421_vm13 }
0x2466   :  { %v4416_v50 = vmul.f32 %v5232_v35, %v4415_v12 }
0x2468   :  { %v4417_v0 = vmul.f32 0.5, %v4416_v50 }
0x246a   :  { %v4418_v45 = vsub.f32 1.5, %v4417_v0 }
0x246b   :  { %v5234_v60 = vpop.eup %5233 }
0x246c   :  { %v4425_v44 = vmul.f32 %v5234_v60, %v4411_v55  ;;  %vm4431_vm12 = vweird.f32 %v5234_v60  ;;  %v4419_v38 = vmul.f32 %v5232_v35, %v4418_v45 }
0x246d   :  { %vm4432_vm14 = vmor %vm4430_vm2, %vm4431_vm12  ;;  %vm4532_vm12 = vcmask 1043459  }
0x246e   :  { %v4426_v4 = vmul.f32 %v5234_v60, %v4425_v44  ;;  %v4423_v42 = vsel %vm4422_vm0, %v5232_v35, %v4419_v38 }
0x246f   :  { %v4454_v32 = vmul.f32 %v4423_v42, %v6639_v53 }
0x2470   :  { %v4427_v28 = vmul.f32 0.5, %v4426_v4 }
0x2471   :  { %v4459_v17 = vmul.f32 %v4458_v62, %v4454_v32 }
0x2472   :  { %v4428_v11 = vsub.f32 1.5, %v4427_v28  ;;  %v4402_v63 = vpop.xlane.xlu2 %4401 }
0x2473   :  { %v4408_v10 = vmul.f32 %v4402_v63, %v5835_v24  ;;  %v4464_v5 = vadd.f32 %v4463_v18, %v4459_v17  ;;  %v4475_v29 = vpop.permute.xlu0 %4474  ;;  %v4967_v17 = vld [vmem:[#allocation10 + $0x10] sm:$0xff] }
0x2474   :  { %v4429_v51 = vmul.f32 %v5234_v60, %v4428_v11 }
0x2475   :  { %v4412_v13 = vadd.f32 1e-05, %v4408_v10 }
0x2476   :  { %v4433_v27 = vsel %vm4432_vm14, %v5234_v60, %v4429_v51 }
0x2477   :  { %5235 = vrsqrt.f32 %v4412_v13  ;;  %v4455_v48 = vmul.f32 %v4433_v27, %v4387_v6  ;;  %vm4440_vm5 = vweird.f32 %v4412_v13  ;;  %v4492_v6 = vmul.f32 %v4475_v29, %v4464_v5 }
0x2479   :  { %v4460_v30 = vmul.f32 %v4458_v62, %v4455_v48  ;;  %v4496_v33 = vsel %vm190_vm1, %v4492_v6, 0.0 }
0x247a   :  { %v4405_v52 = vpop.xlane.xlu1 %4404  ;;  %v4497_v23 = vrot.slane %v4496_v33, 4  ;;  %v4490_v50 = vpop.permute.xlu2 %4489 }
0x247b   :  { %v4409_v57 = vmul.f32 %v4405_v52, %v5835_v24  ;;  %v4465_v59 = vadd.f32 %v4463_v18, %v4460_v30 }
0x247c   :  { %v4498_v39 = vadd.f32 %v4497_v23, %v4496_v33 }
0x247d   :  { %v5236_v15 = vpop.eup %5235  ;;  %v4413_v54 = vadd.f32 1e-05, %v4409_v57  ;;  %v4493_v37 = vmul.f32 %v4480_v58, %v4465_v59 }
0x247e   :  { %v4435_v3 = vmul.f32 %v5236_v15, %v4412_v13  ;;  %vm4441_vm4 = vweird.f32 %v5236_v15  ;;  %v4499_v12 = vrot.slane %v4498_v39, 2 }
0x247f   :  { %5237 = vrsqrt.f32 %v4413_v54  ;;  %vm4442_vm6 = vmor %vm4440_vm5, %vm4441_vm4  ;;  %v4503_v9 = vsel %vm190_vm1, %v4493_v37, 0.0  ;;  %vm4450_vm8 = vweird.f32 %v4413_v54  ;;  %v4969_v37 = vld [vmem:[#allocation10 + $0x20] sm:$0xff] }
0x2480   :  { %v4436_v14 = vmul.f32 %v5236_v15, %v4435_v3  ;;  %v4504_v41 = vrot.slane %v4503_v9, 4  ;;  %v4500_v45 = vadd.f32 %v4499_v12, %v4498_v39 }
0x2482   :  { %v4437_v20 = vmul.f32 0.5, %v4436_v14  ;;  %v4505_v43 = vadd.f32 %v4504_v41, %v4503_v9  ;;  %v4501_v38 = vrot.slane %v4500_v45, 1  ;;  %v5243_v14 = vld [vmem:[#allocation2] sm:$0x3f] }
0x2483   :  { %v4549_v59 = vperm.slane %v5243_v14, 1  ;;  %v4611_v9 = vperm.slane %v5243_v14, 3  ;;  %v4641_v33 = vperm.slane %v5243_v14, 4 }
0x2484   :  { %v4438_v19 = vsub.f32 1.5, %v4437_v20  ;;  %v4506_v16 = vrot.slane %v4505_v43, 2  ;;  %v4502_v52 = vadd.f32 %v4501_v38, %v4500_v45 }
0x2485   :  { %v5238_v53 = vpop.eup %5237 }
0x2486   :  { %v4439_v24 = vmul.f32 %v5236_v15, %v4438_v19  ;;  %v4445_v61 = vmul.f32 %v5238_v53, %v4413_v54  ;;  %vm4451_vm7 = vweird.f32 %v5238_v53  ;;  %v4507_v0 = vadd.f32 %v4506_v16, %v4505_v43 }
0x2487   :  { %vm4452_vm9 = vmor %vm4450_vm8, %vm4451_vm7 }
0x2488   :  { %v4446_v8 = vmul.f32 %v5238_v53, %v4445_v61  ;;  %v4443_v25 = vsel %vm4442_vm6, %v5236_v15, %v4439_v24  ;;  %v4508_v11 = vrot.slane %v4507_v0, 1  ;;  %v4580_v24 = vperm.slane %v5243_v14, 2 }
0x2489   :  { %v4456_v56 = vmul.f32 %v4443_v25, %v6647_v31 }
0x248a   :  { %v4447_v21 = vmul.f32 0.5, %v4446_v8  ;;  %v4509_v27 = vadd.f32 %v4508_v11, %v4507_v0 }
0x248b   :  { %v4461_v26 = vmul.f32 %v4458_v62, %v4456_v56 }
0x248c   :  { %v4448_v1 = vsub.f32 1.5, %v4447_v21  ;;  %v4529_v32 = vsel %vm4528_vm10, %v4509_v27, %v4502_v52 }
0x248d   :  { %v4466_v46 = vadd.f32 %v4463_v18, %v4461_v26 }
0x248e   :  { %v4449_v34 = vmul.f32 %v5238_v53, %v4448_v1 }
0x2490   :  { %v4453_v36 = vsel %vm4452_vm9, %v5238_v53, %v4449_v34  ;;  %v4970_v53 = vld [vmem:[#allocation10 + $0x28] sm:$0xff]  ;;  %v4646_v34 = vperm.slane %v5243_v14, 5 }
0x2491   :  { %v4457_v49 = vmul.f32 %v4453_v36, %v6656_v7  ;;  %4633 = vmatpush.bf16.msra.mxu2 %v4970_v53 }
0x2492   :  { %v4485_v47 = vpop.permute.xlu1 %4484 }
0x2493   :  { %v4462_v2 = vmul.f32 %v4458_v62, %v4457_v49  ;;  %v4494_v31 = vmul.f32 %v4485_v47, %v4466_v46 }
0x2495   :  { %v4467_v35 = vadd.f32 %v4463_v18, %v4462_v2  ;;  %v4510_v55 = vsel %vm190_vm1, %v4494_v31, 0.0  ;;  %v4968_v18 = vld [vmem:[#allocation10 + $0x18] sm:$0xff]  ;;  %4634 = vmatpush.bf16.msra.mxu2 %v4969_v37 }
0x2496   :  { %v4511_v58 = vrot.slane %v4510_v55, 4  ;;  %4602 = vmatpush.bf16.msra.mxu1 %v4968_v18 }
0x2497   :  { %v4495_v60 = vmul.f32 %v4490_v50, %v4467_v35 }
0x2498   :  { %v4512_v44 = vadd.f32 %v4511_v58, %v4510_v55 }
0x2499   :  { %v4517_v4 = vsel %vm190_vm1, %v4495_v60, 0.0 }
0x249a   :  { %v4518_v28 = vrot.slane %v4517_v4, 4  ;;  %v4513_v7 = vrot.slane %v4512_v44, 2  ;;  %4603 = vmatpush.bf16.msra.mxu1 %v4967_v17 }
0x249c   :  { %v4519_v63 = vadd.f32 %v4518_v28, %v4517_v4  ;;  %v4514_v10 = vadd.f32 %v4513_v7, %v4512_v44 }
0x249e   :  { %v4520_v51 = vrot.slane %v4519_v63, 2  ;;  %v4515_v13 = vrot.slane %v4514_v10, 1 }
0x24a0   :  { %v4521_v42 = vadd.f32 %v4520_v51, %v4519_v63  ;;  %v4516_v48 = vadd.f32 %v4515_v13, %v4514_v10 }
0x24a2   :  { %v4522_v62 = vrot.slane %v4521_v42, 1  ;;  %v4531_v15 = vsel %vm4530_vm11, %v4516_v48, %v4529_v32 }
0x24a4   :  { %v4523_v57 = vadd.f32 %v4522_v62, %v4521_v42 }
0x24a6   :  { %v4533_v30 = vsel %vm4532_vm12, %v4523_v57, %v4531_v15 }
0x24a7   :  { %v4535_v54 = vsel %vm370_vm3, %v4533_v30, 0.0 }
0x24a8   :  { %v4548_v3 = vpack.c.bf16 %v4535_v54, %v4535_v54 }
0x24aa   :  { %4926 = vmatmul.msk.bf16.vlgmr.msrb.gmra.mxu1 %vm190_vm1, %v4548_v3 }
0x2527   :  { %v4574_v20 = vpop.f32.mrf.mxu1 }
0x2528   :  { %v4575_v40 = vadd.f32 %v4574_v20, %v4549_v59 }
0x252a   :  { %v4578_v5 = vmax.f32 %v4575_v40, 0.0 }
0x252c   :  { %v4579_v19 = vpack.c.bf16 %v4578_v5, %v4578_v5 }
0x252e   :  { %4935 = vmatmul.msk.bf16.vlgmr.msra.gmra.mxu1 %vm190_vm1, %v4579_v19 }
0x252f   :  { %v4576_v29 = vpop.f32.mrf.mxu1 }
0x25ab   :  { %v4605_v61 = vpop.f32.mrf.mxu1 }
0x25ac   :  { %v4606_v22 = vadd.f32 %v4605_v61, %v4580_v24 }
0x25ae   :  { %v4609_v6 = vmax.f32 %v4606_v22, 0.0 }
0x25b0   :  { %v4610_v8 = vpack.c.bf16 %v4609_v6, %v4609_v6 }
0x25b2   :  { %4944 = vmatmul.msk.bf16.vlgmr.msra.gmra.mxu2 %vm190_vm1, %v4610_v8 }
0x25b3   :  { %v4607_v25 = vpop.f32.mrf.mxu1 }
0x2635   :  { %v4636_v56 = vpop.f32.mrf.mxu2 }
0x2636   :  { %v4637_v21 = vadd.f32 %v4636_v56, %v4611_v9 }
0x2638   :  { %v4640_v41 = vmax.f32 %v4637_v21, 0.0 }
0x263a   :  { %v4642_v1 = vmul.f32 %v4641_v33, %v4640_v41 }
0x263c   :  { %v4643_v26 = vsel %vm190_vm1, %v4642_v1, 0.0 }
0x263d   :  { %v4638_v23 = vpop.f32.mrf.mxu2  ;;  %4644 = vadd.xlane.f32.xlu1 %v4643_v26 }
0x26b0   :  { %v4645_v43 = vpop.xlane.xlu1 %4644 }
0x26b1   :  { %v4647_v36 = vadd.f32 %v4646_v34, %v4645_v43 }
0x26b3   :  { %v4945_v49 = vmul.f32 -1.442695, %v4647_v36 }
0x26b5   :  { %5239 = vpow2.f32 %v4945_v49 }
0x26bb   :  { %v5240_v46 = vpop.eup %5239 }
0x26bc   :  { %v4651_v39 = vadd.f32 1.0, %v5240_v46 }
0x26be   :  { %5241 = vrcp.f32 %v4651_v39  ;;  %v4663_v16 = vand.u32 2147483648, %v4651_v39  ;;  %v4661_v55 = vand.u32 2147483647, %v4651_v39  ;;  %vm4657_vm13 = vweird.f32 %v4651_v39 }
0x26c0   :  { %v4664_v50 = vor.u32 1.1754944e-38, %v4663_v16  ;;  %vm4662_vm2 = vcmp.eq.f32.partialorder %v4661_v55, 8.507059e+37 }
0x26c4   :  { %v5242_v47 = vpop.eup %5241 }
0x26c5   :  { %v4653_v2 = vmul.f32 %v5242_v47, %v4651_v39  ;;  %vm4658_vm3 = vweird.f32 %v5242_v47 }
0x26c6   :  { %vm4659_vm1 = vmor %vm4657_vm13, %vm4658_vm3 }
0x26c7   :  { %v4654_v31 = vsub.f32 1.0, %v4653_v2 }
0x26c9   :  { %v4655_v35 = vmul.f32 %v5242_v47, %v4654_v31 }
0x26cb   :  { %v4656_v12 = vadd.f32 %v5242_v47, %v4655_v35 }
0x26cd   :  { %v4660_v58 = vsel %vm4659_vm1, %v5242_v47, %v4656_v12 }
0x26ce   :  { %v4665_v60 = vsel %vm4662_vm2, %v4664_v50, %v4660_v58 }
0x26cf   :  { %4669 = vperm.xlu2 %4992, %v4665_v60  }
0x2729   :  { %v4670_v0 = vpop.permute.xlu2 %4669 }
0x272a   :  { %4672 = vst [vmem:[#allocation11] sm:$0xff] %v4670_v0 }
0x272b   :  { %4683 = dma.vmem_to_hbm [thread:$0]  %s4679_s30, 128, %s4681_s12, [#allocation4]  }
0x272c   :  { %5394 = dma.done.wait [#allocation4], 128  }
0x272d   :  { %5395 = vsyncadd [#allocation4], 4294967168 }
0x272e   :  { %4688 = vsyncpa [#allocation3], 1 }
0x272f   :  { %4689 = vsyncpa [#allocation6], 1 }
0x2730   :  { %4690 = vsyncpa [#allocation9], 1 }
0x2731   :  { %4691 = vsyncpa [#allocation4], 1 }

</bundles_post_ra>
